<compile_context>
chip_gen: v7x
topology: tpu7x:2x2x1
jax: 0.10.0
libtpu: 0.0.40
codegen_flags: <defaults>
</compile_context>

<pallas_src>
import functools

import numpy as np
import jax
import jax.numpy as jnp
from jax import lax
from jax.experimental import pallas as pl
from jax.experimental.pallas import tpu as pltpu

# Conv stack of the PyTorch module: (kernel, stride, cout).
# Padding is 1 for the 3x3 convs and 0 for the 2x2 stride-2 convs.
CONV_CFG = [
    (3, 1, 8),
    (2, 2, 16),
    (3, 1, 16),
    (2, 2, 32),
    (3, 1, 32),
    (2, 2, 64),
]

OUT_WIDTH = 128   # lane-dense output slab: [pi (A) | v (1) | zero pad]


def _round_up(x, m):
    return ((x + m - 1) // m) * m


def _const_spec(shape):
    """Whole-array block that does not move across the batch grid."""
    zero = (0,) * len(shape)
    return pl.BlockSpec(tuple(shape), lambda b: zero)


# ---------------------------------------------------------------------------
# Fused forward kernel
# ---------------------------------------------------------------------------
def _fused_forward_kernel(img_ref, lin_ref, *rest, conv_cfg, spatial0,
                          pad_offsets, softmax, act_dim):
    f32 = jnp.float32
    n_conv_refs = sum(2 if k == 3 else 3 for (k, _s, _c) in conv_cfg)
    conv_refs = rest[:n_conv_refs]
    (w1img_ref, w1lin_ref, bfc1_ref, wfc2_ref, bfc2_ref,
     whead_ref, bhead_ref) = rest[n_conv_refs:n_conv_refs + 7]
    out_ref = rest[n_conv_refs + 7]
    pad_refs = rest[n_conv_refs + 8:]

    # ---- conv stack on a flat (S*S, C) VMEM-resident activation ----
    x = img_ref[0]                       # (S0*S0, Cin), NHWC flat order
    S = spatial0
    ri = 0
    p3 = 0
    for (k, _stride, cout) in conv_cfg:
        if k == 3:                       # 3x3, pad=1, stride=1
            w_ref, b_ref = conv_refs[ri], conv_refs[ri + 1]
            ri += 2
            pad_ref = pad_refs[p3]
            off = pad_offsets[p3]
            p3 += 1
            rows, cin = pad_ref.shape
            # zero only the top/bottom padding margins (sublane-aligned,
            # static slices); interior rows are fully overwritten below.
            pad_ref[0:off, :] = jnp.zeros((off, cin), f32)
            pad_ref[off + S * S:rows, :] = jnp.zeros((rows - off - S * S, cin),
                                                     f32)
            pad_ref[off:off + S * S, :] = x
            col = lax.broadcasted_iota(jnp.int32, (S * S, 1), 0) % S
            left_ok = col > 0            # reading column w-1 is valid
            right_ok = col < S - 1       # reading column w+1 is valid
            acc = jnp.zeros((S * S, cout), f32)
            for di in range(3):
                for dj in range(3):
                    start = off + (di - 1) * S + (dj - 1)
                    tap = pad_ref[start:start + S * S, :]
                    if dj == 0:          # horizontal wrap at w == 0
                        tap = jnp.where(left_ok, tap, 0.0)
                    elif dj == 2:        # horizontal wrap at w == S-1
                        tap = jnp.where(right_ok, tap, 0.0)
                    acc = acc + jnp.dot(tap, w_ref[di * 3 + dj],
                                        preferred_element_type=f32)
            x = jnp.maximum(acc + b_ref[...], 0.0)
        else:                            # 2x2, stride=2 (no padding)
            w_ref = conv_refs[ri]
            g_ref = conv_refs[ri + 1]
            b_ref = conv_refs[ri + 2]
            ri += 3
            So = S // 2
            acc = jnp.zeros((So * So, cout), f32)
            for t in range(4):
                # gather the tap's pixels FIRST (cin space), then expand to
                # cout -- ~2x fewer MACs than the reversed order.
                xg = jnp.dot(g_ref[t], x, preferred_element_type=f32)
                acc = acc + jnp.dot(xg, w_ref[t], preferred_element_type=f32)
            x = jnp.maximum(acc + b_ref[...], 0.0)
            S = So

    # ---- MLP trunk + fused policy/value head ----
    n_spatial = S * S
    cf = x.shape[1]
    h = bfc1_ref[...] + jnp.dot(lin_ref[0], w1lin_ref[...],
                                preferred_element_type=f32)
    # fc1 image part: W1 rows were pre-permuted at setup to (p = h*W + w, c)
    for p in range(n_spatial):
        h = h + jnp.dot(x[p:p + 1, :], w1img_ref[p * cf:(p + 1) * cf, :],
                        preferred_element_type=f32)
    h = jnp.maximum(h, 0.0)
    h = jnp.maximum(jnp.dot(h, wfc2_ref[...], preferred_element_type=f32)
                    + bfc2_ref[...], 0.0)
    head = jnp.dot(h, whead_ref[...], preferred_element_type=f32) + bhead_ref[...]

    if softmax:
        lane = lax.broadcasted_iota(jnp.int32, head.shape, 1)
        is_logit = lane < act_dim
        logits = jnp.where(is_logit, head, -1e30)
        m = jnp.max(logits, axis=-1, keepdims=True)
        e = jnp.exp(logits - m)
        s = jnp.sum(e, axis=-1, keepdims=True)
        probs = e * pl.reciprocal(s, approx=True)
        head = jnp.where(is_logit, probs,
                         jnp.where(lane == act_dim, head, 0.0))

    out_ref[0] = head.astype(out_ref.dtype)   # one lane-dense (1, 128) store


# ---------------------------------------------------------------------------
# Parameter init + one-time kernel-friendly re-layout (setup-time only)
# ---------------------------------------------------------------------------
def init_params(key, img_size, lin_size, action_size, hidden_size):
    C, Hh, Ww = img_size
    params = {}
    convs = []
    cin = C
    for (k, _s, cout) in CONV_CFG:
        key, kw, kb = jax.random.split(key, 3)
        bound = 1.0 / (cin * k * k) ** 0.5
        w = jax.random.uniform(kw, (k, k, cin, cout), jnp.float32, -bound, bound)
        b = jax.random.uniform(kb, (cout,), jnp.float32, -bound, bound)
        convs.append((w, b))
        cin = cout
    params["convs"] = convs

    conv_out = Hh * Ww                     # module invariant
    linear_in = conv_out + lin_size

    def linear(key, fan_in, fan_out):
        k1, k2 = jax.random.split(key)
        bound = 1.0 / fan_in ** 0.5
        w = jax.random.uniform(k1, (fan_in, fan_out), jnp.float32, -bound, bound)
        b = jax.random.uniform(k2, (fan_out,), jnp.float32, -bound, bound)
        return w, b

    key, k1, k2, k3, k4 = jax.random.split(key, 5)
    params["fc1"] = linear(k1, linear_in, hidden_size)
    params["fc2"] = linear(k2, hidden_size, hidden_size)
    params["policy"] = linear(k3, hidden_size, action_size)
    params["value"] = linear(k4, hidden_size, 1)
    params["log_std"] = jnp.ones((action_size,), jnp.float32)
    return params


def prepare_kernel_params(params, img_size, lin_size, action_size, hidden_size):
    """One-time weight re-layout into kernel-friendly (VMEM-friendly) form."""
    C0, H0, W0 = img_size
    assert H0 == W0 and H0 % 8 == 0
    kp = {"action_size": action_size, "log_std": params["log_std"]}

    convs, pad_shapes, pad_offsets = [], [], []
    S = H0
    for (w, b), (k, _stride, cout) in zip(params["convs"], CONV_CFG):
        cin = w.shape[2]
        bk = b.reshape(1, cout)
        if k == 3:
            wk = w.reshape(9, cin, cout)               # tap index = di*3 + dj
            convs.append((wk, bk))
            off = _round_up(S + 1, 8)
            rows = _round_up(off + S * S + S + 1, 8)
            pad_offsets.append(off)
            pad_shapes.append((rows, cin))
        else:
            So = S // 2
            wk = w.reshape(4, cin, cout)               # tap index = di*2 + dj
            g = np.zeros((4, So * So, S * S), np.float32)
            for di in range(2):
                for dj in range(2):
                    t = di * 2 + dj
                    for ho in range(So):
                        for wo in range(So):
                            g[t, ho * So + wo,
                              (2 * ho + di) * S + (2 * wo + dj)] = 1.0
            convs.append((wk, jnp.asarray(g), bk))
            S = So
    kp["convs"] = convs
    kp["pad_shapes"] = tuple(pad_shapes)
    kp["pad_offsets"] = tuple(pad_offsets)

    sf, cf = S, CONV_CFG[-1][2]
    conv_out = sf * sf * cf
    assert conv_out == H0 * W0                         # module invariant

    w1, b1 = params["fc1"]
    # torch.flatten on NCHW orders conv features (c, h, w); the kernel's flat
    # NHWC activation orders them (p = h*W + w, c).  Permute fc1 rows once.
    perm = np.array([c * (sf * sf) + p
                     for p in range(sf * sf) for c in range(cf)], dtype=np.int32)
    kp["w1img"] = jnp.asarray(w1[:conv_out])[perm]     # (conv_out, hidden)
    kp["w1lin"] = w1[conv_out:]
    kp["bfc1"] = b1.reshape(1, -1)
    w2, b2 = params["fc2"]
    kp["wfc2"] = w2
    kp["bfc2"] = b2.reshape(1, -1)

    wp, bp = params["policy"]
    wv, bv = params["value"]
    assert action_size + 1 <= OUT_WIDTH
    whead = jnp.zeros((hidden_size, OUT_WIDTH), jnp.float32)
    whead = whead.at[:, :action_size].set(wp)
    whead = whead.at[:, action_size:action_size + 1].set(wv)
    bhead = jnp.zeros((OUT_WIDTH,), jnp.float32)
    bhead = bhead.at[:action_size].set(bp).at[action_size].set(bv[0])
    kp["whead"] = whead
    kp["bhead"] = bhead.reshape(1, OUT_WIDTH)
    return kp


# ---------------------------------------------------------------------------
# Forward wrapper (single fused pallas_call)
# ---------------------------------------------------------------------------
def ppo_holodeck_forward(kparams, img, lin, *, is_continuous):
    """img: (B, C, H, W) NCHW (PyTorch convention); lin: (B, lin_size)."""
    # TODO(synk): prev_action / prev_reward are ignored by the PyTorch forward too.
    B, C, H, W = img.shape
    L = lin.shape[-1]
    A = kparams["action_size"]

    img_p = jnp.transpose(img, (0, 2, 3, 1)).reshape(B, H * W, C)  # flat NHWC
    lin_p = lin.reshape(B, 1, L)

    conv_inputs, conv_specs = [], []
    for layer in kparams["convs"]:
        for arr in layer:
            conv_inputs.append(arr)
            conv_specs.append(_const_spec(arr.shape))
    fc_inputs = [kparams["w1img"], kparams["w1lin"], kparams["bfc1"],
                 kparams["wfc2"], kparams["bfc2"],
                 kparams["whead"], kparams["bhead"]]
    fc_specs = [_const_spec(a.shape) for a in fc_inputs]

    kernel = functools.partial(
        _fused_forward_kernel,
        conv_cfg=tuple(CONV_CFG), spatial0=H,
        pad_offsets=kparams["pad_offsets"],
        softmax=not is_continuous, act_dim=A)

    out = pl.pallas_call(
        kernel,
        grid=(B,),
        in_specs=[pl.BlockSpec((1, H * W, C), lambda b: (b, 0, 0)),
                  pl.BlockSpec((1, 1, L), lambda b: (b, 0, 0))]
                 + conv_specs + fc_specs,
        out_specs=pl.BlockSpec((1, 1, OUT_WIDTH), lambda b: (b, 0, 0)),
        out_shape=jax.ShapeDtypeStruct((B, 1, OUT_WIDTH), jnp.float32),
        scratch_shapes=[pltpu.VMEM(s, jnp.float32)
                        for s in kparams["pad_shapes"]],
        compiler_params=pltpu.CompilerParams(
            dimension_semantics=("parallel",)),
    )(img_p, lin_p, *conv_inputs, *fc_inputs)

    pi = out[:, 0, :A]
    v = out[:, 0, A]
    if is_continuous:
        log_std = jnp.broadcast_to(kparams["log_std"], (B, A))
        return pi, log_std, v
    return pi, v


# ---------------------------------------------------------------------------
# Pure-JAX reference (numerical sanity check only)
# ---------------------------------------------------------------------------
def reference_forward(params, img, lin, *, is_continuous):
    TB = img.shape[0]
    x = jnp.transpose(img, (0, 2, 3, 1))
    for (w, b), (k, s, _c) in zip(params["convs"], CONV_CFG):
        p = 1 if k == 3 else 0
        x = lax.conv_general_dilated(
            x, w, window_strides=(s, s), padding=[(p, p), (p, p)],
            dimension_numbers=("NHWC", "HWIO", "NHWC"))
        x = jnp.maximum(x + b, 0.0)
    img_flat = jnp.transpose(x, (0, 3, 1, 2)).reshape(TB, -1)
    feat = jnp.concatenate([img_flat, lin], axis=-1)

    def dense(h, wb):
        w, b = wb
        return h @ w + b

    h = jnp.maximum(dense(feat, params["fc1"]), 0.0)
    h = jnp.maximum(dense(h, params["fc2"]), 0.0)
    logits = dense(h, params["policy"])
    v = dense(h, params["value"])[:, 0]
    if is_continuous:
        log_std = jnp.broadcast_to(params["log_std"],
                                   (TB, params["log_std"].shape[0]))
        return logits, log_std, v
    return jax.nn.softmax(logits, axis=-1), v


if __name__ == "__main__":
    img_size = (4, 16, 16)      # (C, H, W); H, W divisible by 8 (three stride-2 convs)
    lin_size = 8
    action_size = 6
    hidden_size = 128
    batch = 2                   # lead_dim = 1, T = 1, B = 2

    key = jax.random.PRNGKey(0)
    kp_, ki, kl = jax.random.split(key, 3)
    params = init_params(kp_, img_size, lin_size, action_size, hidden_size)
    kparams = prepare_kernel_params(params, img_size, lin_size,
                                    action_size, hidden_size)

    img = jax.random.normal(ki, (batch,) + img_size, jnp.float32)   # (2, 4, 16, 16)
    lin = jax.random.normal(kl, (batch, lin_size), jnp.float32)     # (2, 8)

    # discrete head (softmax policy)
    pi, v = ppo_holodeck_forward(kparams, img, lin, is_continuous=False)
    jax.block_until_ready((pi, v))
    pi_ref, v_ref = reference_forward(params, img, lin, is_continuous=False)
    assert pi.shape == (batch, action_size) and v.shape == (batch,)
    assert jnp.allclose(pi, pi_ref, atol=2e-3, rtol=2e-3)
    assert jnp.allclose(v, v_ref, atol=2e-3, rtol=2e-3)

    # continuous head (raw mu logits + log_std) -- exercises the no-softmax path
    mu, log_std, v2 = ppo_holodeck_forward(kparams, img, lin, is_continuous=True)
    jax.block_until_ready((mu, log_std, v2))
    mu_ref, ls_ref, v2_ref = reference_forward(params, img, lin, is_continuous=True)
    assert jnp.allclose(mu, mu_ref, atol=2e-3, rtol=2e-3)
    assert jnp.allclose(v2, v2_ref, atol=2e-3, rtol=2e-3)
    assert jnp.allclose(log_std, ls_ref)

    print("KERNEL_OK")
</pallas_src>

<mosaic_0001>
module attributes {stable_mosaic.version = 11 : i64} {
  func.func @_fused_forward_kernel(%arg0: i32, %arg1: memref<1x256x4xf32, #tpu.memory_space<vmem>>, %arg2: memref<1x1x8xf32, #tpu.memory_space<vmem>>, %arg3: memref<9x4x8xf32, #tpu.memory_space<vmem>>, %arg4: memref<1x8xf32, #tpu.memory_space<vmem>>, %arg5: memref<4x8x16xf32, #tpu.memory_space<vmem>>, %arg6: memref<4x64x256xf32, #tpu.memory_space<vmem>>, %arg7: memref<1x16xf32, #tpu.memory_space<vmem>>, %arg8: memref<9x16x16xf32, #tpu.memory_space<vmem>>, %arg9: memref<1x16xf32, #tpu.memory_space<vmem>>, %arg10: memref<4x16x32xf32, #tpu.memory_space<vmem>>, %arg11: memref<4x16x64xf32, #tpu.memory_space<vmem>>, %arg12: memref<1x32xf32, #tpu.memory_space<vmem>>, %arg13: memref<9x32x32xf32, #tpu.memory_space<vmem>>, %arg14: memref<1x32xf32, #tpu.memory_space<vmem>>, %arg15: memref<4x32x64xf32, #tpu.memory_space<vmem>>, %arg16: memref<4x4x16xf32, #tpu.memory_space<vmem>>, %arg17: memref<1x64xf32, #tpu.memory_space<vmem>>, %arg18: memref<256x128xf32, #tpu.memory_space<vmem>>, %arg19: memref<8x128xf32, #tpu.memory_space<vmem>>, %arg20: memref<1x128xf32, #tpu.memory_space<vmem>>, %arg21: memref<128x128xf32, #tpu.memory_space<vmem>>, %arg22: memref<1x128xf32, #tpu.memory_space<vmem>>, %arg23: memref<128x128xf32, #tpu.memory_space<vmem>>, %arg24: memref<1x128xf32, #tpu.memory_space<vmem>>, %arg25: memref<1x1x128xf32, #tpu.memory_space<vmem>>, %arg26: memref<304x4xf32, #tpu.memory_space<vmem>>, %arg27: memref<96x16xf32, #tpu.memory_space<vmem>>, %arg28: memref<32x32xf32, #tpu.memory_space<vmem>>) attributes {dimension_semantics = [#tpu.dimension_semantics<parallel>], iteration_bounds = array<i64: 2>, scalar_prefetch = 0 : i64, scratch_operands = 3 : i64, tpu.core_type = #tpu.core_type<tc>, window_params = [{transform_indices = @transform_0, window_bounds = array<i64: 1, 256, 4>}, {transform_indices = @transform_1, window_bounds = array<i64: 1, 1, 8>}, {pipeline_mode = #tpu.pipeline_mode<synchronous>, transform_indices = @transform_2, window_bounds = array<i64: 9, 4, 8>}, {pipeline_mode = #tpu.pipeline_mode<synchronous>, transform_indices = @transform_3, window_bounds = array<i64: 1, 8>}, {pipeline_mode = #tpu.pipeline_mode<synchronous>, transform_indices = @transform_4, window_bounds = array<i64: 4, 8, 16>}, {pipeline_mode = #tpu.pipeline_mode<synchronous>, transform_indices = @transform_5, window_bounds = array<i64: 4, 64, 256>}, {pipeline_mode = #tpu.pipeline_mode<synchronous>, transform_indices = @transform_6, window_bounds = array<i64: 1, 16>}, {pipeline_mode = #tpu.pipeline_mode<synchronous>, transform_indices = @transform_7, window_bounds = array<i64: 9, 16, 16>}, {pipeline_mode = #tpu.pipeline_mode<synchronous>, transform_indices = @transform_8, window_bounds = array<i64: 1, 16>}, {pipeline_mode = #tpu.pipeline_mode<synchronous>, transform_indices = @transform_9, window_bounds = array<i64: 4, 16, 32>}, {pipeline_mode = #tpu.pipeline_mode<synchronous>, transform_indices = @transform_10, window_bounds = array<i64: 4, 16, 64>}, {pipeline_mode = #tpu.pipeline_mode<synchronous>, transform_indices = @transform_11, window_bounds = array<i64: 1, 32>}, {pipeline_mode = #tpu.pipeline_mode<synchronous>, transform_indices = @transform_12, window_bounds = array<i64: 9, 32, 32>}, {pipeline_mode = #tpu.pipeline_mode<synchronous>, transform_indices = @transform_13, window_bounds = array<i64: 1, 32>}, {pipeline_mode = #tpu.pipeline_mode<synchronous>, transform_indices = @transform_14, window_bounds = array<i64: 4, 32, 64>}, {pipeline_mode = #tpu.pipeline_mode<synchronous>, transform_indices = @transform_15, window_bounds = array<i64: 4, 4, 16>}, {pipeline_mode = #tpu.pipeline_mode<synchronous>, transform_indices = @transform_16, window_bounds = array<i64: 1, 64>}, {pipeline_mode = #tpu.pipeline_mode<synchronous>, transform_indices = @transform_17, window_bounds = array<i64: 256, 128>}, {pipeline_mode = #tpu.pipeline_mode<synchronous>, transform_indices = @transform_18, window_bounds = array<i64: 8, 128>}, {pipeline_mode = #tpu.pipeline_mode<synchronous>, transform_indices = @transform_19, window_bounds = array<i64: 1, 128>}, {pipeline_mode = #tpu.pipeline_mode<synchronous>, transform_indices = @transform_20, window_bounds = array<i64: 128, 128>}, {pipeline_mode = #tpu.pipeline_mode<synchronous>, transform_indices = @transform_21, window_bounds = array<i64: 1, 128>}, {pipeline_mode = #tpu.pipeline_mode<synchronous>, transform_indices = @transform_22, window_bounds = array<i64: 128, 128>}, {pipeline_mode = #tpu.pipeline_mode<synchronous>, transform_indices = @transform_23, window_bounds = array<i64: 1, 128>}, {transform_indices = @transform_24, window_bounds = array<i64: 1, 1, 128>}]} {
    %c0 = arith.constant 0 : index
    %c0_0 = arith.constant 0 : index
    %c0_1 = arith.constant 0 : index
    %0 = vector.load %arg1[%c0, %c0_0, %c0_1] : memref<1x256x4xf32, #tpu.memory_space<vmem>>, vector<1x256x4xf32>
    %1 = vector.shape_cast %0 : vector<1x256x4xf32> to vector<256x4xf32>
    %cst = arith.constant 0.000000e+00 : f32
    %2 = vector.broadcast %cst : f32 to vector<24x4xf32>
    %c0_2 = arith.constant 0 : index
    %c0_3 = arith.constant 0 : index
    %3 = vector.load %arg26[%c0_2, %c0_3] : memref<304x4xf32, #tpu.memory_space<vmem>>, vector<24x4xf32>
    tpu.vector_store %arg26[%c0_2, %c0_3], %2 {strides = array<i32>} : memref<304x4xf32, #tpu.memory_space<vmem>>, vector<24x4xf32>,
    %cst_4 = arith.constant 0.000000e+00 : f32
    %4 = vector.broadcast %cst_4 : f32 to vector<24x4xf32>
    %c280 = arith.constant 280 : index
    %c0_5 = arith.constant 0 : index
    %5 = vector.load %arg26[%c280, %c0_5] : memref<304x4xf32, #tpu.memory_space<vmem>>, vector<24x4xf32>
    tpu.vector_store %arg26[%c280, %c0_5], %4 {strides = array<i32>} : memref<304x4xf32, #tpu.memory_space<vmem>>, vector<24x4xf32>,
    %c24 = arith.constant 24 : index
    %c0_6 = arith.constant 0 : index
    %6 = vector.load %arg26[%c24, %c0_6] : memref<304x4xf32, #tpu.memory_space<vmem>>, vector<256x4xf32>
    tpu.vector_store %arg26[%c24, %c0_6], %1 {strides = array<i32>} : memref<304x4xf32, #tpu.memory_space<vmem>>, vector<256x4xf32>,
    %7 = tpu.iota {dimensions = array<i32: 0>} : vector<256x1xi32>
    %c16_i32 = arith.constant 16 : i32
    %c0_i32 = arith.constant 0 : i32
    %8 = arith.cmpi eq, %c16_i32, %c0_i32 : i32
    %c1_i32 = arith.constant 1 : i32
    %9 = arith.select %8, %c1_i32, %c16_i32 : i32
    %10 = vector.broadcast %9 : i32 to vector<256x1xi32>
    %11 = arith.remsi %7, %10 : vector<256x1xi32>
    %c0_i32_7 = arith.constant 0 : i32
    %12 = vector.broadcast %c0_i32_7 : i32 to vector<256x1xi32>
    %13 = arith.cmpi ne, %11, %12 : vector<256x1xi32>
    %c0_i32_8 = arith.constant 0 : i32
    %14 = vector.broadcast %c0_i32_8 : i32 to vector<256x1xi32>
    %15 = arith.cmpi slt, %11, %14 : vector<256x1xi32>
    %c0_i32_9 = arith.constant 0 : i32
    %16 = arith.cmpi slt, %9, %c0_i32_9 : i32
    %17 = vector.broadcast %16 : i1 to vector<256x1xi1>
    %18 = vector.broadcast %17 : vector<256x1xi1> to vector<256x1xi1>
    %19 = arith.xori %15, %18 : vector<256x1xi1>
    %20 = arith.andi %19, %13 : vector<256x1xi1>
    %21 = vector.broadcast %9 : i32 to vector<256x1xi32>
    %22 = arith.addi %11, %21 : vector<256x1xi32>
    %23 = arith.select %20, %22, %11 : vector<256x1xi1>, vector<256x1xi32>
    %c0_i32_10 = arith.constant 0 : i32
    %24 = vector.broadcast %c0_i32_10 : i32 to vector<256x1xi32>
    %25 = arith.cmpi sgt, %23, %24 : vector<256x1xi32>
    %c15_i32 = arith.constant 15 : i32
    %26 = vector.broadcast %c15_i32 : i32 to vector<256x1xi32>
    %27 = arith.cmpi slt, %23, %26 : vector<256x1xi32>
    %cst_11 = arith.constant 0.000000e+00 : f32
    %28 = vector.broadcast %cst_11 : f32 to vector<256x8xf32>
    %c7 = arith.constant 7 : index
    %c0_12 = arith.constant 0 : index
    %29 = vector.load %arg26[%c7, %c0_12] : memref<304x4xf32, #tpu.memory_space<vmem>>, vector<256x4xf32>
    %cst_13 = arith.constant 0.000000e+00 : f32
    %30 = vector.shape_cast %25 : vector<256x1xi1> to vector<256x1xi1>
    %31 = vector.broadcast %30 : vector<256x1xi1> to vector<256x4xi1>
    %32 = vector.broadcast %cst_13 : f32 to vector<256x4xf32>
    %33 = arith.select %31, %29, %32 : vector<256x4xi1>, vector<256x4xf32>
    %c0_14 = arith.constant 0 : index
    %c0_15 = arith.constant 0 : index
    %c0_16 = arith.constant 0 : index
    %34 = vector.load %arg3[%c0_14, %c0_15, %c0_16] : memref<9x4x8xf32, #tpu.memory_space<vmem>>, vector<1x4x8xf32>
    %35 = vector.shape_cast %34 : vector<1x4x8xf32> to vector<4x8xf32>
    %cst_17 = arith.constant dense<0.000000e+00> : vector<256x8xf32>
    %36 = tpu.matmul %33, %35, %cst_17 {dimension_numbers = #tpu.dot_dimension_numbers<[1], [0], [0], [1], [0, 0, 1, 1], [], []>} : vector<256x4xf32>, vector<4x8xf32>, vector<256x8xf32> -> vector<256x8xf32>
    %37 = arith.addf %28, %36 : vector<256x8xf32>
    %c8 = arith.constant 8 : index
    %c0_18 = arith.constant 0 : index
    %38 = vector.load %arg26[%c8, %c0_18] : memref<304x4xf32, #tpu.memory_space<vmem>>, vector<256x4xf32>
    %c1 = arith.constant 1 : index
    %c0_19 = arith.constant 0 : index
    %c0_20 = arith.constant 0 : index
    %39 = vector.load %arg3[%c1, %c0_19, %c0_20] : memref<9x4x8xf32, #tpu.memory_space<vmem>>, vector<1x4x8xf32>
    %40 = vector.shape_cast %39 : vector<1x4x8xf32> to vector<4x8xf32>
    %cst_21 = arith.constant dense<0.000000e+00> : vector<256x8xf32>
    %41 = tpu.matmul %38, %40, %cst_21 {dimension_numbers = #tpu.dot_dimension_numbers<[1], [0], [0], [1], [0, 0, 1, 1], [], []>} : vector<256x4xf32>, vector<4x8xf32>, vector<256x8xf32> -> vector<256x8xf32>
    %42 = arith.addf %37, %41 : vector<256x8xf32>
    %c9 = arith.constant 9 : index
    %c0_22 = arith.constant 0 : index
    %43 = vector.load %arg26[%c9, %c0_22] : memref<304x4xf32, #tpu.memory_space<vmem>>, vector<256x4xf32>
    %cst_23 = arith.constant 0.000000e+00 : f32
    %44 = vector.shape_cast %27 : vector<256x1xi1> to vector<256x1xi1>
    %45 = vector.broadcast %44 : vector<256x1xi1> to vector<256x4xi1>
    %46 = vector.broadcast %cst_23 : f32 to vector<256x4xf32>
    %47 = arith.select %45, %43, %46 : vector<256x4xi1>, vector<256x4xf32>
    %c2 = arith.constant 2 : index
    %c0_24 = arith.constant 0 : index
    %c0_25 = arith.constant 0 : index
    %48 = vector.load %arg3[%c2, %c0_24, %c0_25] : memref<9x4x8xf32, #tpu.memory_space<vmem>>, vector<1x4x8xf32>
    %49 = vector.shape_cast %48 : vector<1x4x8xf32> to vector<4x8xf32>
    %cst_26 = arith.constant dense<0.000000e+00> : vector<256x8xf32>
    %50 = tpu.matmul %47, %49, %cst_26 {dimension_numbers = #tpu.dot_dimension_numbers<[1], [0], [0], [1], [0, 0, 1, 1], [], []>} : vector<256x4xf32>, vector<4x8xf32>, vector<256x8xf32> -> vector<256x8xf32>
    %51 = arith.addf %42, %50 : vector<256x8xf32>
    %c23 = arith.constant 23 : index
    %c0_27 = arith.constant 0 : index
    %52 = vector.load %arg26[%c23, %c0_27] : memref<304x4xf32, #tpu.memory_space<vmem>>, vector<256x4xf32>
    %cst_28 = arith.constant 0.000000e+00 : f32
    %53 = vector.shape_cast %25 : vector<256x1xi1> to vector<256x1xi1>
    %54 = vector.broadcast %53 : vector<256x1xi1> to vector<256x4xi1>
    %55 = vector.broadcast %cst_28 : f32 to vector<256x4xf32>
    %56 = arith.select %54, %52, %55 : vector<256x4xi1>, vector<256x4xf32>
    %c3 = arith.constant 3 : index
    %c0_29 = arith.constant 0 : index
    %c0_30 = arith.constant 0 : index
    %57 = vector.load %arg3[%c3, %c0_29, %c0_30] : memref<9x4x8xf32, #tpu.memory_space<vmem>>, vector<1x4x8xf32>
    %58 = vector.shape_cast %57 : vector<1x4x8xf32> to vector<4x8xf32>
    %cst_31 = arith.constant dense<0.000000e+00> : vector<256x8xf32>
    %59 = tpu.matmul %56, %58, %cst_31 {dimension_numbers = #tpu.dot_dimension_numbers<[1], [0], [0], [1], [0, 0, 1, 1], [], []>} : vector<256x4xf32>, vector<4x8xf32>, vector<256x8xf32> -> vector<256x8xf32>
    %60 = arith.addf %51, %59 : vector<256x8xf32>
    %c24_32 = arith.constant 24 : index
    %c0_33 = arith.constant 0 : index
    %61 = vector.load %arg26[%c24_32, %c0_33] : memref<304x4xf32, #tpu.memory_space<vmem>>, vector<256x4xf32>
    %c4 = arith.constant 4 : index
    %c0_34 = arith.constant 0 : index
    %c0_35 = arith.constant 0 : index
    %62 = vector.load %arg3[%c4, %c0_34, %c0_35] : memref<9x4x8xf32, #tpu.memory_space<vmem>>, vector<1x4x8xf32>
    %63 = vector.shape_cast %62 : vector<1x4x8xf32> to vector<4x8xf32>
    %cst_36 = arith.constant dense<0.000000e+00> : vector<256x8xf32>
    %64 = tpu.matmul %61, %63, %cst_36 {dimension_numbers = #tpu.dot_dimension_numbers<[1], [0], [0], [1], [0, 0, 1, 1], [], []>} : vector<256x4xf32>, vector<4x8xf32>, vector<256x8xf32> -> vector<256x8xf32>
    %65 = arith.addf %60, %64 : vector<256x8xf32>
    %c25 = arith.constant 25 : index
    %c0_37 = arith.constant 0 : index
    %66 = vector.load %arg26[%c25, %c0_37] : memref<304x4xf32, #tpu.memory_space<vmem>>, vector<256x4xf32>
    %cst_38 = arith.constant 0.000000e+00 : f32
    %67 = vector.shape_cast %27 : vector<256x1xi1> to vector<256x1xi1>
    %68 = vector.broadcast %67 : vector<256x1xi1> to vector<256x4xi1>
    %69 = vector.broadcast %cst_38 : f32 to vector<256x4xf32>
    %70 = arith.select %68, %66, %69 : vector<256x4xi1>, vector<256x4xf32>
    %c5 = arith.constant 5 : index
    %c0_39 = arith.constant 0 : index
    %c0_40 = arith.constant 0 : index
    %71 = vector.load %arg3[%c5, %c0_39, %c0_40] : memref<9x4x8xf32, #tpu.memory_space<vmem>>, vector<1x4x8xf32>
    %72 = vector.shape_cast %71 : vector<1x4x8xf32> to vector<4x8xf32>
    %cst_41 = arith.constant dense<0.000000e+00> : vector<256x8xf32>
    %73 = tpu.matmul %70, %72, %cst_41 {dimension_numbers = #tpu.dot_dimension_numbers<[1], [0], [0], [1], [0, 0, 1, 1], [], []>} : vector<256x4xf32>, vector<4x8xf32>, vector<256x8xf32> -> vector<256x8xf32>
    %74 = arith.addf %65, %73 : vector<256x8xf32>
    %c39 = arith.constant 39 : index
    %c0_42 = arith.constant 0 : index
    %75 = vector.load %arg26[%c39, %c0_42] : memref<304x4xf32, #tpu.memory_space<vmem>>, vector<256x4xf32>
    %cst_43 = arith.constant 0.000000e+00 : f32
    %76 = vector.shape_cast %25 : vector<256x1xi1> to vector<256x1xi1>
    %77 = vector.broadcast %76 : vector<256x1xi1> to vector<256x4xi1>
    %78 = vector.broadcast %cst_43 : f32 to vector<256x4xf32>
    %79 = arith.select %77, %75, %78 : vector<256x4xi1>, vector<256x4xf32>
    %c6 = arith.constant 6 : index
    %c0_44 = arith.constant 0 : index
    %c0_45 = arith.constant 0 : index
    %80 = vector.load %arg3[%c6, %c0_44, %c0_45] : memref<9x4x8xf32, #tpu.memory_space<vmem>>, vector<1x4x8xf32>
    %81 = vector.shape_cast %80 : vector<1x4x8xf32> to vector<4x8xf32>
    %cst_46 = arith.constant dense<0.000000e+00> : vector<256x8xf32>
    %82 = tpu.matmul %79, %81, %cst_46 {dimension_numbers = #tpu.dot_dimension_numbers<[1], [0], [0], [1], [0, 0, 1, 1], [], []>} : vector<256x4xf32>, vector<4x8xf32>, vector<256x8xf32> -> vector<256x8xf32>
    %83 = arith.addf %74, %82 : vector<256x8xf32>
    %c40 = arith.constant 40 : index
    %c0_47 = arith.constant 0 : index
    %84 = vector.load %arg26[%c40, %c0_47] : memref<304x4xf32, #tpu.memory_space<vmem>>, vector<256x4xf32>
    %c7_48 = arith.constant 7 : index
    %c0_49 = arith.constant 0 : index
    %c0_50 = arith.constant 0 : index
    %85 = vector.load %arg3[%c7_48, %c0_49, %c0_50] : memref<9x4x8xf32, #tpu.memory_space<vmem>>, vector<1x4x8xf32>
    %86 = vector.shape_cast %85 : vector<1x4x8xf32> to vector<4x8xf32>
    %cst_51 = arith.constant dense<0.000000e+00> : vector<256x8xf32>
    %87 = tpu.matmul %84, %86, %cst_51 {dimension_numbers = #tpu.dot_dimension_numbers<[1], [0], [0], [1], [0, 0, 1, 1], [], []>} : vector<256x4xf32>, vector<4x8xf32>, vector<256x8xf32> -> vector<256x8xf32>
    %88 = arith.addf %83, %87 : vector<256x8xf32>
    %c41 = arith.constant 41 : index
    %c0_52 = arith.constant 0 : index
    %89 = vector.load %arg26[%c41, %c0_52] : memref<304x4xf32, #tpu.memory_space<vmem>>, vector<256x4xf32>
    %cst_53 = arith.constant 0.000000e+00 : f32
    %90 = vector.shape_cast %27 : vector<256x1xi1> to vector<256x1xi1>
    %91 = vector.broadcast %90 : vector<256x1xi1> to vector<256x4xi1>
    %92 = vector.broadcast %cst_53 : f32 to vector<256x4xf32>
    %93 = arith.select %91, %89, %92 : vector<256x4xi1>, vector<256x4xf32>
    %c8_54 = arith.constant 8 : index
    %c0_55 = arith.constant 0 : index
    %c0_56 = arith.constant 0 : index
    %94 = vector.load %arg3[%c8_54, %c0_55, %c0_56] : memref<9x4x8xf32, #tpu.memory_space<vmem>>, vector<1x4x8xf32>
    %95 = vector.shape_cast %94 : vector<1x4x8xf32> to vector<4x8xf32>
    %cst_57 = arith.constant dense<0.000000e+00> : vector<256x8xf32>
    %96 = tpu.matmul %93, %95, %cst_57 {dimension_numbers = #tpu.dot_dimension_numbers<[1], [0], [0], [1], [0, 0, 1, 1], [], []>} : vector<256x4xf32>, vector<4x8xf32>, vector<256x8xf32> -> vector<256x8xf32>
    %97 = arith.addf %88, %96 : vector<256x8xf32>
    %c0_58 = arith.constant 0 : index
    %c0_59 = arith.constant 0 : index
    %98 = vector.load %arg4[%c0_58, %c0_59] : memref<1x8xf32, #tpu.memory_space<vmem>>, vector<1x8xf32>
    %99 = vector.broadcast %98 : vector<1x8xf32> to vector<256x8xf32>
    %100 = arith.addf %97, %99 : vector<256x8xf32>
    %cst_60 = arith.constant 0.000000e+00 : f32
    %101 = vector.broadcast %cst_60 : f32 to vector<256x8xf32>
    %102 = arith.maximumf %100, %101 : vector<256x8xf32>
    %cst_61 = arith.constant 0.000000e+00 : f32
    %103 = vector.broadcast %cst_61 : f32 to vector<64x16xf32>
    %c0_62 = arith.constant 0 : index
    %c0_63 = arith.constant 0 : index
    %c0_64 = arith.constant 0 : index
    %104 = vector.load %arg6[%c0_62, %c0_63, %c0_64] : memref<4x64x256xf32, #tpu.memory_space<vmem>>, vector<1x64x256xf32>
    %105 = vector.shape_cast %104 : vector<1x64x256xf32> to vector<64x256xf32>
    %cst_65 = arith.constant dense<0.000000e+00> : vector<64x8xf32>
    %106 = tpu.matmul %105, %102, %cst_65 {dimension_numbers = #tpu.dot_dimension_numbers<[1], [0], [0], [1], [0, 0, 1, 1], [], []>} : vector<64x256xf32>, vector<256x8xf32>, vector<64x8xf32> -> vector<64x8xf32>
    %c0_66 = arith.constant 0 : index
    %c0_67 = arith.constant 0 : index
    %c0_68 = arith.constant 0 : index
    %107 = vector.load %arg5[%c0_66, %c0_67, %c0_68] : memref<4x8x16xf32, #tpu.memory_space<vmem>>, vector<1x8x16xf32>
    %108 = vector.shape_cast %107 : vector<1x8x16xf32> to vector<8x16xf32>
    %cst_69 = arith.constant dense<0.000000e+00> : vector<64x16xf32>
    %109 = tpu.matmul %106, %108, %cst_69 {dimension_numbers = #tpu.dot_dimension_numbers<[1], [0], [0], [1], [0, 0, 1, 1], [], []>} : vector<64x8xf32>, vector<8x16xf32>, vector<64x16xf32> -> vector<64x16xf32>
    %110 = arith.addf %103, %109 : vector<64x16xf32>
    %c1_70 = arith.constant 1 : index
    %c0_71 = arith.constant 0 : index
    %c0_72 = arith.constant 0 : index
    %111 = vector.load %arg6[%c1_70, %c0_71, %c0_72] : memref<4x64x256xf32, #tpu.memory_space<vmem>>, vector<1x64x256xf32>
    %112 = vector.shape_cast %111 : vector<1x64x256xf32> to vector<64x256xf32>
    %cst_73 = arith.constant dense<0.000000e+00> : vector<64x8xf32>
    %113 = tpu.matmul %112, %102, %cst_73 {dimension_numbers = #tpu.dot_dimension_numbers<[1], [0], [0], [1], [0, 0, 1, 1], [], []>} : vector<64x256xf32>, vector<256x8xf32>, vector<64x8xf32> -> vector<64x8xf32>
    %c1_74 = arith.constant 1 : index
    %c0_75 = arith.constant 0 : index
    %c0_76 = arith.constant 0 : index
    %114 = vector.load %arg5[%c1_74, %c0_75, %c0_76] : memref<4x8x16xf32, #tpu.memory_space<vmem>>, vector<1x8x16xf32>
    %115 = vector.shape_cast %114 : vector<1x8x16xf32> to vector<8x16xf32>
    %cst_77 = arith.constant dense<0.000000e+00> : vector<64x16xf32>
    %116 = tpu.matmul %113, %115, %cst_77 {dimension_numbers = #tpu.dot_dimension_numbers<[1], [0], [0], [1], [0, 0, 1, 1], [], []>} : vector<64x8xf32>, vector<8x16xf32>, vector<64x16xf32> -> vector<64x16xf32>
    %117 = arith.addf %110, %116 : vector<64x16xf32>
    %c2_78 = arith.constant 2 : index
    %c0_79 = arith.constant 0 : index
    %c0_80 = arith.constant 0 : index
    %118 = vector.load %arg6[%c2_78, %c0_79, %c0_80] : memref<4x64x256xf32, #tpu.memory_space<vmem>>, vector<1x64x256xf32>
    %119 = vector.shape_cast %118 : vector<1x64x256xf32> to vector<64x256xf32>
    %cst_81 = arith.constant dense<0.000000e+00> : vector<64x8xf32>
    %120 = tpu.matmul %119, %102, %cst_81 {dimension_numbers = #tpu.dot_dimension_numbers<[1], [0], [0], [1], [0, 0, 1, 1], [], []>} : vector<64x256xf32>, vector<256x8xf32>, vector<64x8xf32> -> vector<64x8xf32>
    %c2_82 = arith.constant 2 : index
    %c0_83 = arith.constant 0 : index
    %c0_84 = arith.constant 0 : index
    %121 = vector.load %arg5[%c2_82, %c0_83, %c0_84] : memref<4x8x16xf32, #tpu.memory_space<vmem>>, vector<1x8x16xf32>
    %122 = vector.shape_cast %121 : vector<1x8x16xf32> to vector<8x16xf32>
    %cst_85 = arith.constant dense<0.000000e+00> : vector<64x16xf32>
    %123 = tpu.matmul %120, %122, %cst_85 {dimension_numbers = #tpu.dot_dimension_numbers<[1], [0], [0], [1], [0, 0, 1, 1], [], []>} : vector<64x8xf32>, vector<8x16xf32>, vector<64x16xf32> -> vector<64x16xf32>
    %124 = arith.addf %117, %123 : vector<64x16xf32>
    %c3_86 = arith.constant 3 : index
    %c0_87 = arith.constant 0 : index
    %c0_88 = arith.constant 0 : index
    %125 = vector.load %arg6[%c3_86, %c0_87, %c0_88] : memref<4x64x256xf32, #tpu.memory_space<vmem>>, vector<1x64x256xf32>
    %126 = vector.shape_cast %125 : vector<1x64x256xf32> to vector<64x256xf32>
    %cst_89 = arith.constant dense<0.000000e+00> : vector<64x8xf32>
    %127 = tpu.matmul %126, %102, %cst_89 {dimension_numbers = #tpu.dot_dimension_numbers<[1], [0], [0], [1], [0, 0, 1, 1], [], []>} : vector<64x256xf32>, vector<256x8xf32>, vector<64x8xf32> -> vector<64x8xf32>
    %c3_90 = arith.constant 3 : index
    %c0_91 = arith.constant 0 : index
    %c0_92 = arith.constant 0 : index
    %128 = vector.load %arg5[%c3_90, %c0_91, %c0_92] : memref<4x8x16xf32, #tpu.memory_space<vmem>>, vector<1x8x16xf32>
    %129 = vector.shape_cast %128 : vector<1x8x16xf32> to vector<8x16xf32>
    %cst_93 = arith.constant dense<0.000000e+00> : vector<64x16xf32>
    %130 = tpu.matmul %127, %129, %cst_93 {dimension_numbers = #tpu.dot_dimension_numbers<[1], [0], [0], [1], [0, 0, 1, 1], [], []>} : vector<64x8xf32>, vector<8x16xf32>, vector<64x16xf32> -> vector<64x16xf32>
    %131 = arith.addf %124, %130 : vector<64x16xf32>
    %c0_94 = arith.constant 0 : index
    %c0_95 = arith.constant 0 : index
    %132 = vector.load %arg7[%c0_94, %c0_95] : memref<1x16xf32, #tpu.memory_space<vmem>>, vector<1x16xf32>
    %133 = vector.broadcast %132 : vector<1x16xf32> to vector<64x16xf32>
    %134 = arith.addf %131, %133 : vector<64x16xf32>
    %cst_96 = arith.constant 0.000000e+00 : f32
    %135 = vector.broadcast %cst_96 : f32 to vector<64x16xf32>
    %136 = arith.maximumf %134, %135 : vector<64x16xf32>
    %cst_97 = arith.constant 0.000000e+00 : f32
    %137 = vector.broadcast %cst_97 : f32 to vector<16x16xf32>
    %c0_98 = arith.constant 0 : index
    %c0_99 = arith.constant 0 : index
    %138 = vector.load %arg27[%c0_98, %c0_99] : memref<96x16xf32, #tpu.memory_space<vmem>>, vector<16x16xf32>
    tpu.vector_store %arg27[%c0_98, %c0_99], %137 {strides = array<i32>} : memref<96x16xf32, #tpu.memory_space<vmem>>, vector<16x16xf32>,
    %cst_100 = arith.constant 0.000000e+00 : f32
    %139 = vector.broadcast %cst_100 : f32 to vector<16x16xf32>
    %c80 = arith.constant 80 : index
    %c0_101 = arith.constant 0 : index
    %140 = vector.load %arg27[%c80, %c0_101] : memref<96x16xf32, #tpu.memory_space<vmem>>, vector<16x16xf32>
    tpu.vector_store %arg27[%c80, %c0_101], %139 {strides = array<i32>} : memref<96x16xf32, #tpu.memory_space<vmem>>, vector<16x16xf32>,
    %c16 = arith.constant 16 : index
    %c0_102 = arith.constant 0 : index
    %141 = vector.load %arg27[%c16, %c0_102] : memref<96x16xf32, #tpu.memory_space<vmem>>, vector<64x16xf32>
    tpu.vector_store %arg27[%c16, %c0_102], %136 {strides = array<i32>} : memref<96x16xf32, #tpu.memory_space<vmem>>, vector<64x16xf32>,
    %142 = tpu.iota {dimensions = array<i32: 0>} : vector<64x1xi32>
    %c8_i32 = arith.constant 8 : i32
    %c0_i32_103 = arith.constant 0 : i32
    %143 = arith.cmpi eq, %c8_i32, %c0_i32_103 : i32
    %c1_i32_104 = arith.constant 1 : i32
    %144 = arith.select %143, %c1_i32_104, %c8_i32 : i32
    %145 = vector.broadcast %144 : i32 to vector<64x1xi32>
    %146 = arith.remsi %142, %145 : vector<64x1xi32>
    %c0_i32_105 = arith.constant 0 : i32
    %147 = vector.broadcast %c0_i32_105 : i32 to vector<64x1xi32>
    %148 = arith.cmpi ne, %146, %147 : vector<64x1xi32>
    %c0_i32_106 = arith.constant 0 : i32
    %149 = vector.broadcast %c0_i32_106 : i32 to vector<64x1xi32>
    %150 = arith.cmpi slt, %146, %149 : vector<64x1xi32>
    %c0_i32_107 = arith.constant 0 : i32
    %151 = arith.cmpi slt, %144, %c0_i32_107 : i32
    %152 = vector.broadcast %151 : i1 to vector<64x1xi1>
    %153 = vector.broadcast %152 : vector<64x1xi1> to vector<64x1xi1>
    %154 = arith.xori %150, %153 : vector<64x1xi1>
    %155 = arith.andi %154, %148 : vector<64x1xi1>
    %156 = vector.broadcast %144 : i32 to vector<64x1xi32>
    %157 = arith.addi %146, %156 : vector<64x1xi32>
    %158 = arith.select %155, %157, %146 : vector<64x1xi1>, vector<64x1xi32>
    %c0_i32_108 = arith.constant 0 : i32
    %159 = vector.broadcast %c0_i32_108 : i32 to vector<64x1xi32>
    %160 = arith.cmpi sgt, %158, %159 : vector<64x1xi32>
    %c7_i32 = arith.constant 7 : i32
    %161 = vector.broadcast %c7_i32 : i32 to vector<64x1xi32>
    %162 = arith.cmpi slt, %158, %161 : vector<64x1xi32>
    %cst_109 = arith.constant 0.000000e+00 : f32
    %163 = vector.broadcast %cst_109 : f32 to vector<64x16xf32>
    %c7_110 = arith.constant 7 : index
    %c0_111 = arith.constant 0 : index
    %164 = vector.load %arg27[%c7_110, %c0_111] : memref<96x16xf32, #tpu.memory_space<vmem>>, vector<64x16xf32>
    %cst_112 = arith.constant 0.000000e+00 : f32
    %165 = vector.shape_cast %160 : vector<64x1xi1> to vector<64x1xi1>
    %166 = vector.broadcast %165 : vector<64x1xi1> to vector<64x16xi1>
    %167 = vector.broadcast %cst_112 : f32 to vector<64x16xf32>
    %168 = arith.select %166, %164, %167 : vector<64x16xi1>, vector<64x16xf32>
    %c0_113 = arith.constant 0 : index
    %c0_114 = arith.constant 0 : index
    %c0_115 = arith.constant 0 : index
    %169 = vector.load %arg8[%c0_113, %c0_114, %c0_115] : memref<9x16x16xf32, #tpu.memory_space<vmem>>, vector<1x16x16xf32>
    %170 = vector.shape_cast %169 : vector<1x16x16xf32> to vector<16x16xf32>
    %cst_116 = arith.constant dense<0.000000e+00> : vector<64x16xf32>
    %171 = tpu.matmul %168, %170, %cst_116 {dimension_numbers = #tpu.dot_dimension_numbers<[1], [0], [0], [1], [0, 0, 1, 1], [], []>} : vector<64x16xf32>, vector<16x16xf32>, vector<64x16xf32> -> vector<64x16xf32>
    %172 = arith.addf %163, %171 : vector<64x16xf32>
    %c8_117 = arith.constant 8 : index
    %c0_118 = arith.constant 0 : index
    %173 = vector.load %arg27[%c8_117, %c0_118] : memref<96x16xf32, #tpu.memory_space<vmem>>, vector<64x16xf32>
    %c1_119 = arith.constant 1 : index
    %c0_120 = arith.constant 0 : index
    %c0_121 = arith.constant 0 : index
    %174 = vector.load %arg8[%c1_119, %c0_120, %c0_121] : memref<9x16x16xf32, #tpu.memory_space<vmem>>, vector<1x16x16xf32>
    %175 = vector.shape_cast %174 : vector<1x16x16xf32> to vector<16x16xf32>
    %cst_122 = arith.constant dense<0.000000e+00> : vector<64x16xf32>
    %176 = tpu.matmul %173, %175, %cst_122 {dimension_numbers = #tpu.dot_dimension_numbers<[1], [0], [0], [1], [0, 0, 1, 1], [], []>} : vector<64x16xf32>, vector<16x16xf32>, vector<64x16xf32> -> vector<64x16xf32>
    %177 = arith.addf %172, %176 : vector<64x16xf32>
    %c9_123 = arith.constant 9 : index
    %c0_124 = arith.constant 0 : index
    %178 = vector.load %arg27[%c9_123, %c0_124] : memref<96x16xf32, #tpu.memory_space<vmem>>, vector<64x16xf32>
    %cst_125 = arith.constant 0.000000e+00 : f32
    %179 = vector.shape_cast %162 : vector<64x1xi1> to vector<64x1xi1>
    %180 = vector.broadcast %179 : vector<64x1xi1> to vector<64x16xi1>
    %181 = vector.broadcast %cst_125 : f32 to vector<64x16xf32>
    %182 = arith.select %180, %178, %181 : vector<64x16xi1>, vector<64x16xf32>
    %c2_126 = arith.constant 2 : index
    %c0_127 = arith.constant 0 : index
    %c0_128 = arith.constant 0 : index
    %183 = vector.load %arg8[%c2_126, %c0_127, %c0_128] : memref<9x16x16xf32, #tpu.memory_space<vmem>>, vector<1x16x16xf32>
    %184 = vector.shape_cast %183 : vector<1x16x16xf32> to vector<16x16xf32>
    %cst_129 = arith.constant dense<0.000000e+00> : vector<64x16xf32>
    %185 = tpu.matmul %182, %184, %cst_129 {dimension_numbers = #tpu.dot_dimension_numbers<[1], [0], [0], [1], [0, 0, 1, 1], [], []>} : vector<64x16xf32>, vector<16x16xf32>, vector<64x16xf32> -> vector<64x16xf32>
    %186 = arith.addf %177, %185 : vector<64x16xf32>
    %c15 = arith.constant 15 : index
    %c0_130 = arith.constant 0 : index
    %187 = vector.load %arg27[%c15, %c0_130] : memref<96x16xf32, #tpu.memory_space<vmem>>, vector<64x16xf32>
    %cst_131 = arith.constant 0.000000e+00 : f32
    %188 = vector.shape_cast %160 : vector<64x1xi1> to vector<64x1xi1>
    %189 = vector.broadcast %188 : vector<64x1xi1> to vector<64x16xi1>
    %190 = vector.broadcast %cst_131 : f32 to vector<64x16xf32>
    %191 = arith.select %189, %187, %190 : vector<64x16xi1>, vector<64x16xf32>
    %c3_132 = arith.constant 3 : index
    %c0_133 = arith.constant 0 : index
    %c0_134 = arith.constant 0 : index
    %192 = vector.load %arg8[%c3_132, %c0_133, %c0_134] : memref<9x16x16xf32, #tpu.memory_space<vmem>>, vector<1x16x16xf32>
    %193 = vector.shape_cast %192 : vector<1x16x16xf32> to vector<16x16xf32>
    %cst_135 = arith.constant dense<0.000000e+00> : vector<64x16xf32>
    %194 = tpu.matmul %191, %193, %cst_135 {dimension_numbers = #tpu.dot_dimension_numbers<[1], [0], [0], [1], [0, 0, 1, 1], [], []>} : vector<64x16xf32>, vector<16x16xf32>, vector<64x16xf32> -> vector<64x16xf32>
    %195 = arith.addf %186, %194 : vector<64x16xf32>
    %c16_136 = arith.constant 16 : index
    %c0_137 = arith.constant 0 : index
    %196 = vector.load %arg27[%c16_136, %c0_137] : memref<96x16xf32, #tpu.memory_space<vmem>>, vector<64x16xf32>
    %c4_138 = arith.constant 4 : index
    %c0_139 = arith.constant 0 : index
    %c0_140 = arith.constant 0 : index
    %197 = vector.load %arg8[%c4_138, %c0_139, %c0_140] : memref<9x16x16xf32, #tpu.memory_space<vmem>>, vector<1x16x16xf32>
    %198 = vector.shape_cast %197 : vector<1x16x16xf32> to vector<16x16xf32>
    %cst_141 = arith.constant dense<0.000000e+00> : vector<64x16xf32>
    %199 = tpu.matmul %196, %198, %cst_141 {dimension_numbers = #tpu.dot_dimension_numbers<[1], [0], [0], [1], [0, 0, 1, 1], [], []>} : vector<64x16xf32>, vector<16x16xf32>, vector<64x16xf32> -> vector<64x16xf32>
    %200 = arith.addf %195, %199 : vector<64x16xf32>
    %c17 = arith.constant 17 : index
    %c0_142 = arith.constant 0 : index
    %201 = vector.load %arg27[%c17, %c0_142] : memref<96x16xf32, #tpu.memory_space<vmem>>, vector<64x16xf32>
    %cst_143 = arith.constant 0.000000e+00 : f32
    %202 = vector.shape_cast %162 : vector<64x1xi1> to vector<64x1xi1>
    %203 = vector.broadcast %202 : vector<64x1xi1> to vector<64x16xi1>
    %204 = vector.broadcast %cst_143 : f32 to vector<64x16xf32>
    %205 = arith.select %203, %201, %204 : vector<64x16xi1>, vector<64x16xf32>
    %c5_144 = arith.constant 5 : index
    %c0_145 = arith.constant 0 : index
    %c0_146 = arith.constant 0 : index
    %206 = vector.load %arg8[%c5_144, %c0_145, %c0_146] : memref<9x16x16xf32, #tpu.memory_space<vmem>>, vector<1x16x16xf32>
    %207 = vector.shape_cast %206 : vector<1x16x16xf32> to vector<16x16xf32>
    %cst_147 = arith.constant dense<0.000000e+00> : vector<64x16xf32>
    %208 = tpu.matmul %205, %207, %cst_147 {dimension_numbers = #tpu.dot_dimension_numbers<[1], [0], [0], [1], [0, 0, 1, 1], [], []>} : vector<64x16xf32>, vector<16x16xf32>, vector<64x16xf32> -> vector<64x16xf32>
    %209 = arith.addf %200, %208 : vector<64x16xf32>
    %c23_148 = arith.constant 23 : index
    %c0_149 = arith.constant 0 : index
    %210 = vector.load %arg27[%c23_148, %c0_149] : memref<96x16xf32, #tpu.memory_space<vmem>>, vector<64x16xf32>
    %cst_150 = arith.constant 0.000000e+00 : f32
    %211 = vector.shape_cast %160 : vector<64x1xi1> to vector<64x1xi1>
    %212 = vector.broadcast %211 : vector<64x1xi1> to vector<64x16xi1>
    %213 = vector.broadcast %cst_150 : f32 to vector<64x16xf32>
    %214 = arith.select %212, %210, %213 : vector<64x16xi1>, vector<64x16xf32>
    %c6_151 = arith.constant 6 : index
    %c0_152 = arith.constant 0 : index
    %c0_153 = arith.constant 0 : index
    %215 = vector.load %arg8[%c6_151, %c0_152, %c0_153] : memref<9x16x16xf32, #tpu.memory_space<vmem>>, vector<1x16x16xf32>
    %216 = vector.shape_cast %215 : vector<1x16x16xf32> to vector<16x16xf32>
    %cst_154 = arith.constant dense<0.000000e+00> : vector<64x16xf32>
    %217 = tpu.matmul %214, %216, %cst_154 {dimension_numbers = #tpu.dot_dimension_numbers<[1], [0], [0], [1], [0, 0, 1, 1], [], []>} : vector<64x16xf32>, vector<16x16xf32>, vector<64x16xf32> -> vector<64x16xf32>
    %218 = arith.addf %209, %217 : vector<64x16xf32>
    %c24_155 = arith.constant 24 : index
    %c0_156 = arith.constant 0 : index
    %219 = vector.load %arg27[%c24_155, %c0_156] : memref<96x16xf32, #tpu.memory_space<vmem>>, vector<64x16xf32>
    %c7_157 = arith.constant 7 : index
    %c0_158 = arith.constant 0 : index
    %c0_159 = arith.constant 0 : index
    %220 = vector.load %arg8[%c7_157, %c0_158, %c0_159] : memref<9x16x16xf32, #tpu.memory_space<vmem>>, vector<1x16x16xf32>
    %221 = vector.shape_cast %220 : vector<1x16x16xf32> to vector<16x16xf32>
    %cst_160 = arith.constant dense<0.000000e+00> : vector<64x16xf32>
    %222 = tpu.matmul %219, %221, %cst_160 {dimension_numbers = #tpu.dot_dimension_numbers<[1], [0], [0], [1], [0, 0, 1, 1], [], []>} : vector<64x16xf32>, vector<16x16xf32>, vector<64x16xf32> -> vector<64x16xf32>
    %223 = arith.addf %218, %222 : vector<64x16xf32>
    %c25_161 = arith.constant 25 : index
    %c0_162 = arith.constant 0 : index
    %224 = vector.load %arg27[%c25_161, %c0_162] : memref<96x16xf32, #tpu.memory_space<vmem>>, vector<64x16xf32>
    %cst_163 = arith.constant 0.000000e+00 : f32
    %225 = vector.shape_cast %162 : vector<64x1xi1> to vector<64x1xi1>
    %226 = vector.broadcast %225 : vector<64x1xi1> to vector<64x16xi1>
    %227 = vector.broadcast %cst_163 : f32 to vector<64x16xf32>
    %228 = arith.select %226, %224, %227 : vector<64x16xi1>, vector<64x16xf32>
    %c8_164 = arith.constant 8 : index
    %c0_165 = arith.constant 0 : index
    %c0_166 = arith.constant 0 : index
    %229 = vector.load %arg8[%c8_164, %c0_165, %c0_166] : memref<9x16x16xf32, #tpu.memory_space<vmem>>, vector<1x16x16xf32>
    %230 = vector.shape_cast %229 : vector<1x16x16xf32> to vector<16x16xf32>
    %cst_167 = arith.constant dense<0.000000e+00> : vector<64x16xf32>
    %231 = tpu.matmul %228, %230, %cst_167 {dimension_numbers = #tpu.dot_dimension_numbers<[1], [0], [0], [1], [0, 0, 1, 1], [], []>} : vector<64x16xf32>, vector<16x16xf32>, vector<64x16xf32> -> vector<64x16xf32>
    %232 = arith.addf %223, %231 : vector<64x16xf32>
    %c0_168 = arith.constant 0 : index
    %c0_169 = arith.constant 0 : index
    %233 = vector.load %arg9[%c0_168, %c0_169] : memref<1x16xf32, #tpu.memory_space<vmem>>, vector<1x16xf32>
    %234 = vector.broadcast %233 : vector<1x16xf32> to vector<64x16xf32>
    %235 = arith.addf %232, %234 : vector<64x16xf32>
    %cst_170 = arith.constant 0.000000e+00 : f32
    %236 = vector.broadcast %cst_170 : f32 to vector<64x16xf32>
    %237 = arith.maximumf %235, %236 : vector<64x16xf32>
    %cst_171 = arith.constant 0.000000e+00 : f32
    %238 = vector.broadcast %cst_171 : f32 to vector<16x32xf32>
    %c0_172 = arith.constant 0 : index
    %c0_173 = arith.constant 0 : index
    %c0_174 = arith.constant 0 : index
    %239 = vector.load %arg11[%c0_172, %c0_173, %c0_174] : memref<4x16x64xf32, #tpu.memory_space<vmem>>, vector<1x16x64xf32>
    %240 = vector.shape_cast %239 : vector<1x16x64xf32> to vector<16x64xf32>
    %cst_175 = arith.constant dense<0.000000e+00> : vector<16x16xf32>
    %241 = tpu.matmul %240, %237, %cst_175 {dimension_numbers = #tpu.dot_dimension_numbers<[1], [0], [0], [1], [0, 0, 1, 1], [], []>} : vector<16x64xf32>, vector<64x16xf32>, vector<16x16xf32> -> vector<16x16xf32>
    %c0_176 = arith.constant 0 : index
    %c0_177 = arith.constant 0 : index
    %c0_178 = arith.constant 0 : index
    %242 = vector.load %arg10[%c0_176, %c0_177, %c0_178] : memref<4x16x32xf32, #tpu.memory_space<vmem>>, vector<1x16x32xf32>
    %243 = vector.shape_cast %242 : vector<1x16x32xf32> to vector<16x32xf32>
    %cst_179 = arith.constant dense<0.000000e+00> : vector<16x32xf32>
    %244 = tpu.matmul %241, %243, %cst_179 {dimension_numbers = #tpu.dot_dimension_numbers<[1], [0], [0], [1], [0, 0, 1, 1], [], []>} : vector<16x16xf32>, vector<16x32xf32>, vector<16x32xf32> -> vector<16x32xf32>
    %245 = arith.addf %238, %244 : vector<16x32xf32>
    %c1_180 = arith.constant 1 : index
    %c0_181 = arith.constant 0 : index
    %c0_182 = arith.constant 0 : index
    %246 = vector.load %arg11[%c1_180, %c0_181, %c0_182] : memref<4x16x64xf32, #tpu.memory_space<vmem>>, vector<1x16x64xf32>
    %247 = vector.shape_cast %246 : vector<1x16x64xf32> to vector<16x64xf32>
    %cst_183 = arith.constant dense<0.000000e+00> : vector<16x16xf32>
    %248 = tpu.matmul %247, %237, %cst_183 {dimension_numbers = #tpu.dot_dimension_numbers<[1], [0], [0], [1], [0, 0, 1, 1], [], []>} : vector<16x64xf32>, vector<64x16xf32>, vector<16x16xf32> -> vector<16x16xf32>
    %c1_184 = arith.constant 1 : index
    %c0_185 = arith.constant 0 : index
    %c0_186 = arith.constant 0 : index
    %249 = vector.load %arg10[%c1_184, %c0_185, %c0_186] : memref<4x16x32xf32, #tpu.memory_space<vmem>>, vector<1x16x32xf32>
    %250 = vector.shape_cast %249 : vector<1x16x32xf32> to vector<16x32xf32>
    %cst_187 = arith.constant dense<0.000000e+00> : vector<16x32xf32>
    %251 = tpu.matmul %248, %250, %cst_187 {dimension_numbers = #tpu.dot_dimension_numbers<[1], [0], [0], [1], [0, 0, 1, 1], [], []>} : vector<16x16xf32>, vector<16x32xf32>, vector<16x32xf32> -> vector<16x32xf32>
    %252 = arith.addf %245, %251 : vector<16x32xf32>
    %c2_188 = arith.constant 2 : index
    %c0_189 = arith.constant 0 : index
    %c0_190 = arith.constant 0 : index
    %253 = vector.load %arg11[%c2_188, %c0_189, %c0_190] : memref<4x16x64xf32, #tpu.memory_space<vmem>>, vector<1x16x64xf32>
    %254 = vector.shape_cast %253 : vector<1x16x64xf32> to vector<16x64xf32>
    %cst_191 = arith.constant dense<0.000000e+00> : vector<16x16xf32>
    %255 = tpu.matmul %254, %237, %cst_191 {dimension_numbers = #tpu.dot_dimension_numbers<[1], [0], [0], [1], [0, 0, 1, 1], [], []>} : vector<16x64xf32>, vector<64x16xf32>, vector<16x16xf32> -> vector<16x16xf32>
    %c2_192 = arith.constant 2 : index
    %c0_193 = arith.constant 0 : index
    %c0_194 = arith.constant 0 : index
    %256 = vector.load %arg10[%c2_192, %c0_193, %c0_194] : memref<4x16x32xf32, #tpu.memory_space<vmem>>, vector<1x16x32xf32>
    %257 = vector.shape_cast %256 : vector<1x16x32xf32> to vector<16x32xf32>
    %cst_195 = arith.constant dense<0.000000e+00> : vector<16x32xf32>
    %258 = tpu.matmul %255, %257, %cst_195 {dimension_numbers = #tpu.dot_dimension_numbers<[1], [0], [0], [1], [0, 0, 1, 1], [], []>} : vector<16x16xf32>, vector<16x32xf32>, vector<16x32xf32> -> vector<16x32xf32>
    %259 = arith.addf %252, %258 : vector<16x32xf32>
    %c3_196 = arith.constant 3 : index
    %c0_197 = arith.constant 0 : index
    %c0_198 = arith.constant 0 : index
    %260 = vector.load %arg11[%c3_196, %c0_197, %c0_198] : memref<4x16x64xf32, #tpu.memory_space<vmem>>, vector<1x16x64xf32>
    %261 = vector.shape_cast %260 : vector<1x16x64xf32> to vector<16x64xf32>
    %cst_199 = arith.constant dense<0.000000e+00> : vector<16x16xf32>
    %262 = tpu.matmul %261, %237, %cst_199 {dimension_numbers = #tpu.dot_dimension_numbers<[1], [0], [0], [1], [0, 0, 1, 1], [], []>} : vector<16x64xf32>, vector<64x16xf32>, vector<16x16xf32> -> vector<16x16xf32>
    %c3_200 = arith.constant 3 : index
    %c0_201 = arith.constant 0 : index
    %c0_202 = arith.constant 0 : index
    %263 = vector.load %arg10[%c3_200, %c0_201, %c0_202] : memref<4x16x32xf32, #tpu.memory_space<vmem>>, vector<1x16x32xf32>
    %264 = vector.shape_cast %263 : vector<1x16x32xf32> to vector<16x32xf32>
    %cst_203 = arith.constant dense<0.000000e+00> : vector<16x32xf32>
    %265 = tpu.matmul %262, %264, %cst_203 {dimension_numbers = #tpu.dot_dimension_numbers<[1], [0], [0], [1], [0, 0, 1, 1], [], []>} : vector<16x16xf32>, vector<16x32xf32>, vector<16x32xf32> -> vector<16x32xf32>
    %266 = arith.addf %259, %265 : vector<16x32xf32>
    %c0_204 = arith.constant 0 : index
    %c0_205 = arith.constant 0 : index
    %267 = vector.load %arg12[%c0_204, %c0_205] : memref<1x32xf32, #tpu.memory_space<vmem>>, vector<1x32xf32>
    %268 = vector.broadcast %267 : vector<1x32xf32> to vector<16x32xf32>
    %269 = arith.addf %266, %268 : vector<16x32xf32>
    %cst_206 = arith.constant 0.000000e+00 : f32
    %270 = vector.broadcast %cst_206 : f32 to vector<16x32xf32>
    %271 = arith.maximumf %269, %270 : vector<16x32xf32>
    %cst_207 = arith.constant 0.000000e+00 : f32
    %272 = vector.broadcast %cst_207 : f32 to vector<8x32xf32>
    %c0_208 = arith.constant 0 : index
    %c0_209 = arith.constant 0 : index
    %273 = vector.load %arg28[%c0_208, %c0_209] : memref<32x32xf32, #tpu.memory_space<vmem>>, vector<8x32xf32>
    tpu.vector_store %arg28[%c0_208, %c0_209], %272 {strides = array<i32>} : memref<32x32xf32, #tpu.memory_space<vmem>>, vector<8x32xf32>,
    %cst_210 = arith.constant 0.000000e+00 : f32
    %274 = vector.broadcast %cst_210 : f32 to vector<8x32xf32>
    %c24_211 = arith.constant 24 : index
    %c0_212 = arith.constant 0 : index
    %275 = vector.load %arg28[%c24_211, %c0_212] : memref<32x32xf32, #tpu.memory_space<vmem>>, vector<8x32xf32>
    tpu.vector_store %arg28[%c24_211, %c0_212], %274 {strides = array<i32>} : memref<32x32xf32, #tpu.memory_space<vmem>>, vector<8x32xf32>,
    %c8_213 = arith.constant 8 : index
    %c0_214 = arith.constant 0 : index
    %276 = vector.load %arg28[%c8_213, %c0_214] : memref<32x32xf32, #tpu.memory_space<vmem>>, vector<16x32xf32>
    tpu.vector_store %arg28[%c8_213, %c0_214], %271 {strides = array<i32>} : memref<32x32xf32, #tpu.memory_space<vmem>>, vector<16x32xf32>,
    %277 = tpu.iota {dimensions = array<i32: 0>} : vector<16x1xi32>
    %c4_i32 = arith.constant 4 : i32
    %c0_i32_215 = arith.constant 0 : i32
    %278 = arith.cmpi eq, %c4_i32, %c0_i32_215 : i32
    %c1_i32_216 = arith.constant 1 : i32
    %279 = arith.select %278, %c1_i32_216, %c4_i32 : i32
    %280 = vector.broadcast %279 : i32 to vector<16x1xi32>
    %281 = arith.remsi %277, %280 : vector<16x1xi32>
    %c0_i32_217 = arith.constant 0 : i32
    %282 = vector.broadcast %c0_i32_217 : i32 to vector<16x1xi32>
    %283 = arith.cmpi ne, %281, %282 : vector<16x1xi32>
    %c0_i32_218 = arith.constant 0 : i32
    %284 = vector.broadcast %c0_i32_218 : i32 to vector<16x1xi32>
    %285 = arith.cmpi slt, %281, %284 : vector<16x1xi32>
    %c0_i32_219 = arith.constant 0 : i32
    %286 = arith.cmpi slt, %279, %c0_i32_219 : i32
    %287 = vector.broadcast %286 : i1 to vector<16x1xi1>
    %288 = vector.broadcast %287 : vector<16x1xi1> to vector<16x1xi1>
    %289 = arith.xori %285, %288 : vector<16x1xi1>
    %290 = arith.andi %289, %283 : vector<16x1xi1>
    %291 = vector.broadcast %279 : i32 to vector<16x1xi32>
    %292 = arith.addi %281, %291 : vector<16x1xi32>
    %293 = arith.select %290, %292, %281 : vector<16x1xi1>, vector<16x1xi32>
    %c0_i32_220 = arith.constant 0 : i32
    %294 = vector.broadcast %c0_i32_220 : i32 to vector<16x1xi32>
    %295 = arith.cmpi sgt, %293, %294 : vector<16x1xi32>
    %c3_i32 = arith.constant 3 : i32
    %296 = vector.broadcast %c3_i32 : i32 to vector<16x1xi32>
    %297 = arith.cmpi slt, %293, %296 : vector<16x1xi32>
    %cst_221 = arith.constant 0.000000e+00 : f32
    %298 = vector.broadcast %cst_221 : f32 to vector<16x32xf32>
    %c3_222 = arith.constant 3 : index
    %c0_223 = arith.constant 0 : index
    %299 = vector.load %arg28[%c3_222, %c0_223] : memref<32x32xf32, #tpu.memory_space<vmem>>, vector<16x32xf32>
    %cst_224 = arith.constant 0.000000e+00 : f32
    %300 = vector.shape_cast %295 : vector<16x1xi1> to vector<16x1xi1>
    %301 = vector.broadcast %300 : vector<16x1xi1> to vector<16x32xi1>
    %302 = vector.broadcast %cst_224 : f32 to vector<16x32xf32>
    %303 = arith.select %301, %299, %302 : vector<16x32xi1>, vector<16x32xf32>
    %c0_225 = arith.constant 0 : index
    %c0_226 = arith.constant 0 : index
    %c0_227 = arith.constant 0 : index
    %304 = vector.load %arg13[%c0_225, %c0_226, %c0_227] : memref<9x32x32xf32, #tpu.memory_space<vmem>>, vector<1x32x32xf32>
    %305 = vector.shape_cast %304 : vector<1x32x32xf32> to vector<32x32xf32>
    %cst_228 = arith.constant dense<0.000000e+00> : vector<16x32xf32>
    %306 = tpu.matmul %303, %305, %cst_228 {dimension_numbers = #tpu.dot_dimension_numbers<[1], [0], [0], [1], [0, 0, 1, 1], [], []>} : vector<16x32xf32>, vector<32x32xf32>, vector<16x32xf32> -> vector<16x32xf32>
    %307 = arith.addf %298, %306 : vector<16x32xf32>
    %c4_229 = arith.constant 4 : index
    %c0_230 = arith.constant 0 : index
    %308 = vector.load %arg28[%c4_229, %c0_230] : memref<32x32xf32, #tpu.memory_space<vmem>>, vector<16x32xf32>
    %c1_231 = arith.constant 1 : index
    %c0_232 = arith.constant 0 : index
    %c0_233 = arith.constant 0 : index
    %309 = vector.load %arg13[%c1_231, %c0_232, %c0_233] : memref<9x32x32xf32, #tpu.memory_space<vmem>>, vector<1x32x32xf32>
    %310 = vector.shape_cast %309 : vector<1x32x32xf32> to vector<32x32xf32>
    %cst_234 = arith.constant dense<0.000000e+00> : vector<16x32xf32>
    %311 = tpu.matmul %308, %310, %cst_234 {dimension_numbers = #tpu.dot_dimension_numbers<[1], [0], [0], [1], [0, 0, 1, 1], [], []>} : vector<16x32xf32>, vector<32x32xf32>, vector<16x32xf32> -> vector<16x32xf32>
    %312 = arith.addf %307, %311 : vector<16x32xf32>
    %c5_235 = arith.constant 5 : index
    %c0_236 = arith.constant 0 : index
    %313 = vector.load %arg28[%c5_235, %c0_236] : memref<32x32xf32, #tpu.memory_space<vmem>>, vector<16x32xf32>
    %cst_237 = arith.constant 0.000000e+00 : f32
    %314 = vector.shape_cast %297 : vector<16x1xi1> to vector<16x1xi1>
    %315 = vector.broadcast %314 : vector<16x1xi1> to vector<16x32xi1>
    %316 = vector.broadcast %cst_237 : f32 to vector<16x32xf32>
    %317 = arith.select %315, %313, %316 : vector<16x32xi1>, vector<16x32xf32>
    %c2_238 = arith.constant 2 : index
    %c0_239 = arith.constant 0 : index
    %c0_240 = arith.constant 0 : index
    %318 = vector.load %arg13[%c2_238, %c0_239, %c0_240] : memref<9x32x32xf32, #tpu.memory_space<vmem>>, vector<1x32x32xf32>
    %319 = vector.shape_cast %318 : vector<1x32x32xf32> to vector<32x32xf32>
    %cst_241 = arith.constant dense<0.000000e+00> : vector<16x32xf32>
    %320 = tpu.matmul %317, %319, %cst_241 {dimension_numbers = #tpu.dot_dimension_numbers<[1], [0], [0], [1], [0, 0, 1, 1], [], []>} : vector<16x32xf32>, vector<32x32xf32>, vector<16x32xf32> -> vector<16x32xf32>
    %321 = arith.addf %312, %320 : vector<16x32xf32>
    %c7_242 = arith.constant 7 : index
    %c0_243 = arith.constant 0 : index
    %322 = vector.load %arg28[%c7_242, %c0_243] : memref<32x32xf32, #tpu.memory_space<vmem>>, vector<16x32xf32>
    %cst_244 = arith.constant 0.000000e+00 : f32
    %323 = vector.shape_cast %295 : vector<16x1xi1> to vector<16x1xi1>
    %324 = vector.broadcast %323 : vector<16x1xi1> to vector<16x32xi1>
    %325 = vector.broadcast %cst_244 : f32 to vector<16x32xf32>
    %326 = arith.select %324, %322, %325 : vector<16x32xi1>, vector<16x32xf32>
    %c3_245 = arith.constant 3 : index
    %c0_246 = arith.constant 0 : index
    %c0_247 = arith.constant 0 : index
    %327 = vector.load %arg13[%c3_245, %c0_246, %c0_247] : memref<9x32x32xf32, #tpu.memory_space<vmem>>, vector<1x32x32xf32>
    %328 = vector.shape_cast %327 : vector<1x32x32xf32> to vector<32x32xf32>
    %cst_248 = arith.constant dense<0.000000e+00> : vector<16x32xf32>
    %329 = tpu.matmul %326, %328, %cst_248 {dimension_numbers = #tpu.dot_dimension_numbers<[1], [0], [0], [1], [0, 0, 1, 1], [], []>} : vector<16x32xf32>, vector<32x32xf32>, vector<16x32xf32> -> vector<16x32xf32>
    %330 = arith.addf %321, %329 : vector<16x32xf32>
    %c8_249 = arith.constant 8 : index
    %c0_250 = arith.constant 0 : index
    %331 = vector.load %arg28[%c8_249, %c0_250] : memref<32x32xf32, #tpu.memory_space<vmem>>, vector<16x32xf32>
    %c4_251 = arith.constant 4 : index
    %c0_252 = arith.constant 0 : index
    %c0_253 = arith.constant 0 : index
    %332 = vector.load %arg13[%c4_251, %c0_252, %c0_253] : memref<9x32x32xf32, #tpu.memory_space<vmem>>, vector<1x32x32xf32>
    %333 = vector.shape_cast %332 : vector<1x32x32xf32> to vector<32x32xf32>
    %cst_254 = arith.constant dense<0.000000e+00> : vector<16x32xf32>
    %334 = tpu.matmul %331, %333, %cst_254 {dimension_numbers = #tpu.dot_dimension_numbers<[1], [0], [0], [1], [0, 0, 1, 1], [], []>} : vector<16x32xf32>, vector<32x32xf32>, vector<16x32xf32> -> vector<16x32xf32>
    %335 = arith.addf %330, %334 : vector<16x32xf32>
    %c9_255 = arith.constant 9 : index
    %c0_256 = arith.constant 0 : index
    %336 = vector.load %arg28[%c9_255, %c0_256] : memref<32x32xf32, #tpu.memory_space<vmem>>, vector<16x32xf32>
    %cst_257 = arith.constant 0.000000e+00 : f32
    %337 = vector.shape_cast %297 : vector<16x1xi1> to vector<16x1xi1>
    %338 = vector.broadcast %337 : vector<16x1xi1> to vector<16x32xi1>
    %339 = vector.broadcast %cst_257 : f32 to vector<16x32xf32>
    %340 = arith.select %338, %336, %339 : vector<16x32xi1>, vector<16x32xf32>
    %c5_258 = arith.constant 5 : index
    %c0_259 = arith.constant 0 : index
    %c0_260 = arith.constant 0 : index
    %341 = vector.load %arg13[%c5_258, %c0_259, %c0_260] : memref<9x32x32xf32, #tpu.memory_space<vmem>>, vector<1x32x32xf32>
    %342 = vector.shape_cast %341 : vector<1x32x32xf32> to vector<32x32xf32>
    %cst_261 = arith.constant dense<0.000000e+00> : vector<16x32xf32>
    %343 = tpu.matmul %340, %342, %cst_261 {dimension_numbers = #tpu.dot_dimension_numbers<[1], [0], [0], [1], [0, 0, 1, 1], [], []>} : vector<16x32xf32>, vector<32x32xf32>, vector<16x32xf32> -> vector<16x32xf32>
    %344 = arith.addf %335, %343 : vector<16x32xf32>
    %c11 = arith.constant 11 : index
    %c0_262 = arith.constant 0 : index
    %345 = vector.load %arg28[%c11, %c0_262] : memref<32x32xf32, #tpu.memory_space<vmem>>, vector<16x32xf32>
    %cst_263 = arith.constant 0.000000e+00 : f32
    %346 = vector.shape_cast %295 : vector<16x1xi1> to vector<16x1xi1>
    %347 = vector.broadcast %346 : vector<16x1xi1> to vector<16x32xi1>
    %348 = vector.broadcast %cst_263 : f32 to vector<16x32xf32>
    %349 = arith.select %347, %345, %348 : vector<16x32xi1>, vector<16x32xf32>
    %c6_264 = arith.constant 6 : index
    %c0_265 = arith.constant 0 : index
    %c0_266 = arith.constant 0 : index
    %350 = vector.load %arg13[%c6_264, %c0_265, %c0_266] : memref<9x32x32xf32, #tpu.memory_space<vmem>>, vector<1x32x32xf32>
    %351 = vector.shape_cast %350 : vector<1x32x32xf32> to vector<32x32xf32>
    %cst_267 = arith.constant dense<0.000000e+00> : vector<16x32xf32>
    %352 = tpu.matmul %349, %351, %cst_267 {dimension_numbers = #tpu.dot_dimension_numbers<[1], [0], [0], [1], [0, 0, 1, 1], [], []>} : vector<16x32xf32>, vector<32x32xf32>, vector<16x32xf32> -> vector<16x32xf32>
    %353 = arith.addf %344, %352 : vector<16x32xf32>
    %c12 = arith.constant 12 : index
    %c0_268 = arith.constant 0 : index
    %354 = vector.load %arg28[%c12, %c0_268] : memref<32x32xf32, #tpu.memory_space<vmem>>, vector<16x32xf32>
    %c7_269 = arith.constant 7 : index
    %c0_270 = arith.constant 0 : index
    %c0_271 = arith.constant 0 : index
    %355 = vector.load %arg13[%c7_269, %c0_270, %c0_271] : memref<9x32x32xf32, #tpu.memory_space<vmem>>, vector<1x32x32xf32>
    %356 = vector.shape_cast %355 : vector<1x32x32xf32> to vector<32x32xf32>
    %cst_272 = arith.constant dense<0.000000e+00> : vector<16x32xf32>
    %357 = tpu.matmul %354, %356, %cst_272 {dimension_numbers = #tpu.dot_dimension_numbers<[1], [0], [0], [1], [0, 0, 1, 1], [], []>} : vector<16x32xf32>, vector<32x32xf32>, vector<16x32xf32> -> vector<16x32xf32>
    %358 = arith.addf %353, %357 : vector<16x32xf32>
    %c13 = arith.constant 13 : index
    %c0_273 = arith.constant 0 : index
    %359 = vector.load %arg28[%c13, %c0_273] : memref<32x32xf32, #tpu.memory_space<vmem>>, vector<16x32xf32>
    %cst_274 = arith.constant 0.000000e+00 : f32
    %360 = vector.shape_cast %297 : vector<16x1xi1> to vector<16x1xi1>
    %361 = vector.broadcast %360 : vector<16x1xi1> to vector<16x32xi1>
    %362 = vector.broadcast %cst_274 : f32 to vector<16x32xf32>
    %363 = arith.select %361, %359, %362 : vector<16x32xi1>, vector<16x32xf32>
    %c8_275 = arith.constant 8 : index
    %c0_276 = arith.constant 0 : index
    %c0_277 = arith.constant 0 : index
    %364 = vector.load %arg13[%c8_275, %c0_276, %c0_277] : memref<9x32x32xf32, #tpu.memory_space<vmem>>, vector<1x32x32xf32>
    %365 = vector.shape_cast %364 : vector<1x32x32xf32> to vector<32x32xf32>
    %cst_278 = arith.constant dense<0.000000e+00> : vector<16x32xf32>
    %366 = tpu.matmul %363, %365, %cst_278 {dimension_numbers = #tpu.dot_dimension_numbers<[1], [0], [0], [1], [0, 0, 1, 1], [], []>} : vector<16x32xf32>, vector<32x32xf32>, vector<16x32xf32> -> vector<16x32xf32>
    %367 = arith.addf %358, %366 : vector<16x32xf32>
    %c0_279 = arith.constant 0 : index
    %c0_280 = arith.constant 0 : index
    %368 = vector.load %arg14[%c0_279, %c0_280] : memref<1x32xf32, #tpu.memory_space<vmem>>, vector<1x32xf32>
    %369 = vector.broadcast %368 : vector<1x32xf32> to vector<16x32xf32>
    %370 = arith.addf %367, %369 : vector<16x32xf32>
    %cst_281 = arith.constant 0.000000e+00 : f32
    %371 = vector.broadcast %cst_281 : f32 to vector<16x32xf32>
    %372 = arith.maximumf %370, %371 : vector<16x32xf32>
    %cst_282 = arith.constant 0.000000e+00 : f32
    %373 = vector.broadcast %cst_282 : f32 to vector<4x64xf32>
    %c0_283 = arith.constant 0 : index
    %c0_284 = arith.constant 0 : index
    %c0_285 = arith.constant 0 : index
    %374 = vector.load %arg16[%c0_283, %c0_284, %c0_285] : memref<4x4x16xf32, #tpu.memory_space<vmem>>, vector<1x4x16xf32>
    %375 = vector.shape_cast %374 : vector<1x4x16xf32> to vector<4x16xf32>
    %cst_286 = arith.constant dense<0.000000e+00> : vector<4x32xf32>
    %376 = tpu.matmul %375, %372, %cst_286 {dimension_numbers = #tpu.dot_dimension_numbers<[1], [0], [0], [1], [0, 0, 1, 1], [], []>} : vector<4x16xf32>, vector<16x32xf32>, vector<4x32xf32> -> vector<4x32xf32>
    %c0_287 = arith.constant 0 : index
    %c0_288 = arith.constant 0 : index
    %c0_289 = arith.constant 0 : index
    %377 = vector.load %arg15[%c0_287, %c0_288, %c0_289] : memref<4x32x64xf32, #tpu.memory_space<vmem>>, vector<1x32x64xf32>
    %378 = vector.shape_cast %377 : vector<1x32x64xf32> to vector<32x64xf32>
    %cst_290 = arith.constant dense<0.000000e+00> : vector<4x64xf32>
    %379 = tpu.matmul %376, %378, %cst_290 {dimension_numbers = #tpu.dot_dimension_numbers<[1], [0], [0], [1], [0, 0, 1, 1], [], []>} : vector<4x32xf32>, vector<32x64xf32>, vector<4x64xf32> -> vector<4x64xf32>
    %380 = arith.addf %373, %379 : vector<4x64xf32>
    %c1_291 = arith.constant 1 : index
    %c0_292 = arith.constant 0 : index
    %c0_293 = arith.constant 0 : index
    %381 = vector.load %arg16[%c1_291, %c0_292, %c0_293] : memref<4x4x16xf32, #tpu.memory_space<vmem>>, vector<1x4x16xf32>
    %382 = vector.shape_cast %381 : vector<1x4x16xf32> to vector<4x16xf32>
    %cst_294 = arith.constant dense<0.000000e+00> : vector<4x32xf32>
    %383 = tpu.matmul %382, %372, %cst_294 {dimension_numbers = #tpu.dot_dimension_numbers<[1], [0], [0], [1], [0, 0, 1, 1], [], []>} : vector<4x16xf32>, vector<16x32xf32>, vector<4x32xf32> -> vector<4x32xf32>
    %c1_295 = arith.constant 1 : index
    %c0_296 = arith.constant 0 : index
    %c0_297 = arith.constant 0 : index
    %384 = vector.load %arg15[%c1_295, %c0_296, %c0_297] : memref<4x32x64xf32, #tpu.memory_space<vmem>>, vector<1x32x64xf32>
    %385 = vector.shape_cast %384 : vector<1x32x64xf32> to vector<32x64xf32>
    %cst_298 = arith.constant dense<0.000000e+00> : vector<4x64xf32>
    %386 = tpu.matmul %383, %385, %cst_298 {dimension_numbers = #tpu.dot_dimension_numbers<[1], [0], [0], [1], [0, 0, 1, 1], [], []>} : vector<4x32xf32>, vector<32x64xf32>, vector<4x64xf32> -> vector<4x64xf32>
    %387 = arith.addf %380, %386 : vector<4x64xf32>
    %c2_299 = arith.constant 2 : index
    %c0_300 = arith.constant 0 : index
    %c0_301 = arith.constant 0 : index
    %388 = vector.load %arg16[%c2_299, %c0_300, %c0_301] : memref<4x4x16xf32, #tpu.memory_space<vmem>>, vector<1x4x16xf32>
    %389 = vector.shape_cast %388 : vector<1x4x16xf32> to vector<4x16xf32>
    %cst_302 = arith.constant dense<0.000000e+00> : vector<4x32xf32>
    %390 = tpu.matmul %389, %372, %cst_302 {dimension_numbers = #tpu.dot_dimension_numbers<[1], [0], [0], [1], [0, 0, 1, 1], [], []>} : vector<4x16xf32>, vector<16x32xf32>, vector<4x32xf32> -> vector<4x32xf32>
    %c2_303 = arith.constant 2 : index
    %c0_304 = arith.constant 0 : index
    %c0_305 = arith.constant 0 : index
    %391 = vector.load %arg15[%c2_303, %c0_304, %c0_305] : memref<4x32x64xf32, #tpu.memory_space<vmem>>, vector<1x32x64xf32>
    %392 = vector.shape_cast %391 : vector<1x32x64xf32> to vector<32x64xf32>
    %cst_306 = arith.constant dense<0.000000e+00> : vector<4x64xf32>
    %393 = tpu.matmul %390, %392, %cst_306 {dimension_numbers = #tpu.dot_dimension_numbers<[1], [0], [0], [1], [0, 0, 1, 1], [], []>} : vector<4x32xf32>, vector<32x64xf32>, vector<4x64xf32> -> vector<4x64xf32>
    %394 = arith.addf %387, %393 : vector<4x64xf32>
    %c3_307 = arith.constant 3 : index
    %c0_308 = arith.constant 0 : index
    %c0_309 = arith.constant 0 : index
    %395 = vector.load %arg16[%c3_307, %c0_308, %c0_309] : memref<4x4x16xf32, #tpu.memory_space<vmem>>, vector<1x4x16xf32>
    %396 = vector.shape_cast %395 : vector<1x4x16xf32> to vector<4x16xf32>
    %cst_310 = arith.constant dense<0.000000e+00> : vector<4x32xf32>
    %397 = tpu.matmul %396, %372, %cst_310 {dimension_numbers = #tpu.dot_dimension_numbers<[1], [0], [0], [1], [0, 0, 1, 1], [], []>} : vector<4x16xf32>, vector<16x32xf32>, vector<4x32xf32> -> vector<4x32xf32>
    %c3_311 = arith.constant 3 : index
    %c0_312 = arith.constant 0 : index
    %c0_313 = arith.constant 0 : index
    %398 = vector.load %arg15[%c3_311, %c0_312, %c0_313] : memref<4x32x64xf32, #tpu.memory_space<vmem>>, vector<1x32x64xf32>
    %399 = vector.shape_cast %398 : vector<1x32x64xf32> to vector<32x64xf32>
    %cst_314 = arith.constant dense<0.000000e+00> : vector<4x64xf32>
    %400 = tpu.matmul %397, %399, %cst_314 {dimension_numbers = #tpu.dot_dimension_numbers<[1], [0], [0], [1], [0, 0, 1, 1], [], []>} : vector<4x32xf32>, vector<32x64xf32>, vector<4x64xf32> -> vector<4x64xf32>
    %401 = arith.addf %394, %400 : vector<4x64xf32>
    %c0_315 = arith.constant 0 : index
    %c0_316 = arith.constant 0 : index
    %402 = vector.load %arg17[%c0_315, %c0_316] : memref<1x64xf32, #tpu.memory_space<vmem>>, vector<1x64xf32>
    %403 = vector.broadcast %402 : vector<1x64xf32> to vector<4x64xf32>
    %404 = arith.addf %401, %403 : vector<4x64xf32>
    %cst_317 = arith.constant 0.000000e+00 : f32
    %405 = vector.broadcast %cst_317 : f32 to vector<4x64xf32>
    %406 = arith.maximumf %404, %405 : vector<4x64xf32>
    %c0_318 = arith.constant 0 : index
    %c0_319 = arith.constant 0 : index
    %407 = vector.load %arg20[%c0_318, %c0_319] : memref<1x128xf32, #tpu.memory_space<vmem>>, vector<1x128xf32>
    %c0_320 = arith.constant 0 : index
    %c0_321 = arith.constant 0 : index
    %c0_322 = arith.constant 0 : index
    %408 = vector.load %arg2[%c0_320, %c0_321, %c0_322] : memref<1x1x8xf32, #tpu.memory_space<vmem>>, vector<1x1x8xf32>
    %409 = vector.shape_cast %408 : vector<1x1x8xf32> to vector<1x8xf32>
    %c0_323 = arith.constant 0 : index
    %c0_324 = arith.constant 0 : index
    %410 = vector.load %arg19[%c0_323, %c0_324] : memref<8x128xf32, #tpu.memory_space<vmem>>, vector<8x128xf32>
    %cst_325 = arith.constant dense<0.000000e+00> : vector<1x128xf32>
    %411 = tpu.matmul %409, %410, %cst_325 {dimension_numbers = #tpu.dot_dimension_numbers<[1], [0], [0], [1], [0, 0, 1, 1], [], []>} : vector<1x8xf32>, vector<8x128xf32>, vector<1x128xf32> -> vector<1x128xf32>
    %412 = arith.addf %407, %411 : vector<1x128xf32>
    %413 = vector.extract_strided_slice %406 {offsets = [0, 0], sizes = [1, 64], strides = [1, 1]} : vector<4x64xf32> to vector<1x64xf32>
    %c0_326 = arith.constant 0 : index
    %c0_327 = arith.constant 0 : index
    %414 = vector.load %arg18[%c0_326, %c0_327] : memref<256x128xf32, #tpu.memory_space<vmem>>, vector<64x128xf32>
    %cst_328 = arith.constant dense<0.000000e+00> : vector<1x128xf32>
    %415 = tpu.matmul %413, %414, %cst_328 {dimension_numbers = #tpu.dot_dimension_numbers<[1], [0], [0], [1], [0, 0, 1, 1], [], []>} : vector<1x64xf32>, vector<64x128xf32>, vector<1x128xf32> -> vector<1x128xf32>
    %416 = arith.addf %412, %415 : vector<1x128xf32>
    %417 = vector.extract_strided_slice %406 {offsets = [1, 0], sizes = [1, 64], strides = [1, 1]} : vector<4x64xf32> to vector<1x64xf32>
    %c64 = arith.constant 64 : index
    %c0_329 = arith.constant 0 : index
    %418 = vector.load %arg18[%c64, %c0_329] : memref<256x128xf32, #tpu.memory_space<vmem>>, vector<64x128xf32>
    %cst_330 = arith.constant dense<0.000000e+00> : vector<1x128xf32>
    %419 = tpu.matmul %417, %418, %cst_330 {dimension_numbers = #tpu.dot_dimension_numbers<[1], [0], [0], [1], [0, 0, 1, 1], [], []>} : vector<1x64xf32>, vector<64x128xf32>, vector<1x128xf32> -> vector<1x128xf32>
    %420 = arith.addf %416, %419 : vector<1x128xf32>
    %421 = vector.extract_strided_slice %406 {offsets = [2, 0], sizes = [1, 64], strides = [1, 1]} : vector<4x64xf32> to vector<1x64xf32>
    %c128 = arith.constant 128 : index
    %c0_331 = arith.constant 0 : index
    %422 = vector.load %arg18[%c128, %c0_331] : memref<256x128xf32, #tpu.memory_space<vmem>>, vector<64x128xf32>
    %cst_332 = arith.constant dense<0.000000e+00> : vector<1x128xf32>
    %423 = tpu.matmul %421, %422, %cst_332 {dimension_numbers = #tpu.dot_dimension_numbers<[1], [0], [0], [1], [0, 0, 1, 1], [], []>} : vector<1x64xf32>, vector<64x128xf32>, vector<1x128xf32> -> vector<1x128xf32>
    %424 = arith.addf %420, %423 : vector<1x128xf32>
    %425 = vector.extract_strided_slice %406 {offsets = [3, 0], sizes = [1, 64], strides = [1, 1]} : vector<4x64xf32> to vector<1x64xf32>
    %c192 = arith.constant 192 : index
    %c0_333 = arith.constant 0 : index
    %426 = vector.load %arg18[%c192, %c0_333] : memref<256x128xf32, #tpu.memory_space<vmem>>, vector<64x128xf32>
    %cst_334 = arith.constant dense<0.000000e+00> : vector<1x128xf32>
    %427 = tpu.matmul %425, %426, %cst_334 {dimension_numbers = #tpu.dot_dimension_numbers<[1], [0], [0], [1], [0, 0, 1, 1], [], []>} : vector<1x64xf32>, vector<64x128xf32>, vector<1x128xf32> -> vector<1x128xf32>
    %428 = arith.addf %424, %427 : vector<1x128xf32>
    %cst_335 = arith.constant 0.000000e+00 : f32
    %429 = vector.broadcast %cst_335 : f32 to vector<1x128xf32>
    %430 = arith.maximumf %428, %429 : vector<1x128xf32>
    %c0_336 = arith.constant 0 : index
    %c0_337 = arith.constant 0 : index
    %431 = vector.load %arg21[%c0_336, %c0_337] : memref<128x128xf32, #tpu.memory_space<vmem>>, vector<128x128xf32>
    %cst_338 = arith.constant dense<0.000000e+00> : vector<1x128xf32>
    %432 = tpu.matmul %430, %431, %cst_338 {dimension_numbers = #tpu.dot_dimension_numbers<[1], [0], [0], [1], [0, 0, 1, 1], [], []>} : vector<1x128xf32>, vector<128x128xf32>, vector<1x128xf32> -> vector<1x128xf32>
    %c0_339 = arith.constant 0 : index
    %c0_340 = arith.constant 0 : index
    %433 = vector.load %arg22[%c0_339, %c0_340] : memref<1x128xf32, #tpu.memory_space<vmem>>, vector<1x128xf32>
    %434 = arith.addf %432, %433 : vector<1x128xf32>
    %cst_341 = arith.constant 0.000000e+00 : f32
    %435 = vector.broadcast %cst_341 : f32 to vector<1x128xf32>
    %436 = arith.maximumf %434, %435 : vector<1x128xf32>
    %c0_342 = arith.constant 0 : index
    %c0_343 = arith.constant 0 : index
    %437 = vector.load %arg23[%c0_342, %c0_343] : memref<128x128xf32, #tpu.memory_space<vmem>>, vector<128x128xf32>
    %cst_344 = arith.constant dense<0.000000e+00> : vector<1x128xf32>
    %438 = tpu.matmul %436, %437, %cst_344 {dimension_numbers = #tpu.dot_dimension_numbers<[1], [0], [0], [1], [0, 0, 1, 1], [], []>} : vector<1x128xf32>, vector<128x128xf32>, vector<1x128xf32> -> vector<1x128xf32>
    %c0_345 = arith.constant 0 : index
    %c0_346 = arith.constant 0 : index
    %439 = vector.load %arg24[%c0_345, %c0_346] : memref<1x128xf32, #tpu.memory_space<vmem>>, vector<1x128xf32>
    %440 = arith.addf %438, %439 : vector<1x128xf32>
    %441 = tpu.iota {dimensions = array<i32: 1>} : vector<1x128xi32>
    %c6_i32 = arith.constant 6 : i32
    %442 = vector.broadcast %c6_i32 : i32 to vector<1x128xi32>
    %443 = arith.cmpi slt, %441, %442 : vector<1x128xi32>
    %cst_347 = arith.constant -1.000000e+30 : f32
    %444 = vector.broadcast %cst_347 : f32 to vector<1x128xf32>
    %445 = arith.select %443, %440, %444 : vector<1x128xi1>, vector<1x128xf32>
    %cst_348 = arith.constant dense<0xFF800000> : vector<1xf32>
    %446 = vector.multi_reduction <maximumf>, %445, %cst_348 [1] : vector<1x128xf32> to vector<1xf32>
    %447 = vector.shape_cast %446 : vector<1xf32> to vector<1x1xf32>
    %448 = vector.broadcast %447 : vector<1x1xf32> to vector<1x128xf32>
    %449 = arith.subf %445, %448 : vector<1x128xf32>
    %450 = math.exp %449 : vector<1x128xf32>
    %cst_349 = arith.constant dense<0.000000e+00> : vector<1xf32>
    %451 = vector.multi_reduction <add>, %450, %cst_349 [1] : vector<1x128xf32> to vector<1xf32>
    %452 = vector.shape_cast %451 : vector<1xf32> to vector<1x1xf32>
    %453 = tpu.reciprocal %452 {approx = true} : vector<1x1xf32> -> vector<1x1xf32>
    %454 = vector.broadcast %453 : vector<1x1xf32> to vector<1x128xf32>
    %455 = arith.mulf %450, %454 : vector<1x128xf32>
    %c6_i32_350 = arith.constant 6 : i32
    %456 = vector.broadcast %c6_i32_350 : i32 to vector<1x128xi32>
    %457 = arith.cmpi eq, %441, %456 : vector<1x128xi32>
    %cst_351 = arith.constant 0.000000e+00 : f32
    %458 = vector.broadcast %cst_351 : f32 to vector<1x128xf32>
    %459 = arith.select %457, %440, %458 : vector<1x128xi1>, vector<1x128xf32>
    %460 = arith.select %443, %455, %459 : vector<1x128xi1>, vector<1x128xf32>
    %c0_352 = arith.constant 0 : index
    %c0_353 = arith.constant 0 : index
    %c0_354 = arith.constant 0 : index
    %461 = vector.load %arg25[%c0_352, %c0_353, %c0_354] : memref<1x1x128xf32, #tpu.memory_space<vmem>>, vector<1x1x128xf32>
    %462 = vector.shape_cast %461 : vector<1x1x128xf32> to vector<1x128xf32>
    %463 = vector.shape_cast %460 : vector<1x128xf32> to vector<1x1x128xf32>
    tpu.vector_store %arg25[%c0_352, %c0_353, %c0_354], %463 {strides = array<i32>} : memref<1x1x128xf32, #tpu.memory_space<vmem>>, vector<1x1x128xf32>,
    return
  }
  func.func @transform_0(%arg0: i32) -> (i32, i32, i32) {
    %c0_i32 = arith.constant 0 : i32
    %c0_i32_0 = arith.constant 0 : i32
    %c0_i32_1 = arith.constant 0 : i32
    return %arg0, %c0_i32, %c0_i32_0 : i32, i32, i32
  }
  func.func @transform_1(%arg0: i32) -> (i32, i32, i32) {
    %c0_i32 = arith.constant 0 : i32
    %c0_i32_0 = arith.constant 0 : i32
    %c0_i32_1 = arith.constant 0 : i32
    return %arg0, %c0_i32, %c0_i32_0 : i32, i32, i32
  }
  func.func @transform_2(%arg0: i32) -> (i32, i32, i32) {
    %c0_i32 = arith.constant 0 : i32
    %c0_i32_0 = arith.constant 0 : i32
    %c0_i32_1 = arith.constant 0 : i32
    %c0_i32_2 = arith.constant 0 : i32
    return %c0_i32, %c0_i32_0, %c0_i32_1 : i32, i32, i32
  }
  func.func @transform_3(%arg0: i32) -> (i32, i32) {
    %c0_i32 = arith.constant 0 : i32
    %c0_i32_0 = arith.constant 0 : i32
    %c0_i32_1 = arith.constant 0 : i32
    return %c0_i32, %c0_i32_0 : i32, i32
  }
  func.func @transform_4(%arg0: i32) -> (i32, i32, i32) {
    %c0_i32 = arith.constant 0 : i32
    %c0_i32_0 = arith.constant 0 : i32
    %c0_i32_1 = arith.constant 0 : i32
    %c0_i32_2 = arith.constant 0 : i32
    return %c0_i32, %c0_i32_0, %c0_i32_1 : i32, i32, i32
  }
  func.func @transform_5(%arg0: i32) -> (i32, i32, i32) {
    %c0_i32 = arith.constant 0 : i32
    %c0_i32_0 = arith.constant 0 : i32
    %c0_i32_1 = arith.constant 0 : i32
    %c0_i32_2 = arith.constant 0 : i32
    return %c0_i32, %c0_i32_0, %c0_i32_1 : i32, i32, i32
  }
  func.func @transform_6(%arg0: i32) -> (i32, i32) {
    %c0_i32 = arith.constant 0 : i32
    %c0_i32_0 = arith.constant 0 : i32
    %c0_i32_1 = arith.constant 0 : i32
    return %c0_i32, %c0_i32_0 : i32, i32
  }
  func.func @transform_7(%arg0: i32) -> (i32, i32, i32) {
    %c0_i32 = arith.constant 0 : i32
    %c0_i32_0 = arith.constant 0 : i32
    %c0_i32_1 = arith.constant 0 : i32
    %c0_i32_2 = arith.constant 0 : i32
    return %c0_i32, %c0_i32_0, %c0_i32_1 : i32, i32, i32
  }
  func.func @transform_8(%arg0: i32) -> (i32, i32) {
    %c0_i32 = arith.constant 0 : i32
    %c0_i32_0 = arith.constant 0 : i32
    %c0_i32_1 = arith.constant 0 : i32
    return %c0_i32, %c0_i32_0 : i32, i32
  }
  func.func @transform_9(%arg0: i32) -> (i32, i32, i32) {
    %c0_i32 = arith.constant 0 : i32
    %c0_i32_0 = arith.constant 0 : i32
    %c0_i32_1 = arith.constant 0 : i32
    %c0_i32_2 = arith.constant 0 : i32
    return %c0_i32, %c0_i32_0, %c0_i32_1 : i32, i32, i32
  }
  func.func @transform_10(%arg0: i32) -> (i32, i32, i32) {
    %c0_i32 = arith.constant 0 : i32
    %c0_i32_0 = arith.constant 0 : i32
    %c0_i32_1 = arith.constant 0 : i32
    %c0_i32_2 = arith.constant 0 : i32
    return %c0_i32, %c0_i32_0, %c0_i32_1 : i32, i32, i32
  }
  func.func @transform_11(%arg0: i32) -> (i32, i32) {
    %c0_i32 = arith.constant 0 : i32
    %c0_i32_0 = arith.constant 0 : i32
    %c0_i32_1 = arith.constant 0 : i32
    return %c0_i32, %c0_i32_0 : i32, i32
  }
  func.func @transform_12(%arg0: i32) -> (i32, i32, i32) {
    %c0_i32 = arith.constant 0 : i32
    %c0_i32_0 = arith.constant 0 : i32
    %c0_i32_1 = arith.constant 0 : i32
    %c0_i32_2 = arith.constant 0 : i32
    return %c0_i32, %c0_i32_0, %c0_i32_1 : i32, i32, i32
  }
  func.func @transform_13(%arg0: i32) -> (i32, i32) {
    %c0_i32 = arith.constant 0 : i32
    %c0_i32_0 = arith.constant 0 : i32
    %c0_i32_1 = arith.constant 0 : i32
    return %c0_i32, %c0_i32_0 : i32, i32
  }
  func.func @transform_14(%arg0: i32) -> (i32, i32, i32) {
    %c0_i32 = arith.constant 0 : i32
    %c0_i32_0 = arith.constant 0 : i32
    %c0_i32_1 = arith.constant 0 : i32
    %c0_i32_2 = arith.constant 0 : i32
    return %c0_i32, %c0_i32_0, %c0_i32_1 : i32, i32, i32
  }
  func.func @transform_15(%arg0: i32) -> (i32, i32, i32) {
    %c0_i32 = arith.constant 0 : i32
    %c0_i32_0 = arith.constant 0 : i32
    %c0_i32_1 = arith.constant 0 : i32
    %c0_i32_2 = arith.constant 0 : i32
    return %c0_i32, %c0_i32_0, %c0_i32_1 : i32, i32, i32
  }
  func.func @transform_16(%arg0: i32) -> (i32, i32) {
    %c0_i32 = arith.constant 0 : i32
    %c0_i32_0 = arith.constant 0 : i32
    %c0_i32_1 = arith.constant 0 : i32
    return %c0_i32, %c0_i32_0 : i32, i32
  }
  func.func @transform_17(%arg0: i32) -> (i32, i32) {
    %c0_i32 = arith.constant 0 : i32
    %c0_i32_0 = arith.constant 0 : i32
    %c0_i32_1 = arith.constant 0 : i32
    return %c0_i32, %c0_i32_0 : i32, i32
  }
  func.func @transform_18(%arg0: i32) -> (i32, i32) {
    %c0_i32 = arith.constant 0 : i32
    %c0_i32_0 = arith.constant 0 : i32
    %c0_i32_1 = arith.constant 0 : i32
    return %c0_i32, %c0_i32_0 : i32, i32
  }
  func.func @transform_19(%arg0: i32) -> (i32, i32) {
    %c0_i32 = arith.constant 0 : i32
    %c0_i32_0 = arith.constant 0 : i32
    %c0_i32_1 = arith.constant 0 : i32
    return %c0_i32, %c0_i32_0 : i32, i32
  }
  func.func @transform_20(%arg0: i32) -> (i32, i32) {
    %c0_i32 = arith.constant 0 : i32
    %c0_i32_0 = arith.constant 0 : i32
    %c0_i32_1 = arith.constant 0 : i32
    return %c0_i32, %c0_i32_0 : i32, i32
  }
  func.func @transform_21(%arg0: i32) -> (i32, i32) {
    %c0_i32 = arith.constant 0 : i32
    %c0_i32_0 = arith.constant 0 : i32
    %c0_i32_1 = arith.constant 0 : i32
    return %c0_i32, %c0_i32_0 : i32, i32
  }
  func.func @transform_22(%arg0: i32) -> (i32, i32) {
    %c0_i32 = arith.constant 0 : i32
    %c0_i32_0 = arith.constant 0 : i32
    %c0_i32_1 = arith.constant 0 : i32
    return %c0_i32, %c0_i32_0 : i32, i32
  }
  func.func @transform_23(%arg0: i32) -> (i32, i32) {
    %c0_i32 = arith.constant 0 : i32
    %c0_i32_0 = arith.constant 0 : i32
    %c0_i32_1 = arith.constant 0 : i32
    return %c0_i32, %c0_i32_0 : i32, i32
  }
  func.func @transform_24(%arg0: i32) -> (i32, i32, i32) {
    %c0_i32 = arith.constant 0 : i32
    %c0_i32_0 = arith.constant 0 : i32
    %c0_i32_1 = arith.constant 0 : i32
    return %arg0, %c0_i32, %c0_i32_0 : i32, i32, i32
  }
}

</mosaic_0001>

<bundles_post_ra>
// kernel: tpu_custom_call.1
= control target key start
LH: loop header
LB: loop body
LE: loop exit
PB: predicated region body
PF: predicated region fallthrough
CT: control target
= control target key end

     0   :  { %s17847_s0 = inlined_call_operand.vmem [shape: f32[2,256,4], index: 0, kind: input, shape index: {}]   ;;  %s17848_s1 = inlined_call_operand.hbm [shape: f32[2,1,8], index: 1, kind: input, shape index: {}]   ;;  %s17849_s2 = inlined_call_operand.vmem [shape: f32[9,4,8], index: 2, kind: input, shape index: {}]   ;;  %s17850_s3 = inlined_call_operand.vmem [shape: f32[1,8], index: 3, kind: input, shape index: {}]   ;;  %s17851_s4 = inlined_call_operand.hbm [shape: f32[4,8,16], index: 4, kind: input, shape index: {}]   ;;  %s17852_s5 = inlined_call_operand.vmem [shape: f32[4,64,256], index: 5, kind: input, shape index: {}]   ;;  %s17853_s6 = inlined_call_operand.hbm [shape: f32[1,16], index: 6, kind: input, shape index: {}]   ;;  %s17854_s7 = inlined_call_operand.hbm [shape: f32[9,16,16], index: 7, kind: input, shape index: {}]   ;;  %s17855_s8 = inlined_call_operand.hbm [shape: f32[1,16], index: 8, kind: input, shape index: {}]   ;;  %s17856_s9 = inlined_call_operand.hbm [shape: f32[4,16,32], index: 9, kind: input, shape index: {}]   ;;  %s17857_s10 = inlined_call_operand.hbm [shape: f32[4,16,64], index: 10, kind: input, shape index: {}]   ;;  %s17858_s11 = inlined_call_operand.hbm [shape: f32[1,32], index: 11, kind: input, shape index: {}]   ;;  %s17859_s12 = inlined_call_operand.hbm [shape: f32[9,32,32], index: 12, kind: input, shape index: {}]   ;;  %s17860_s13 = inlined_call_operand.hbm [shape: f32[1,32], index: 13, kind: input, shape index: {}]   ;;  %s17861_s14 = inlined_call_operand.vmem [shape: f32[4,32,64], index: 14, kind: input, shape index: {}]   ;;  %s17862_s15 = inlined_call_operand.hbm [shape: f32[4,4,16], index: 15, kind: input, shape index: {}]   ;;  %s17863_s16 = inlined_call_operand.vmem [shape: f32[1,64], index: 16, kind: input, shape index: {}]   ;;  %s17864_s17 = inlined_call_operand.hbm [shape: f32[256,128], index: 17, kind: input, shape index: {}]   ;;  %s17865_s18 = inlined_call_operand.vmem [shape: f32[8,128], index: 18, kind: input, shape index: {}]   ;;  %s17866_s19 = inlined_call_operand.vmem [shape: f32[1,128], index: 19, kind: input, shape index: {}]   ;;  %s17867_s20 = inlined_call_operand.hbm [shape: f32[128,128], index: 20, kind: input, shape index: {}]   ;;  %s17868_s21 = inlined_call_operand.vmem [shape: f32[1,128], index: 21, kind: input, shape index: {}]   ;;  %s17869_s22 = inlined_call_operand.hbm [shape: f32[128,128], index: 22, kind: input, shape index: {}]   ;;  %s17870_s23 = inlined_call_operand.vmem [shape: f32[1,128], index: 23, kind: input, shape index: {}]   ;;  %s17871_s24 = inlined_call_operand.hbm [shape: f32[2,1,128], index: 24, kind: output, shape index: {}]  }
   0x1   :  { %18055 = sst [smem:[#allocation115_spill]] %s17847_s0 }
   0x2   :  { %18056 = sst [smem:[#allocation116_spill]] %s17848_s1 }
   0x3   :  { %18057 = sst [smem:[#allocation117_spill]] %s17849_s2 }
   0x4   :  { %18058 = sst [smem:[#allocation118_spill]] %s17850_s3 }
   0x5   :  { %18059 = sst [smem:[#allocation119_spill]] %s17851_s4 }
   0x6   :  { %18060 = sst [smem:[#allocation120_spill]] %s17852_s5 }
   0x7   :  { %18061 = sst [smem:[#allocation121_spill]] %s17853_s6 }
   0x8   :  { %18062 = sst [smem:[#allocation122_spill]] %s17854_s7 }
   0x9   :  { %18063 = sst [smem:[#allocation123_spill]] %s17855_s8 }
   0xa   :  { %18064 = sst [smem:[#allocation124_spill]] %s17856_s9 }
   0xb   :  { %18065 = sst [smem:[#allocation125_spill]] %s17857_s10 }
   0xc   :  { %18066 = sst [smem:[#allocation126_spill]] %s17858_s11 }
   0xd   :  { %18067 = sst [smem:[#allocation127_spill]] %s17859_s12 }
   0xe   :  { %18068 = sst [smem:[#allocation128_spill]] %s17860_s13 }
   0xf   :  { %18069 = sst [smem:[#allocation129_spill]] %s17861_s14 }
  0x10   :  { %18070 = sst [smem:[#allocation130_spill]] %s17863_s16 }
  0x11   :  { %18071 = sst [smem:[#allocation131_spill]] %s17865_s18 }
  0x12   :  { %18072 = sst [smem:[#allocation132_spill]] %s17866_s19 }
  0x13   :  { %18073 = sst [smem:[#allocation133_spill]] %s17868_s21 }
  0x14   :  { %18074 = sst [smem:[#allocation134_spill]] %s17870_s23 }
  0x15   :  { %18075 = sst [smem:[#allocation135_spill]] %s17871_s24 }
  0x16   :  { %29 = vsyncpa [#allocation6], 0 }
  0x17   :  { %31 = vsyncpa [#allocation6 + $0x1], 0 }
  0x18   :  { %32 = vsyncpa [#allocation9], 0 }
  0x19   :  { %33 = vsyncpa [#allocation12], 0 }
  0x1a   :  { %34 = vsyncpa [#allocation15], 0 }
  0x1b   :  { %35 = vsyncpa [#allocation18], 0 }
  0x1c   :  { %36 = vsyncpa [#allocation21], 0 }
  0x1d   :  { %37 = vsyncpa [#allocation24], 0 }
  0x1e   :  { %38 = vsyncpa [#allocation27], 0 }
  0x1f   :  { %39 = vsyncpa [#allocation7], 0 }
  0x20   :  { %41 = vsyncpa [#allocation7 + $0x1], 0  ;;  %s15065_s5 = smov 0   ;;  %s15067_s26 = smov 0  }
  0x21   :  { %s15069_s27 = smov 0   ;;  %s15071_s28 = smov 0  }
  0x22 LB: > { %s14918_s6 = smov [#allocation8]   ;;  %s15086_s29 = sadd.s32 4294967295, %s14916_s28   ;;  %s14916_s28 = sphi %s15071_s28, %s18472_s28   ;;  %s14912_s27 = sphi %s15069_s27, %s18471_s27   ;;  %s14908_s26 = sphi %s15067_s26, %s18470_s26   ;;  %s14904_s5 = sphi %s15065_s5, %s18469_s5  }
  0x23   : > { %s610_s2 = sshll.u32 %s14918_s6, 4  ;;  %18076 = sst [smem:[#allocation38_spill]] %s15086_s29  ;;  %s15091_s2 = int_to_ptr.vmem [resolvable:$true] %s610_s2 }
  0x24   : > { %p10922_p0 = scmp.ge.s32.totalorder %s14916_s28, 1  ;;  %p17886_p1 = scmp.eq.s32.totalorder %s15086_s29, 0 }
  0x25   : > { %p592_p2 = scmp.lt.s32.totalorder %s14916_s28, 3  ;;  %s14919_s7 = smov [#allocation11]  }
  0x26   : > { %s637_s30 = sshll.u32 %s14919_s7, 4  ;;  %s14920_s25 = smov [#allocation14]   ;;  %s15106_s30 = int_to_ptr.vmem [resolvable:$true] %s637_s30 }
  0x27   : > { %p15093_p3 = pnand %p10922_p0, %p592_p2  ;;  %s661_s8 = sshll.u32 %s14920_s25, 4  ;;  %s15108_s8 = int_to_ptr.vmem [resolvable:$true] %s661_s8 }
  0x28   : > { %s18080_s6 = sld [smem:[#allocation119_spill]] }
  0x29   : > { %s18077_s0 = scalar_select %p15093_p3, 1, 0 }
  0x2a   : > { %p14296_p5 = pneg %p15093_p3 }
  0x2b   : > { %18078 = sst [smem:[#allocation39_spill]] %s18077_s0 }
  0x2c   : > { %p15102_p6 = pnand %p14296_p5, %p17886_p1 }
  0x2e   : > { %s14428_s24 = scalar_lea.hbm %s18080_s6, 512  ;;  %p15118_p8 = pneg %p15102_p6 }
  0x2f   : > { %p14429_p7 = scmp.ne.s32.totalorder %s18080_s6, %s14428_s24  ;;  %p14435_p11 = scmp.lt.u32.totalorder %s14428_s24, %s18080_s6 }
  0x31   : > { %p14431_p9 = pnand %p15118_p8, %p14429_p7 }
  0x33   : > { %p14432_p10 = pneg %p14431_p9 }
  0x35   : > { %p14437_p12 = pnand %p14435_p11, %p14432_p10 }
  0x37   : > { %14440 = shalt.err (!%p14437_p12)
}
  0x38   : > { %s14441_s21 = scalar_lea.vmem %s15091_s2, 512  ;;  %p14449_p5 = scmp.lt.s32.totalorder %s15091_s2, %s15091_s2 }
  0x39   : > { %p14442_p13 = scmp.ne.s32.totalorder %s15091_s2, %s14441_s21  ;;  %p14450_p4 = scmp.lt.s32.totalorder %s14441_s21, %s14441_s21 }
  0x3b   : > { %p14444_p0 = pnand %p14442_p13, %p15118_p8  ;;  %p14451_p7 = por %p14450_p4, %p14449_p5 }
  0x3d   : > { %p14445_p2 = pneg %p14444_p0 }
  0x3f   : > { %p14452_p9 = pnand %p14451_p7, %p14445_p2 }
  0x41   : > { %14455 = shalt.err (!%p14452_p9)
}
  0x42   : > { %s17888_s23 = smov 128   ;;  %s17890_s19 = smov 8  }
  0x43   : > { %14299 = dma.hbm_to_vmem [thread:$0]  (!%p15102_p6), %s18080_s6, 512, %s15091_s2, [#allocation9], %s17888_s23, %s17888_s23, %s17890_s19  }
  0x44   : > { %s18082_s16 = sld [smem:[#allocation122_spill]] }
  0x4a   : > { %s14456_s21 = scalar_lea.hbm %s18082_s16, 2304 }
  0x4b   : > { %p14457_p4 = scmp.ne.s32.totalorder %s18082_s16, %s14456_s21  ;;  %p14463_p12 = scmp.lt.u32.totalorder %s14456_s21, %s18082_s16 }
  0x4d   : > { %p14459_p10 = pnand %p14457_p4, %p15118_p8 }
  0x4f   : > { %p14460_p11 = pneg %p14459_p10 }
  0x51   : > { %p14465_p13 = pnand %p14463_p12, %p14460_p11 }
  0x53   : > { %14468 = shalt.err (!%p14465_p13)
}
  0x54   : > { %s14469_s2 = scalar_lea.vmem %s15106_s30, 2304  ;;  %p14477_p7 = scmp.lt.s32.totalorder %s15106_s30, %s15106_s30 }
  0x55   : > { %p14470_p0 = scmp.ne.s32.totalorder %s15106_s30, %s14469_s2  ;;  %p14478_p9 = scmp.lt.s32.totalorder %s14469_s2, %s14469_s2 }
  0x57   : > { %p14472_p2 = pnand %p14470_p0, %p15118_p8  ;;  %p14479_p4 = por %p14478_p9, %p14477_p7 }
  0x59   : > { %p14473_p5 = pneg %p14472_p2 }
  0x5b   : > { %p14480_p10 = pnand %p14479_p4, %p14473_p5 }
  0x5d   : > { %14483 = shalt.err (!%p14480_p10)
}
  0x5e   : > { %14305 = dma.hbm_to_vmem [thread:$0]  (!%p15102_p6), %s18082_s16, 2304, %s15106_s30, [#allocation12], %s17888_s23, %s17888_s23, %s17890_s19  }
  0x5f   : > { %s18083_s9 = sld [smem:[#allocation124_spill]] }
  0x65   : > { %s14484_s24 = scalar_lea.hbm %s18083_s9, 1024 }
  0x66   : > { %p14485_p11 = scmp.ne.s32.totalorder %s18083_s9, %s14484_s24  ;;  %p14491_p0 = scmp.lt.u32.totalorder %s14484_s24, %s18083_s9 }
  0x68   : > { %p14487_p12 = pnand %p14485_p11, %p15118_p8 }
  0x6a   : > { %p14488_p13 = pneg %p14487_p12 }
  0x6c   : > { %p14493_p2 = pnand %p14491_p0, %p14488_p13 }
  0x6e   : > { %14496 = shalt.err (!%p14493_p2)
}
  0x6f   : > { %s14497_s30 = scalar_lea.vmem %s15108_s8, 1024  ;;  %p14505_p4 = scmp.lt.s32.totalorder %s15108_s8, %s15108_s8 }
  0x70   : > { %p14498_p5 = scmp.ne.s32.totalorder %s15108_s8, %s14497_s30  ;;  %p14506_p10 = scmp.lt.s32.totalorder %s14497_s30, %s14497_s30 }
  0x72   : > { %p14500_p7 = pnand %p14498_p5, %p15118_p8  ;;  %p14507_p11 = por %p14506_p10, %p14505_p4 }
  0x74   : > { %p14501_p9 = pneg %p14500_p7 }
  0x76   : > { %p14508_p12 = pnand %p14507_p11, %p14501_p9 }
  0x78   : > { %14511 = shalt.err (!%p14508_p12)
}
  0x79   : > { %14311 = dma.hbm_to_vmem [thread:$0]  (!%p15102_p6), %s18083_s9, 1024, %s15108_s8, [#allocation15], %s17888_s23, %s17888_s23, %s17890_s19  }
  0x7a   : > { %s14923_s18 = smov [#allocation17]   ;;  %s14924_s0 = smov [#allocation20]  }
  0x7b   : > { %s688_s29 = sshll.u32 %s14923_s18, 4  ;;  %s712_s24 = sshll.u32 %s14924_s0, 4  ;;  %s689_s29 = int_to_ptr.vmem [resolvable:$true] %s688_s29  ;;  %s713_s24 = int_to_ptr.vmem [resolvable:$true] %s712_s24 }
  0x7c   : > { %s18084_s11 = sld [smem:[#allocation126_spill]] }
  0x82   : > { %s14512_s25 = scalar_lea.hbm %s18084_s11, 16 }
  0x83   : > { %p14513_p13 = scmp.ne.s32.totalorder %s18084_s11, %s14512_s25  ;;  %p14519_p5 = scmp.lt.u32.totalorder %s14512_s25, %s18084_s11 }
  0x85   : > { %p14515_p0 = pnand %p14513_p13, %p15118_p8 }
  0x87   : > { %p14516_p2 = pneg %p14515_p0 }
  0x89   : > { %p14521_p7 = pnand %p14519_p5, %p14516_p2 }
  0x8b   : > { %14524 = shalt.err (!%p14521_p7)
}
  0x8c   : > { %s14525_s8 = scalar_lea.vmem %s689_s29, 16  ;;  %s14532_s14 = scalar_lea.vmem %s689_s29, 32 }
  0x8d   : > { %p14526_p9 = scmp.ne.s32.totalorder %s689_s29, %s14525_s8  ;;  %p14533_p11 = scmp.lt.s32.totalorder %s689_s29, %s689_s29 }
  0x8e   : > { %p14534_p12 = scmp.lt.s32.totalorder %s14532_s14, %s14525_s8 }
  0x8f   : > { %p14528_p4 = pnand %p14526_p9, %p15118_p8 }
  0x90   : > { %p14535_p1 = por %p14534_p12, %p14533_p11 }
  0x91   : > { %p14529_p10 = pneg %p14528_p4 }
  0x93   : > { %p14536_p3 = pnand %p14535_p1, %p14529_p10 }
  0x95   : > { %14539 = shalt.err (!%p14536_p3)
}
  0x96   : > { %14317 = dma.hbm_to_vmem [thread:$0]  (!%p15102_p6), %s18084_s11, 16, %s689_s29, [#allocation18]  }
  0x97   : > { %s18085_s13 = sld [smem:[#allocation128_spill]] }
  0x9d   : > { %s14540_s1 = scalar_lea.hbm %s18085_s13, 16 }
  0x9e   : > { %p14541_p13 = scmp.ne.s32.totalorder %s18085_s13, %s14540_s1  ;;  %p14547_p3 = scmp.lt.u32.totalorder %s14540_s1, %s18085_s13 }
  0xa0   : > { %p14543_p0 = pnand %p14541_p13, %p15118_p8 }
  0xa2   : > { %p14544_p1 = pneg %p14543_p0 }
  0xa4   : > { %p14549_p2 = pnand %p14547_p3, %p14544_p1 }
  0xa6   : > { %14552 = shalt.err (!%p14549_p2)
}
  0xa7   : > { %s14553_s8 = scalar_lea.vmem %s713_s24, 16  ;;  %s14560_s29 = scalar_lea.vmem %s713_s24, 32 }
  0xa8   : > { %p14554_p5 = scmp.ne.s32.totalorder %s713_s24, %s14553_s8  ;;  %p14561_p4 = scmp.lt.s32.totalorder %s713_s24, %s713_s24 }
  0xa9   : > { %p14562_p10 = scmp.lt.s32.totalorder %s14560_s29, %s14553_s8 }
  0xaa   : > { %p14556_p7 = pnand %p14554_p5, %p15118_p8 }
  0xab   : > { %p14563_p11 = por %p14562_p10, %p14561_p4 }
  0xac   : > { %p14557_p9 = pneg %p14556_p7 }
  0xae   : > { %p14564_p12 = pnand %p14563_p11, %p14557_p9 }
  0xb0   : > { %14567 = shalt.err (!%p14564_p12)
}
  0xb1   : > { %14323 = dma.hbm_to_vmem [thread:$0]  (!%p15102_p6), %s18085_s13, 16, %s713_s24, [#allocation21]  }
  0xb2   : > { %s14925_s0 = smov [#allocation23]   ;;  %s14926_s4 = smov [#allocation10]  }
  0xb3   : > { %s741_s6 = sshll.u32 %s14925_s0, 4  ;;  %s627_s1 = sshll.u32 %s14926_s4, 4  ;;  %s742_s6 = int_to_ptr.vmem [resolvable:$true] %s741_s6  ;;  %s628_s1 = int_to_ptr.vmem [resolvable:$true] %s627_s1 }
  0xb4   : > { %s14568_s30 = scalar_lea.hbm %s17864_s17, 4096 }
  0xb5   : > { %p14569_p13 = scmp.ne.s32.totalorder %s17864_s17, %s14568_s30  ;;  %p14575_p3 = scmp.lt.u32.totalorder %s14568_s30, %s17864_s17 }
  0xb7   : > { %p14571_p0 = pnand %p14569_p13, %p15118_p8 }
  0xb9   : > { %p14572_p1 = pneg %p14571_p0 }
  0xbb   : > { %p14577_p2 = pnand %p14575_p3, %p14572_p1 }
  0xbd   : > { %14580 = shalt.err (!%p14577_p2)
}
  0xbe   : > { %s14581_s24 = scalar_lea.vmem %s742_s6, 4096  ;;  %p14589_p4 = scmp.lt.s32.totalorder %s742_s6, %s742_s6 }
  0xbf   : > { %p14582_p5 = scmp.ne.s32.totalorder %s742_s6, %s14581_s24  ;;  %p14590_p10 = scmp.lt.s32.totalorder %s14581_s24, %s14581_s24 }
  0xc1   : > { %p14584_p7 = pnand %p14582_p5, %p15118_p8  ;;  %p14591_p11 = por %p14590_p10, %p14589_p4 }
  0xc3   : > { %p14585_p9 = pneg %p14584_p7 }
  0xc5   : > { %p14592_p12 = pnand %p14591_p11, %p14585_p9 }
  0xc7   : > { %14595 = shalt.err (!%p14592_p12)
}
  0xc8   : > { %14329 = dma.hbm_to_vmem [thread:$0]  (!%p15102_p6), %s17864_s17, 4096, %s742_s6, [#allocation24], %s17888_s23, %s17888_s23, %s17890_s19  }
  0xc9   : > { %s18086_s21 = sld [smem:[#allocation121_spill]] }
  0xcf   : > { %s14596_s30 = scalar_lea.hbm %s18086_s21, 16 }
  0xd0   : > { %p14597_p13 = scmp.ne.s32.totalorder %s18086_s21, %s14596_s30  ;;  %p14603_p3 = scmp.lt.u32.totalorder %s14596_s30, %s18086_s21 }
  0xd2   : > { %p14599_p0 = pnand %p14597_p13, %p15118_p8 }
  0xd4   : > { %p14600_p1 = pneg %p14599_p0 }
  0xd6   : > { %p14605_p2 = pnand %p14603_p3, %p14600_p1 }
  0xd8   : > { %14608 = shalt.err (!%p14605_p2)
}
  0xd9   : > { %s14609_s24 = scalar_lea.vmem %s628_s1, 16  ;;  %s14616_s6 = scalar_lea.vmem %s628_s1, 32 }
  0xda   : > { %p14610_p5 = scmp.ne.s32.totalorder %s628_s1, %s14609_s24  ;;  %p14617_p4 = scmp.lt.s32.totalorder %s628_s1, %s628_s1 }
  0xdb   : > { %p14618_p10 = scmp.lt.s32.totalorder %s14616_s6, %s14609_s24 }
  0xdc   : > { %p14612_p7 = pnand %p14610_p5, %p15118_p8 }
  0xdd   : > { %p14619_p11 = por %p14618_p10, %p14617_p4 }
  0xde   : > { %p14613_p9 = pneg %p14612_p7 }
  0xe0   : > { %p14620_p12 = pnand %p14619_p11, %p14613_p9 }
  0xe2   : > { %14623 = shalt.err (!%p14620_p12)
}
  0xe3   : > { %14302 = dma.hbm_to_vmem [thread:$0]  (!%p15102_p6), %s18086_s21, 16, %s628_s1, [#allocation9]  }
  0xe4   : > { %s14927_s4 = smov [#allocation13]   ;;  %s14928_s30 = smov [#allocation16]  }
  0xe5   : > { %s651_s25 = sshll.u32 %s14927_s4, 4  ;;  %s674_s2 = sshll.u32 %s14928_s30, 4  ;;  %s652_s25 = int_to_ptr.vmem [resolvable:$true] %s651_s25  ;;  %s675_s2 = int_to_ptr.vmem [resolvable:$true] %s674_s2 }
  0xe6   : > { %s18087_s14 = sld [smem:[#allocation123_spill]] }
  0xec   : > { %s14624_s23 = scalar_lea.hbm %s18087_s14, 16 }
  0xed   : > { %p14625_p13 = scmp.ne.s32.totalorder %s18087_s14, %s14624_s23  ;;  %p14631_p3 = scmp.lt.u32.totalorder %s14624_s23, %s18087_s14 }
  0xef   : > { %p14627_p0 = pnand %p14625_p13, %p15118_p8 }
  0xf1   : > { %p14628_p1 = pneg %p14627_p0 }
  0xf3   : > { %p14633_p2 = pnand %p14631_p3, %p14628_p1 }
  0xf5   : > { %14636 = shalt.err (!%p14633_p2)
}
  0xf6   : > { %s14637_s1 = scalar_lea.vmem %s652_s25, 16  ;;  %s14644_s0 = scalar_lea.vmem %s652_s25, 32 }
  0xf7   : > { %p14638_p5 = scmp.ne.s32.totalorder %s652_s25, %s14637_s1  ;;  %p14645_p4 = scmp.lt.s32.totalorder %s652_s25, %s652_s25 }
  0xf8   : > { %p14646_p10 = scmp.lt.s32.totalorder %s14644_s0, %s14637_s1 }
  0xf9   : > { %p14640_p7 = pnand %p14638_p5, %p15118_p8 }
  0xfa   : > { %p14647_p11 = por %p14646_p10, %p14645_p4 }
  0xfb   : > { %p14641_p9 = pneg %p14640_p7 }
  0xfd   : > { %p14648_p12 = pnand %p14647_p11, %p14641_p9 }
  0xff   : > { %14651 = shalt.err (!%p14648_p12)
}
 0x100   : > { %14308 = dma.hbm_to_vmem [thread:$0]  (!%p15102_p6), %s18087_s14, 16, %s652_s25, [#allocation12]  }
 0x101   : > { %s18088_s10 = sld [smem:[#allocation125_spill]] }
 0x107   : > { %s14652_s8 = scalar_lea.hbm %s18088_s10, 1024 }
 0x108   : > { %p14653_p13 = scmp.ne.s32.totalorder %s18088_s10, %s14652_s8  ;;  %p14659_p3 = scmp.lt.u32.totalorder %s14652_s8, %s18088_s10 }
 0x10a   : > { %p14655_p0 = pnand %p14653_p13, %p15118_p8 }
 0x10c   : > { %p14656_p1 = pneg %p14655_p0 }
 0x10e   : > { %p14661_p2 = pnand %p14659_p3, %p14656_p1 }
 0x110   : > { %14664 = shalt.err (!%p14661_p2)
}
 0x111   : > { %s14665_s1 = scalar_lea.vmem %s675_s2, 1024  ;;  %p14673_p4 = scmp.lt.s32.totalorder %s675_s2, %s675_s2 }
 0x112   : > { %p14666_p5 = scmp.ne.s32.totalorder %s675_s2, %s14665_s1  ;;  %p14674_p10 = scmp.lt.s32.totalorder %s14665_s1, %s14665_s1 }
 0x114   : > { %p14668_p7 = pnand %p14666_p5, %p15118_p8  ;;  %p14675_p11 = por %p14674_p10, %p14673_p4 }
 0x116   : > { %p14669_p9 = pneg %p14668_p7 }
 0x118   : > { %p14676_p12 = pnand %p14675_p11, %p14669_p9 }
 0x11a   : > { %14679 = shalt.err (!%p14676_p12)
}
 0x11b   : > { %s18089_s25 = smov 8   ;;  %s18090_s0 = smov 128  }
 0x11c   : > { %14314 = dma.hbm_to_vmem [thread:$0]  (!%p15102_p6), %s18088_s10, 1024, %s675_s2, [#allocation15], %s18090_s0, %s18090_s0, %s18089_s25  }
 0x11d   : > { %s14929_s23 = smov [#allocation19]   ;;  %s14930_s8 = smov [#allocation22]  }
 0x11e   : > { %s698_s19 = sshll.u32 %s14929_s23, 4  ;;  %s725_s29 = sshll.u32 %s14930_s8, 4  ;;  %s699_s19 = int_to_ptr.vmem [resolvable:$true] %s698_s19  ;;  %s726_s29 = int_to_ptr.vmem [resolvable:$true] %s725_s29 }
 0x11f   : > { %s18091_s12 = sld [smem:[#allocation127_spill]] }
 0x125   : > { %s14680_s18 = scalar_lea.hbm %s18091_s12, 4608 }
 0x126   : > { %p14681_p13 = scmp.ne.s32.totalorder %s18091_s12, %s14680_s18  ;;  %p14687_p3 = scmp.lt.u32.totalorder %s14680_s18, %s18091_s12 }
 0x128   : > { %p14683_p0 = pnand %p14681_p13, %p15118_p8 }
 0x12a   : > { %p14684_p1 = pneg %p14683_p0 }
 0x12c   : > { %p14689_p2 = pnand %p14687_p3, %p14684_p1 }
 0x12e   : > { %14692 = shalt.err (!%p14689_p2)
}
 0x12f   : > { %s14693_s2 = scalar_lea.vmem %s699_s19, 4608  ;;  %p14701_p4 = scmp.lt.s32.totalorder %s699_s19, %s699_s19 }
 0x130   : > { %p14694_p5 = scmp.ne.s32.totalorder %s699_s19, %s14693_s2  ;;  %p14702_p10 = scmp.lt.s32.totalorder %s14693_s2, %s14693_s2 }
 0x132   : > { %p14696_p7 = pnand %p14694_p5, %p15118_p8  ;;  %p14703_p11 = por %p14702_p10, %p14701_p4 }
 0x134   : > { %p14697_p9 = pneg %p14696_p7 }
 0x136   : > { %p14704_p12 = pnand %p14703_p11, %p14697_p9 }
 0x138   : > { %14707 = shalt.err (!%p14704_p12)
}
 0x139   : > { %14320 = dma.hbm_to_vmem [thread:$0]  (!%p15102_p6), %s18091_s12, 4608, %s699_s19, [#allocation18], %s18090_s0, %s18090_s0, %s18089_s25  }
 0x13a   : > { %s14708_s8 = scalar_lea.hbm %s17862_s15, 256 }
 0x13b   : > { %p14709_p13 = scmp.ne.s32.totalorder %s17862_s15, %s14708_s8  ;;  %p14715_p3 = scmp.lt.u32.totalorder %s14708_s8, %s17862_s15 }
 0x13d   : > { %p14711_p0 = pnand %p14709_p13, %p15118_p8 }
 0x13f   : > { %p14712_p1 = pneg %p14711_p0 }
 0x141   : > { %p14717_p2 = pnand %p14715_p3, %p14712_p1 }
 0x143   : > { %14720 = shalt.err (!%p14717_p2)
}
 0x144   : > { %s14721_s4 = scalar_lea.vmem %s726_s29, 256  ;;  %p14729_p4 = scmp.lt.s32.totalorder %s726_s29, %s726_s29 }
 0x145   : > { %p14722_p5 = scmp.ne.s32.totalorder %s726_s29, %s14721_s4  ;;  %p14730_p10 = scmp.lt.s32.totalorder %s14721_s4, %s14721_s4 }
 0x147   : > { %p14724_p7 = pnand %p14722_p5, %p15118_p8  ;;  %p14731_p11 = por %p14730_p10, %p14729_p4 }
 0x149   : > { %p14725_p9 = pneg %p14724_p7 }
 0x14b   : > { %p14732_p12 = pnand %p14731_p11, %p14725_p9 }
 0x14d   : > { %14735 = shalt.err (!%p14732_p12)
}
 0x14e   : > { %s14931_s19 = smov 64   ;;  %s14932_s2 = smov 4  }
 0x14f   : > { %14326 = dma.hbm_to_vmem [thread:$0]  (!%p15102_p6), %s17862_s15, 256, %s726_s29, [#allocation21], %s14931_s19, %s14931_s19, %s14932_s2  }
 0x150   : > { %s14933_s30 = smov [#allocation25]   ;;  %s14934_s8 = smov [#allocation26]  }
 0x151   : > { %s760_s23 = sshll.u32 %s14933_s30, 4  ;;  %s776_s24 = sshll.u32 %s14934_s8, 4  ;;  %s761_s23 = int_to_ptr.vmem [resolvable:$true] %s760_s23  ;;  %s777_s24 = int_to_ptr.vmem [resolvable:$true] %s776_s24 }
 0x152   : > { %s14736_s1 = scalar_lea.hbm %s17867_s20, 2048 }
 0x153   : > { %p14737_p13 = scmp.ne.s32.totalorder %s17867_s20, %s14736_s1  ;;  %p14743_p3 = scmp.lt.u32.totalorder %s14736_s1, %s17867_s20 }
 0x155   : > { %p14739_p0 = pnand %p14737_p13, %p15118_p8 }
 0x157   : > { %p14740_p1 = pneg %p14739_p0 }
 0x159   : > { %p14745_p2 = pnand %p14743_p3, %p14740_p1 }
 0x15b   : > { %14748 = shalt.err (!%p14745_p2)
}
 0x15c   : > { %s14749_s29 = scalar_lea.vmem %s761_s23, 2048  ;;  %p14757_p4 = scmp.lt.s32.totalorder %s761_s23, %s761_s23 }
 0x15d   : > { %p14750_p5 = scmp.ne.s32.totalorder %s761_s23, %s14749_s29  ;;  %p14758_p10 = scmp.lt.s32.totalorder %s14749_s29, %s14749_s29 }
 0x15f   : > { %p14752_p7 = pnand %p14750_p5, %p15118_p8  ;;  %p14759_p11 = por %p14758_p10, %p14757_p4 }
 0x161   : > { %p14753_p9 = pneg %p14752_p7 }
 0x163   : > { %p14760_p12 = pnand %p14759_p11, %p14753_p9 }
 0x165   : > { %14763 = shalt.err (!%p14760_p12)
}
 0x166   : > { %14332 = dma.hbm_to_vmem [thread:$0]  (!%p15102_p6), %s17867_s20, 2048, %s761_s23, [#allocation24], %s18090_s0, %s18090_s0, %s18089_s25  }
 0x167   : > { %s14764_s2 = scalar_lea.hbm %s17869_s22, 2048 }
 0x168   : > { %p14765_p13 = scmp.ne.s32.totalorder %s17869_s22, %s14764_s2  ;;  %p14771_p3 = scmp.lt.u32.totalorder %s14764_s2, %s17869_s22 }
 0x16a   : > { %p14767_p0 = pnand %p14765_p13, %p15118_p8 }
 0x16c   : > { %p14768_p1 = pneg %p14767_p0 }
 0x16e   : > { %p14773_p2 = pnand %p14771_p3, %p14768_p1 }
 0x170   : > { %14776 = shalt.err (!%p14773_p2)
}
 0x171   : > { %s14777_s6 = scalar_lea.vmem %s777_s24, 2048  ;;  %p14785_p4 = scmp.lt.s32.totalorder %s777_s24, %s777_s24 }
 0x172   : > { %p14778_p5 = scmp.ne.s32.totalorder %s777_s24, %s14777_s6  ;;  %p14786_p10 = scmp.lt.s32.totalorder %s14777_s6, %s14777_s6 }
 0x174   : > { %p14780_p7 = pnand %p14778_p5, %p15118_p8  ;;  %p14787_p11 = por %p14786_p10, %p14785_p4 }
 0x176   : > { %p14781_p9 = pneg %p14780_p7 }
 0x178   : > { %p14788_p12 = pnand %p14787_p11, %p14781_p9 }
 0x17a   : > { %14791 = shalt.err (!%p14788_p12)
}
 0x17b   : > { %s18092_s7 = sld [smem:[#allocation38_spill]]  ;;  %s10921_s3 = sadd.s32 4294967294, %s14916_s28  }
 0x17c   : > { %14335 = dma.hbm_to_vmem [thread:$0]  (!%p15102_p6), %s17869_s22, 2048, %s777_s24, [#allocation27], %s18090_s0, %s18090_s0, %s18089_s25  }
 0x17d   : > { %s15391_s1 = sadd.s32 1, %s14916_s28   ;;  %s80_s4 = sadd.s32 1, %s14912_s27 }
 0x17e   : > { %s77_s29 = ssub.s32 %s14916_s28, %s15391_s1  ;;  %p87_p8 = scmp.ne.s32.totalorder %s14912_s27, %s14908_s26 }
 0x17f   : > { %p78_p13 = scmp.eq.s32.totalorder %s77_s29, 0  ;;  %p88_p0 = scmp.eq.s32.totalorder %s14916_s28, 0 }
 0x180   : > { %p93_p1 = scmp.ne.s32.totalorder %s14908_s26, %s14904_s5  ;;  %p585_p9 = scmp.eq.s32.totalorder %s10921_s3, 1 }
 0x181   : > { %p579_p3 = scmp.eq.s32.totalorder %s18092_s7, 1  ;;  %p89_p2 = por %p88_p0, %p87_p8 }
 0x182   : > { %s15403_s10 = scalar_select %p78_p13, %s14912_s27, %s80_s4  }
 0x183   : > { %p18093_p5 = scmp.eq.s32.totalorder %s18092_s7, 0  ;;  %p15411_p6 = por %p579_p3, %p87_p8 }
 0x184   : > { %p14357_p4 = scmp.lt.s32.totalorder %s14916_s28, 2  ;;  %s801_s0 = sand.u32 1, %s14912_s27  }
 0x185   : > { %p15407_p7 = por %p18093_p5, %p93_p1  ;;  %p15417_p10 = por %p585_p9, %p93_p1 }
 0x186   : > { %s18095_s25 = scalar_select %p15411_p6, 1, 0 }
 0x187   : > { %s18096_s24 = scalar_select %p15417_p10, 1, 0 }
 0x188   : > { %s10937_s13 = sshll.u32 %s14916_s28, 4  ;;  %s18097_s9 = sld [smem:[#allocation116_spill]] }
 0x189   : > { %s804_s30 = scalar_lea.vmem [#allocation5], %s801_s0  ;;  %p15429_p11 = pnand %p14357_p4, %p89_p2 }
 0x18a   : > { %s811_s8 = sshll.u32 %s804_s30, 4  ;;  %s802_s23 = scalar_lea.sflag [#allocation6], %s801_s0  ;;  %s15427_s8 = int_to_ptr.vmem [resolvable:$true] %s811_s8 }
 0x18b   : > { %p14794_p8 = pneg %p15429_p11 }
 0x18e   : > { %s15425_s11 = scalar_lea.hbm %s18097_s9, %s10937_s13  ;;  %s14797_s4 = scalar_lea.hbm %s18097_s9, 32 }
 0x18f   : > { %s14792_s18 = scalar_lea.hbm %s15425_s11, 16  ;;  %p14798_p1 = scmp.lt.u32.totalorder %s15425_s11, %s18097_s9 }
 0x190   : > { %p14793_p12 = scmp.ne.s32.totalorder %s15425_s11, %s14792_s18  ;;  %p14799_p3 = scmp.lt.u32.totalorder %s14797_s4, %s14792_s18 }
 0x191   : > { %p14801_p5 = scmp.lt.u32.totalorder %s14792_s18, %s15425_s11 }
 0x192   : > { %p14795_p13 = pnand %p14794_p8, %p14793_p12  ;;  %p14800_p2 = por %p14799_p3, %p14798_p1 }
 0x194   : > { %p14796_p0 = pneg %p14795_p13  ;;  %p14802_p9 = por %p14801_p5, %p14800_p2 }
 0x196   : > { %p14803_p4 = pnand %p14802_p9, %p14796_p0 }
 0x198   : > { %14806 = shalt.err (!%p14803_p4)
}
 0x199   : > { %s14807_s0 = scalar_lea.vmem %s15427_s8, 16  ;;  %s14935_s19 = smov [#allocation5]  }
 0x19a   : > { %p14808_p12 = scmp.ne.s32.totalorder %s15427_s8, %s14807_s0  ;;  %s14812_s2 = sshll.u32 %s14935_s19, 4  ;;  %s14813_s2 = int_to_ptr.vmem [resolvable:$false] %s14812_s2 }
 0x19b   : > { %s14814_s30 = scalar_lea.vmem %s14813_s2, 32  ;;  %p14815_p6 = scmp.lt.s32.totalorder %s15427_s8, %s14813_s2 }
 0x19c   : > { %p14810_p13 = pnand %p14808_p12, %p14794_p8  ;;  %p14816_p1 = scmp.lt.s32.totalorder %s14814_s30, %s14807_s0 }
 0x19e   : > { %p14811_p10 = pneg %p14810_p13  ;;  %p14817_p3 = por %p14816_p1, %p14815_p6 }
 0x1a0   : > { %p14818_p2 = pnand %p14817_p3, %p14811_p10 }
 0x1a2   : > { %14821 = shalt.err (!%p14818_p2)
}
 0x1a3   : > { %14339 = dma.hbm_to_vmem [thread:$0]  (!%p15429_p11), %s15425_s11, 16, %s15427_s8, %s802_s23  }
 0x1a4   : > { %s18099_s18 = sld [smem:[#allocation39_spill]] }
 0x1aa   : > { %p18100_p0 = scmp.ne.s32.totalorder %s18099_s18, 0 }
 0x1ac   : > { %820 = sbr.rel (%p18100_p0) target bundleno = 5766 (0x1686), region = 116 }
 0x1b3   : > { %s15461_s7 = sand.u32 1, %s14908_s26  }
 0x1b4   : > { %s823_s3 = scalar_lea.sflag [#allocation6], %s15461_s7 }
 0x1b5   : > { %14867 = dma.done.wait (%p15407_p7), %s823_s3, 16  }
 0x1b6   : > { %14869 = vsyncadd (%p15407_p7), %s823_s3, 4294967280  ;;  %s18101_s6 = sld [smem:[#allocation38_spill]] }
 0x1bc   : > { %p18102_p6 = scmp.eq.s32.totalorder %s18101_s6, 0 }
 0x1be   : > { %14871 = dma.done.wait (%p18102_p6), [#allocation9], 528   ;;  %p18103_p10 = pmov %p18102_p6 }
 0x1bf   : > { %p18104_p11 = pmov %p18102_p6 }
 0x1c0   : > { %14873 = vsyncadd (%p18103_p10), [#allocation9], 4294966768 }
 0x1c1   : > { %14875 = dma.done.wait (%p18104_p11), [#allocation12], 2320   ;;  %p18105_p8 = pmov %p18102_p6 }
 0x1c2   : > { %p18106_p5 = pmov %p18102_p6 }
 0x1c3   : > { %14877 = vsyncadd (%p18105_p8), [#allocation12], 4294964976 }
 0x1c4   : > { %14879 = dma.done.wait (%p18106_p5), [#allocation15], 2048   ;;  %p18107_p9 = pmov %p18106_p5 }
 0x1c5   : > { %p18108_p7 = pmov %p18106_p5 }
 0x1c6   : > { %14881 = vsyncadd (%p18107_p9), [#allocation15], 4294965248 }
 0x1c7   : > { %14883 = dma.done.wait (%p18108_p7), [#allocation18], 4624   ;;  %p18109_p4 = pmov %p18106_p5 }
 0x1c9   : > { %14885 = vsyncadd (%p18109_p4), [#allocation18], 4294962672  ;;  %p18110_p12 = pmov %p18109_p4 }
 0x1ca   : > { %p18111_p13 = pmov %p18109_p4 }
 0x1cb   : > { %14887 = dma.done.wait (%p18110_p12), [#allocation21], 272  }
 0x1cc   : > { %14889 = vsyncadd (%p18111_p13), [#allocation21], 4294967024  ;;  %p18112_p1 = pmov %p18109_p4 }
 0x1ce   : > { %14891 = dma.done.wait (%p18112_p1), [#allocation24], 6144   ;;  %p18113_p3 = pmov %p18112_p1 }
 0x1cf   : > { %p18114_p2 = pmov %p18112_p1 }
 0x1d0   : > { %14893 = vsyncadd (%p18113_p3), [#allocation24], 4294961152 }
 0x1d1   : > { %14895 = dma.done.wait (%p18114_p2), [#allocation27], 2048   ;;  %p18115_p0 = pmov %p18112_p1 }
 0x1d2   : > { %vm982_vm0 = vcmask 31744   ;;  %p945_p6 = scmp.lt.s32.totalorder %s18101_s6, 1  ;;  %v17894_v0 = vmov 0.0   ;;  %vm17911_vm1 = vcmask 1043456   ;;  %s18116_s29 = sld [smem:[#allocation115_spill]]  ;;  %v17893_v59 = vlaneseq }
 0x1d3   : > { %14897 = vsyncadd (%p18115_p0), [#allocation27], 4294965248  ;;  %984 = vst.msk [vmem:[#allocation2 + $0x8] sm:$0xff] %vm982_vm0, %v17894_v0  ;;  %s18117_s2 = sld [smem:[#allocation117_spill]]  ;;  %s18404_s19 = sld [smem:[#allocation118_spill]] }
 0x1d4   : > { %983 = vst.msk [vmem:[#allocation2] sm:$0xff] %vm982_vm0, %v17894_v0  ;;  %985 = vst.msk [vmem:[#allocation2 + $0x10] sm:$0xff] %vm982_vm0, %v17894_v0  ;;  %s946_s12 = scalar_select %p945_p6, %s18101_s6, 1  ;;  %v15692_v62 = vshrl.u32 %v17893_v59, 7 }
 0x1d5   : > { %986 = vst.msk [vmem:[#allocation2 + $0x118] sm:$0xff] %vm982_vm0, %v17894_v0  ;;  %987 = vst.msk [vmem:[#allocation2 + $0x120] sm:$0xff] %vm982_vm0, %v17894_v0  ;;  %s18456_s0 = sld [smem:[#allocation129_spill]]  ;;  %s18457_s3 = sld [smem:[#allocation131_spill]] }
 0x1d6   : > { %988 = vst.msk [vmem:[#allocation2 + $0x128] sm:$0xff] %vm982_vm0, %v17894_v0  ;;  %s11479_s11 = sshll.u32 %s946_s12, 8  ;;  %18139 = vst [vmem:[#allocation61_spill] sm:$0xff] %v15692_v62  ;;  %v1042_v0 = vadd.s32 160, %v15692_v62  ;;  %s18458_s12 = scalar_lea.vmem [#allocation5], %s15461_s7 }
 0x1d7   : > { %s18460_s23 = sld [smem:[#allocation130_spill]]  ;;  %s18461_s30 = sld [smem:[#allocation132_spill]] }
 0x1d8   : > { %s15514_s13 = scalar_lea.vmem %s18116_s29, %s11479_s11  ;;  %s18403_s29 = sld [smem:[#allocation120_spill]] }
 0x1d9   : > { %v10954_v1 = vld [vmem:[%s18117_s2 + $0x4] sm:$0xf]  ;;  %v1630_v2 = vld [vmem:[%s18117_s2] sm:$0xf]  ;;  %v951_v6 = vld [vmem:[%s15514_s13 + $0x8] sm:$0xff]  ;;  %s18464_s8 = sld [smem:[#allocation134_spill]] }
 0x1da   : > { %v950_v3 = vld [vmem:[%s15514_s13] sm:$0xff]  ;;  %12341 = vmatprep.subr.msk.mxu0 %vm17911_vm1, %v10954_v1  ;;  %v1631_v4 = vld [vmem:[#allocation2 + $0x8] sm:$0xff]  ;;  %990 = vst.msk [vmem:[#allocation2 + $0x20] sm:$0xff] %vm982_vm0, %v951_v6  ;;  %v952_v7 = vld [vmem:[%s15514_s13 + $0x10] sm:$0xff]  ;;  %s18465_s18 = sld [smem:[#allocation135_spill]]  ;;  %p18466_p11 = scmp.ne.s32.totalorder %s18095_s25, 0 }
 0x1db   : > { %v1632_v5 = vld [vmem:[#allocation2 + $0x10] sm:$0xff]  ;;  %989 = vst.msk [vmem:[#allocation2 + $0x18] sm:$0xff] %vm982_vm0, %v950_v3  ;;  %12342 = vmatpush3.msk.msra.mxu0 %vm17911_vm1, %v10954_v1  ;;  %12343 = vmatprep.mubr.msk.f32.mxu0 %vm982_vm0, %v1631_v4  ;;  %v953_v8 = vld [vmem:[%s15514_s13 + $0x18] sm:$0xff]  ;;  %v954_v9 = vld [vmem:[%s15514_s13 + $0x20] sm:$0xff]  ;;  %v1058_v3 = vand.u32 15, %v15692_v62  ;;  %v15705_v4 = vadd.s32 16, %v15692_v62 }
 0x1dc   : > { %12344 = vmatmul.mubr.msk.f32.vlgmr.msra.gmra.mrb[0].mxu0 %vm982_vm0, %v1632_v5  ;;  %12391 = vmatprep.subr.msk.mxu0 %vm17911_vm1, %v1630_v2  ;;  %991 = vst.msk [vmem:[#allocation2 + $0x28] sm:$0xff] %vm982_vm0, %v952_v7  ;;  %992 = vst.msk [vmem:[#allocation2 + $0x30] sm:$0xff] %vm982_vm0, %v953_v8  ;;  %v955_v10 = vld [vmem:[%s15514_s13 + $0x28] sm:$0xff]  ;;  %v956_v11 = vld [vmem:[%s15514_s13 + $0x30] sm:$0xff]  ;;  %v18145_v7 = vmov 0 }
 0x1dd   : > { %993 = vst.msk [vmem:[#allocation2 + $0x38] sm:$0xff] %vm982_vm0, %v954_v9  ;;  %v957_v12 = vld [vmem:[%s15514_s13 + $0x38] sm:$0xff]  ;;  %12392 = vmatpush3.msk.msra.mxu0 %vm17911_vm1, %v1630_v2  ;;  %994 = vst.msk [vmem:[#allocation2 + $0x40] sm:$0xff] %vm982_vm0, %v955_v10  ;;  %v958_v13 = vld [vmem:[%s15514_s13 + $0x40] sm:$0xff]  ;;  %vm15716_vm2 = vcmp.gt.s32.totalorder %v1058_v3, 0  ;;  %v1072_v9 = vand.u32 15, %v15705_v4 }
 0x1de   : > { %995 = vst.msk [vmem:[#allocation2 + $0x48] sm:$0xff] %vm982_vm0, %v956_v11  ;;  %996 = vst.msk [vmem:[#allocation2 + $0x50] sm:$0xff] %vm982_vm0, %v957_v12  ;;  %v959_v14 = vld [vmem:[%s15514_s13 + $0x48] sm:$0xff]  ;;  %v960_v15 = vld [vmem:[%s15514_s13 + $0x50] sm:$0xff]  ;;  %v18146_v7 = vsel %vm15716_vm2, 4294967295, %v18145_v7  ;;  %v15722_v10 = vadd.s32 32, %v15692_v62 }
 0x1df   : > { %997 = vst.msk [vmem:[#allocation2 + $0x58] sm:$0xff] %vm982_vm0, %v958_v13  ;;  %998 = vst.msk [vmem:[#allocation2 + $0x60] sm:$0xff] %vm982_vm0, %v959_v14  ;;  %v961_v16 = vld [vmem:[%s15514_s13 + $0x58] sm:$0xff]  ;;  %v962_v17 = vld [vmem:[%s15514_s13 + $0x60] sm:$0xff]  ;;  %vm15732_vm3 = vcmp.gt.s32.totalorder %v1072_v9, 0 }
 0x1e0   : > { %999 = vst.msk [vmem:[#allocation2 + $0x68] sm:$0xff] %vm982_vm0, %v960_v15  ;;  %v963_v18 = vld [vmem:[%s15514_s13 + $0x68] sm:$0xff]  ;;  %1000 = vst.msk [vmem:[#allocation2 + $0x70] sm:$0xff] %vm982_vm0, %v961_v16  ;;  %v964_v19 = vld [vmem:[%s15514_s13 + $0x70] sm:$0xff]  ;;  %v1086_v15 = vand.u32 15, %v15722_v10  ;;  %v15740_v16 = vadd.s32 48, %v15692_v62 }
 0x1e1   : > { %1001 = vst.msk [vmem:[#allocation2 + $0x78] sm:$0xff] %vm982_vm0, %v962_v17  ;;  %1002 = vst.msk [vmem:[#allocation2 + $0x80] sm:$0xff] %vm982_vm0, %v963_v18  ;;  %v965_v20 = vld [vmem:[%s15514_s13 + $0x78] sm:$0xff]  ;;  %v966_v21 = vld [vmem:[%s15514_s13 + $0x80] sm:$0xff] }
 0x1e2   : > { %1003 = vst.msk [vmem:[#allocation2 + $0x88] sm:$0xff] %vm982_vm0, %v964_v19  ;;  %1004 = vst.msk [vmem:[#allocation2 + $0x90] sm:$0xff] %vm982_vm0, %v965_v20  ;;  %v967_v22 = vld [vmem:[%s15514_s13 + $0x88] sm:$0xff]  ;;  %v968_v23 = vld [vmem:[%s15514_s13 + $0x90] sm:$0xff]  ;;  %vm15748_vm4 = vcmp.gt.s32.totalorder %v1086_v15, 0  ;;  %v1036_v15 = vadd.s32 112, %v15692_v62 }
 0x1e3   : > { %1005 = vst.msk [vmem:[#allocation2 + $0x98] sm:$0xff] %vm982_vm0, %v966_v21  ;;  %v969_v24 = vld [vmem:[%s15514_s13 + $0x98] sm:$0xff]  ;;  %1006 = vst.msk [vmem:[#allocation2 + $0xa0] sm:$0xff] %vm982_vm0, %v967_v22  ;;  %v970_v26 = vld [vmem:[%s15514_s13 + $0xa0] sm:$0xff]  ;;  %v1100_v21 = vand.u32 15, %v15740_v16  ;;  %v1030_v22 = vadd.s32 64, %v15692_v62 }
 0x1e4   : > { %v15565_v25 = vld [vmem:[#allocation2 + $0x18] sm:$0xff]  ;;  %1007 = vst.msk [vmem:[#allocation2 + $0xa8] sm:$0xff] %vm982_vm0, %v968_v23  ;;  %1008 = vst.msk [vmem:[#allocation2 + $0xb0] sm:$0xff] %vm982_vm0, %v969_v24  ;;  %v971_v27 = vld [vmem:[%s15514_s13 + $0xa8] sm:$0xff] }
 0x1e5   : > { %12346 = vmatprep.mubr.msk.f32.mxu0 %vm982_vm0, %v15565_v25  ;;  %v15574_v28 = vld [vmem:[#allocation2 + $0x20] sm:$0xff]  ;;  %1009 = vst.msk [vmem:[#allocation2 + $0xb8] sm:$0xff] %vm982_vm0, %v970_v26  ;;  %1010 = vst.msk [vmem:[#allocation2 + $0xc0] sm:$0xff] %vm982_vm0, %v971_v27  ;;  %v972_v29 = vld [vmem:[%s15514_s13 + $0xb0] sm:$0xff]  ;;  %vm15772_vm5 = vcmp.gt.s32.totalorder %v1100_v21, 0 }
 0x1e6   : > { %v973_v30 = vld [vmem:[%s15514_s13 + $0xb8] sm:$0xff]  ;;  %12347 = vmatmul.mubr.msk.f32.gmra.mrb[2].mxu0 %vm982_vm0, %v15574_v28  ;;  %v15582_v31 = vld [vmem:[#allocation2 + $0x28] sm:$0xff]  ;;  %1011 = vst.msk [vmem:[#allocation2 + $0xc8] sm:$0xff] %vm982_vm0, %v972_v29  ;;  %v15588_v32 = vld [vmem:[#allocation2 + $0x30] sm:$0xff] }
 0x1e7   : > { %1012 = vst.msk [vmem:[#allocation2 + $0xd0] sm:$0xff] %vm982_vm0, %v973_v30  ;;  %12349 = vmatprep.mubr.msk.f32.mxu0 %vm982_vm0, %v15582_v31  ;;  %v15590_v33 = vld [vmem:[#allocation2 + $0x38] sm:$0xff]  ;;  %v15596_v34 = vld [vmem:[#allocation2 + $0x40] sm:$0xff]  ;;  %v15598_v35 = vld [vmem:[#allocation2 + $0x48] sm:$0xff]  ;;  %v1114_v30 = vand.u32 15, %v1030_v22 }
 0x1e8   : > { %18118 = vst [vmem:[#allocation40_spill] sm:$0xff] %v15590_v33  ;;  %18119 = vst [vmem:[#allocation41_spill] sm:$0xff] %v15596_v34  ;;  %v974_v36 = vld [vmem:[%s15514_s13 + $0xc0] sm:$0xff]  ;;  %v975_v37 = vld [vmem:[%s15514_s13 + $0xc8] sm:$0xff] }
 0x1e9   : > { %18120 = vst [vmem:[#allocation42_spill] sm:$0xff] %v15598_v35  ;;  %1013 = vst.msk [vmem:[#allocation2 + $0xd8] sm:$0xff] %vm982_vm0, %v974_v36  ;;  %v976_v38 = vld [vmem:[%s15514_s13 + $0xd0] sm:$0xff]  ;;  %v977_v39 = vld [vmem:[%s15514_s13 + $0xd8] sm:$0xff]  ;;  %v1032_v36 = vadd.s32 80, %v15692_v62  ;;  %vm15787_vm6 = vcmp.gt.s32.totalorder %v1114_v30, 0 }
 0x1ea   : > { %12350 = vmatmul.mubr.msk.f32.gmra.mrb[4].mxu0 %vm982_vm0, %v15588_v32  ;;  %1014 = vst.msk [vmem:[#allocation2 + $0xe0] sm:$0xff] %vm982_vm0, %v975_v37  ;;  %v978_v40 = vld [vmem:[%s15514_s13 + $0xe0] sm:$0xff]  ;;  %v15611_v41 = vld [vmem:[#allocation2 + $0x50] sm:$0xff]  ;;  %1015 = vst.msk [vmem:[#allocation2 + $0xe8] sm:$0xff] %vm982_vm0, %v976_v38  ;;  %v1038_v30 = vadd.s32 128, %v15692_v62 }
 0x1eb   : > { %12352 = vmatprep.mubr.msk.f32.mxu0 %vm982_vm0, %v15590_v33  ;;  %18121 = vst [vmem:[#allocation43_spill] sm:$0xff] %v15611_v41  ;;  %1016 = vst.msk [vmem:[#allocation2 + $0xf0] sm:$0xff] %vm982_vm0, %v977_v39  ;;  %v979_v42 = vld [vmem:[%s15514_s13 + $0xe8] sm:$0xff]  ;;  %v15617_v43 = vld [vmem:[#allocation2 + $0x58] sm:$0xff]  ;;  %v1031_v33 = vadd.s32 72, %v15692_v62 }
 0x1ec   : > { %1017 = vst.msk [vmem:[#allocation2 + $0xf8] sm:$0xff] %vm982_vm0, %v978_v40  ;;  %18122 = vst [vmem:[#allocation44_spill] sm:$0xff] %v15617_v43  ;;  %v15623_v44 = vld [vmem:[%s18117_s2 + $0x8] sm:$0xf]  ;;  %v15631_v45 = vld [vmem:[#allocation2 + $0x60] sm:$0xff] }
 0x1ed   : > { %1018 = vst.msk [vmem:[#allocation2 + $0x100] sm:$0xff] %vm982_vm0, %v979_v42  ;;  %12441 = vmatprep.subr.msk.mxu0 %vm17911_vm1, %v15623_v44  ;;  %18123 = vst [vmem:[#allocation45_spill] sm:$0xff] %v15631_v45  ;;  %v15633_v46 = vld [vmem:[#allocation2 + $0x68] sm:$0xff]  ;;  %v15639_v47 = vld [vmem:[#allocation2 + $0x70] sm:$0xff]  ;;  %v1128_v42 = vand.u32 15, %v1032_v36 }
 0x1ee   : > { %12353 = vmatmul.mubr.msk.f32.gmra.mrb[6].mxu0 %vm982_vm0, %v15596_v34  ;;  %18124 = vst [vmem:[#allocation46_spill] sm:$0xff] %v15633_v46  ;;  %18125 = vst [vmem:[#allocation47_spill] sm:$0xff] %v15639_v47  ;;  %v15641_v48 = vld [vmem:[#allocation2 + $0x78] sm:$0xff]  ;;  %v15647_v49 = vld [vmem:[#allocation2 + $0x80] sm:$0xff]  ;;  %v16002_v34 = vadd.s32 56, %v15692_v62 }
 0x1ef   : > { %12355 = vmatprep.mubr.msk.f32.mxu0 %vm982_vm0, %v15598_v35  ;;  %18126 = vst [vmem:[#allocation48_spill] sm:$0xff] %v15641_v48  ;;  %18127 = vst [vmem:[#allocation49_spill] sm:$0xff] %v15647_v49  ;;  %v15649_v50 = vld [vmem:[#allocation2 + $0x88] sm:$0xff]  ;;  %v15655_v51 = vld [vmem:[#allocation2 + $0x90] sm:$0xff]  ;;  %vm15802_vm7 = vcmp.gt.s32.totalorder %v1128_v42, 0 }
 0x1f0   : > { %18128 = vst [vmem:[#allocation50_spill] sm:$0xff] %v15649_v50  ;;  %18129 = vst [vmem:[#allocation51_spill] sm:$0xff] %v15655_v51  ;;  %v15657_v52 = vld [vmem:[#allocation2 + $0x98] sm:$0xff]  ;;  %v15663_v53 = vld [vmem:[#allocation2 + $0xa0] sm:$0xff] }
 0x1f1   : > { %18130 = vst [vmem:[#allocation52_spill] sm:$0xff] %v15657_v52  ;;  %18131 = vst [vmem:[#allocation53_spill] sm:$0xff] %v15663_v53  ;;  %v15665_v54 = vld [vmem:[#allocation2 + $0xa8] sm:$0xff]  ;;  %v15671_v55 = vld [vmem:[#allocation2 + $0xb0] sm:$0xff] }
 0x1f2   : > { %12356 = vmatmul.mubr.msk.f32.gmra.mrb[8].mxu0 %vm982_vm0, %v15611_v41  ;;  %18132 = vst [vmem:[#allocation54_spill] sm:$0xff] %v15665_v54  ;;  %18133 = vst [vmem:[#allocation55_spill] sm:$0xff] %v15671_v55  ;;  %v15673_v56 = vld [vmem:[#allocation2 + $0xb8] sm:$0xff]  ;;  %v15679_v57 = vld [vmem:[#allocation2 + $0xc0] sm:$0xff] }
 0x1f3   : > { %12358 = vmatprep.mubr.msk.f32.mxu0 %vm982_vm0, %v15617_v43  ;;  %18134 = vst [vmem:[#allocation56_spill] sm:$0xff] %v15673_v56  ;;  %18135 = vst [vmem:[#allocation57_spill] sm:$0xff] %v15679_v57  ;;  %v15681_v58 = vld [vmem:[#allocation2 + $0xc8] sm:$0xff]  ;;  %v15687_v60 = vld [vmem:[#allocation2 + $0xd0] sm:$0xff] }
 0x1f4   : > { %18136 = vst [vmem:[#allocation58_spill] sm:$0xff] %v15681_v58  ;;  %18137 = vst [vmem:[#allocation59_spill] sm:$0xff] %v15687_v60  ;;  %v15689_v61 = vld [vmem:[#allocation2 + $0xd8] sm:$0xff]  ;;  %v15698_v63 = vld [vmem:[#allocation2 + $0xe0] sm:$0xff] }
 0x1f5   : > { %18138 = vst [vmem:[#allocation60_spill] sm:$0xff] %v15689_v61  ;;  %18140 = vst [vmem:[#allocation62_spill] sm:$0xff] %v15698_v63  ;;  %v15700_v1 = vld [vmem:[#allocation2 + $0xe8] sm:$0xff]  ;;  %v980_v2 = vld [vmem:[%s15514_s13 + $0xf0] sm:$0xff] }
 0x1f6   : > { %12359 = vmatmul.mubr.msk.f32.gmra.mrb[10].mxu0 %vm982_vm0, %v15631_v45  ;;  %18141 = vst [vmem:[#allocation63_spill] sm:$0xff] %v15700_v1  ;;  %18142 = vst [vmem:[#allocation64_spill] sm:$0xff] %v15705_v4  ;;  %v15712_v5 = vld [vmem:[#allocation2 + $0xf0] sm:$0xff]  ;;  %v15714_v6 = vld [vmem:[#allocation2 + $0xf8] sm:$0xff]  ;;  %v1044_v4 = vadd.s32 176, %v15692_v62 }
 0x1f7   : > { %12361 = vmatprep.mubr.msk.f32.mxu0 %vm982_vm0, %v15633_v46  ;;  %1019 = vst.msk [vmem:[#allocation2 + $0x108] sm:$0xff] %vm982_vm0, %v980_v2  ;;  %18143 = vst [vmem:[#allocation65_spill] sm:$0xff] %v15712_v5  ;;  %v1502_v8 = vld [vmem:[#allocation2 + $0x7] sm:$0xff]  ;;  %v15736_v14 = vld [vmem:[#allocation2 + $0x17] sm:$0xff] }
 0x1f8   : > { %18144 = vst [vmem:[#allocation66_spill] sm:$0xff] %v15714_v6  ;;  %18147 = vst [vmem:[#allocation67_spill] sm:$0xff] %v15722_v10  ;;  %v15728_v11 = vld [vmem:[#allocation2 + $0x100] sm:$0xff]  ;;  %v1598_v12 = vsel %vm15716_vm2, %v1502_v8, 0.0  ;;  %v1503_v17 = vld [vmem:[#allocation2 + $0xf] sm:$0xff]  ;;  %v1600_v18 = vsel %vm15732_vm3, %v15736_v14, 0.0 }
 0x1f9   : > { %18148 = vst [vmem:[#allocation68_spill] sm:$0xff] %v15728_v11  ;;  %18151 = vst [vmem:[#allocation69_spill] sm:$0xff] %v15740_v16  ;;  %v15752_v20 = vld [vmem:[#allocation2 + $0x27] sm:$0xff]  ;;  %v15765_v24 = vld [vmem:[#allocation2 + $0x1f] sm:$0xff] }
 0x1fa   : > { %12362 = vmatmul.mubr.msk.f32.gmra.mrb[12].mxu0 %vm982_vm0, %v15639_v47  ;;  %v15759_v23 = vld [vmem:[%s18117_s2 + $0xc] sm:$0xf]  ;;  %v1602_v26 = vsel %vm15748_vm4, %v15752_v20, 0.0  ;;  %v15776_v29 = vld [vmem:[#allocation2 + $0x37] sm:$0xff]  ;;  %v15797_v2 = vld [vmem:[#allocation2 + $0x3f] sm:$0xff]  ;;  %v15972_v47 = vadd.s32 24, %v15692_v62 }
 0x1fb   : > { %12364 = vmatprep.mubr.msk.f32.mxu0 %vm982_vm0, %v15641_v48  ;;  %v15782_v37 = vld [vmem:[#allocation2 + $0x2f] sm:$0xff]  ;;  %v1604_v38 = vsel %vm15772_vm5, %v15776_v29, 0.0  ;;  %v15791_v40 = vld [vmem:[#allocation2 + $0x47] sm:$0xff]  ;;  %v15806_v9 = vld [vmem:[#allocation2 + $0x57] sm:$0xff]  ;;  %18193 = vst [vmem:[#allocation79_spill] sm:$0xff] %v16002_v34 }
 0x1fc   : > { %v1606_v3 = vsel %vm15787_vm6, %v15791_v40, 0.0  ;;  %v15821_v22 = vld [vmem:[#allocation2 + $0x67] sm:$0xff]  ;;  %v15827_v36 = vld [vmem:[#allocation2 + $0x5f] sm:$0xff]  ;;  %v15866_v10 = vld [vmem:[#allocation2 + $0x97] sm:$0xff]  ;;  %18182 = vst [vmem:[#allocation72_spill] sm:$0xff] %v15972_v47  ;;  %v1079_v43 = vand.u32 15, %v15972_v47 }
 0x1fd   : > { %v15851_v59 = vld [vmem:[#allocation2 + $0x87] sm:$0xff]  ;;  %v15977_v46 = vld [vmem:[#allocation2 + $0xff] sm:$0xff]  ;;  %v2315_v45 = vld [vmem:[#allocation2 + $0x11] sm:$0xff]  ;;  %v4072_v13 = vsel %vm15772_vm5, %v15806_v9, 0.0  ;;  %v4074_v19 = vsel %vm15787_vm6, %v15821_v22, 0.0 }
 0x1fe   : > { %12365 = vmatmul.mubr.msk.f32.gmra.mrb[14].mxu0 %vm982_vm0, %v15647_v49  ;;  %v15958_v49 = vld [vmem:[#allocation2 + $0xf7] sm:$0xff]  ;;  %18183 = vst [vmem:[#allocation73_spill] sm:$0xff] %v15977_v46  ;;  %v15998_v35 = vld [vmem:[#allocation2 + $0x21] sm:$0xff] }
 0x1ff   : > { %12367 = vmatprep.mubr.msk.f32.mxu0 %vm982_vm0, %v15649_v50  ;;  %v15952_v50 = vadd.s32 8, %v15692_v62  ;;  %v15992_v41 = vld [vmem:[#allocation2 + $0x19] sm:$0xff]  ;;  %18192 = vst [vmem:[#allocation78_spill] sm:$0xff] %v15998_v35  ;;  %v4456_v8 = vld [vmem:[#allocation2 + $0x28] sm:$0xff] }
 0x200   : > { %18188 = vst [vmem:[#allocation76_spill] sm:$0xff] %v15992_v41  ;;  %v4460_v21 = vld [vmem:[#allocation2 + $0x48] sm:$0xff]  ;;  %v4463_v42 = vld [vmem:[#allocation2 + $0x60] sm:$0xff] }
 0x201   : > { %18178 = vst [vmem:[#allocation70_spill] sm:$0xff] %v15952_v50 }
 0x202   : > { %12368 = vmatmul.mubr.msk.f32.gmra.mrb[16].mxu0 %vm982_vm0, %v15655_v51  ;;  %v15946_v51 = vld [vmem:[#allocation2 + $0xdf] sm:$0xff] }
 0x203   : > { %12370 = vmatprep.mubr.msk.f32.mxu0 %vm982_vm0, %v15657_v52  ;;  %v15941_v52 = vld [vmem:[#allocation2 + $0xe7] sm:$0xff] }
 0x206   : > { %12371 = vmatmul.mubr.msk.f32.gmra.mrb[18].mxu0 %vm982_vm0, %v15663_v53  ;;  %v18176_v53 = vmov 0 }
 0x207   : > { %12373 = vmatprep.mubr.msk.f32.mxu0 %vm982_vm0, %v15665_v54  ;;  %v1052_v54 = vadd.s32 240, %v15692_v62 }
 0x20a   : > { %12374 = vmatmul.mubr.msk.f32.gmra.mrb[20].mxu0 %vm982_vm0, %v15671_v55  ;;  %v15926_v55 = vld [vmem:[#allocation2 + $0xd7] sm:$0xff] }
 0x20b   : > { %12376 = vmatprep.mubr.msk.f32.mxu0 %vm982_vm0, %v15673_v56 }
 0x20e   : > { %12377 = vmatmul.mubr.msk.f32.gmra.mrb[22].mxu0 %vm982_vm0, %v15679_v57  ;;  %v1050_v57 = vadd.s32 224, %v15692_v62 }
 0x20f   : > { %12379 = vmatprep.mubr.msk.f32.mxu0 %vm982_vm0, %v15681_v58  ;;  %v15911_v58 = vld [vmem:[#allocation2 + $0xc7] sm:$0xff] }
 0x212   : > { %12380 = vmatmul.mubr.msk.f32.gmra.mrb[24].mxu0 %vm982_vm0, %v15687_v60 }
 0x213   : > { %12382 = vmatprep.mubr.msk.f32.mxu0 %vm982_vm0, %v15689_v61  ;;  %v1048_v61 = vadd.s32 208, %v15692_v62 }
 0x216   : > { %12383 = vmatmul.mubr.msk.f32.gmra.mrb[26].mxu0 %vm982_vm0, %v15698_v63  ;;  %v15896_v63 = vld [vmem:[#allocation2 + $0xb7] sm:$0xff] }
 0x217   : > { %12385 = vmatprep.mubr.msk.f32.mxu0 %vm982_vm0, %v15700_v1 }
 0x21a   : > { %12386 = vmatmul.mubr.msk.f32.gmra.mrb[28].mxu0 %vm982_vm0, %v15712_v5  ;;  %v1046_v5 = vadd.s32 192, %v15692_v62 }
 0x21b   : > { %12388 = vmatprep.mubr.msk.f32.mxu0 %vm982_vm0, %v15714_v6  ;;  %v15881_v6 = vld [vmem:[#allocation2 + $0xa7] sm:$0xff] }
 0x21e   : > { %12389 = vmatmul.mubr.msk.f32.gmra.mrb[30].mxu0 %vm982_vm0, %v15728_v11 }
 0x21f   : > { %12393 = vmatprep.mubr.msk.f32.mxu0 %vm982_vm0, %v1598_v12 }
 0x222   : > { %12394 = vmatmul.mubr.msk.f32.vlgmr.msra.gmra.mrb[0].mxu0 %vm982_vm0, %v1503_v17  ;;  %v15812_v17 = vld [vmem:[#allocation2 + $0x4f] sm:$0xff] }
 0x223   : > { %12442 = vmatpush3.msk.msra.mxu0 %vm17911_vm1, %v15623_v44  ;;  %12396 = vmatprep.mubr.msk.f32.mxu0 %vm982_vm0, %v1600_v18  ;;  %v1034_v44 = vadd.s32 96, %v15692_v62  ;;  %v1608_v18 = vsel %vm15802_vm7, %v15806_v9, 0.0 }
 0x224   : > { %12491 = vmatprep.subr.msk.mxu0 %vm17911_vm1, %v15759_v23 }
 0x225   : > { %v1142_v12 = vand.u32 15, %v1034_v44  ;;  %v15836_v44 = vld [vmem:[#allocation2 + $0x77] sm:$0xff] }
 0x226   : > { %12397 = vmatmul.mubr.msk.f32.gmra.mrb[2].mxu0 %vm982_vm0, %v15765_v24 }
 0x227   : > { %12399 = vmatprep.mubr.msk.f32.mxu0 %vm982_vm0, %v1602_v26  ;;  %vm15817_vm8 = vcmp.gt.s32.totalorder %v1142_v12, 0  ;;  %v1156_v26 = vand.u32 15, %v1036_v15  ;;  %v1040_v12 = vadd.s32 144, %v15692_v62  ;;  %v15842_v15 = vld [vmem:[#allocation2 + $0x6f] sm:$0xff] }
 0x228   : > { %v4078_v27 = vsel %vm15817_vm8, %v15851_v59, 0.0 }
 0x229   : > { %vm15832_vm9 = vcmp.gt.s32.totalorder %v1156_v26, 0  ;;  %v4466_v26 = vld [vmem:[#allocation2 + $0x78] sm:$0xff] }
 0x22a   : > { %12400 = vmatmul.mubr.msk.f32.gmra.mrb[4].mxu0 %vm982_vm0, %v15782_v37 }
 0x22b   : > { %12402 = vmatprep.mubr.msk.f32.mxu0 %vm982_vm0, %v1604_v38  ;;  %v1610_v38 = vsel %vm15817_vm8, %v15821_v22, 0.0 }
 0x22e   : > { %12403 = vmatmul.mubr.msk.f32.gmra.mrb[6].mxu0 %vm982_vm0, %v15797_v2 }
 0x22f   : > { %12405 = vmatprep.mubr.msk.f32.mxu0 %vm982_vm0, %v1606_v3  ;;  %v1170_v3 = vand.u32 15, %v1038_v30  ;;  %v1184_v30 = vand.u32 15, %v1040_v12  ;;  %v1198_v12 = vand.u32 15, %v1042_v0  ;;  %v1212_v0 = vand.u32 15, %v1044_v4 }
 0x230   : > { %v1226_v4 = vand.u32 15, %v1046_v5  ;;  %v1240_v5 = vand.u32 15, %v1048_v61  ;;  %v1254_v61 = vand.u32 15, %v1050_v57  ;;  %v1268_v57 = vand.u32 15, %v1052_v54  ;;  %v981_v54 = vld [vmem:[%s15514_s13 + $0xf8] sm:$0xff]  ;;  %s944_s13 = scalar_lea.vmem [#allocation28], %s15461_s7 }
 0x231   : > { %vm15847_vm10 = vcmp.gt.s32.totalorder %v1170_v3, 0  ;;  %vm15862_vm11 = vcmp.gt.s32.totalorder %v1184_v30, 0  ;;  %vm15877_vm12 = vcmp.gt.s32.totalorder %v1198_v12, 0  ;;  %v18168_v30 = vmov 0  ;;  %1020 = vst.msk [vmem:[#allocation2 + $0x110] sm:$0xff] %vm982_vm0, %v981_v54  ;;  %v2314_v54 = vld [vmem:[#allocation2 + $0x9] sm:$0xff] }
 0x232   : > { %12406 = vmatmul.mubr.msk.f32.gmra.mrb[8].mxu0 %vm982_vm0, %v15812_v17  ;;  %v1614_v16 = vsel %vm15847_vm10, %v15851_v59, 0.0  ;;  %v1616_v11 = vsel %vm15862_vm11, %v15866_v10, 0.0  ;;  %v18169_v30 = vsel %vm15877_vm12, 4294967295, %v18168_v30  ;;  %v1618_v1 = vsel %vm15877_vm12, %v15881_v6, 0.0  ;;  %v4468_v3 = vld [vmem:[#allocation2 + $0x88] sm:$0xff] }
 0x233   : > { %12408 = vmatprep.mubr.msk.f32.mxu0 %vm982_vm0, %v1608_v18  ;;  %v1612_v18 = vsel %vm15832_vm9, %v15836_v44, 0.0  ;;  %vm15892_vm13 = vcmp.gt.s32.totalorder %v1212_v0, 0  ;;  %v18170_v12 = vmov 0  ;;  %vm15907_vm14 = vcmp.gt.s32.totalorder %v1226_v4, 0 }
 0x234   : > { %v18171_v12 = vsel %vm15892_vm13, 4294967295, %v18170_v12  ;;  %v1620_v60 = vsel %vm15892_vm13, %v15896_v63, 0.0  ;;  %v18172_v0 = vmov 0  ;;  %v1622_v56 = vsel %vm15907_vm14, %v15911_v58, 0.0 }
 0x235   : > { %v18173_v0 = vsel %vm15907_vm14, 4294967295, %v18172_v0  ;;  %vm15922_vm15 = vcmp.gt.s32.totalorder %v1240_v5, 0  ;;  %v18174_v4 = vmov 0  ;;  %vm15937_vm1 = vcmp.gt.s32.totalorder %v1254_v61, 0 }
 0x236   : > { %12409 = vmatmul.mubr.msk.f32.gmra.mrb[10].mxu0 %vm982_vm0, %v15827_v36  ;;  %v18175_v4 = vsel %vm15922_vm15, 4294967295, %v18174_v4  ;;  %v1624_v5 = vsel %vm15922_vm15, %v15926_v55, 0.0  ;;  %v18177_v53 = vsel %vm15937_vm1, 4294967295, %v18176_v53  ;;  %vm15954_vm15 = vcmp.gt.s32.totalorder %v1268_v57, 0 }
 0x237   : > { %12411 = vmatprep.mubr.msk.f32.mxu0 %vm982_vm0, %v1610_v38  ;;  %v15857_v38 = vld [vmem:[#allocation2 + $0x7f] sm:$0xff]  ;;  %v18179_v61 = vmov 0  ;;  %v1628_v48 = vsel %vm15954_vm15, %v15958_v49, 0.0  ;;  %v1065_v57 = vand.u32 15, %v15952_v50  ;;  %v15985_v50 = vadd.s32 40, %v15692_v62 }
 0x238   : > { %v18180_v61 = vsel %vm15954_vm15, 4294967295, %v18179_v61  ;;  %vm15994_vm15 = vcmp.lt.s32.totalorder %v1079_v43, 15  ;;  %v4064_v39 = vld [vmem:[#allocation2 + $0x117] sm:$0xff] }
 0x239   : > { %18181 = vst [vmem:[#allocation71_spill] sm:$0xff] %v18180_v61  ;;  %18187 = vst [vmem:[#allocation75_spill] sm:$0xff] %v15985_v50  ;;  %v1093_v47 = vand.u32 15, %v15985_v50  ;;  %v2413_v43 = vsel %vm15994_vm15, %v15998_v35, 0.0  ;;  %v18196_v50 = vmov 0  ;;  %v1121_v35 = vand.u32 15, %v1031_v33 }
 0x23a   : > { %12412 = vmatmul.mubr.msk.f32.gmra.mrb[12].mxu0 %vm982_vm0, %v15842_v15 }
 0x23b   : > { %12414 = vmatprep.mubr.msk.f32.mxu0 %vm982_vm0, %v1612_v18  ;;  %v15872_v18 = vld [vmem:[#allocation2 + $0x8f] sm:$0xff]  ;;  %vm16019_vm14 = vcmp.lt.s32.totalorder %v1093_v47, 15 }
 0x23c   : > { %v18197_v50 = vsel %vm16019_vm14, 4294967295, %v18196_v50 }
 0x23d   : > { %18198 = vst [vmem:[#allocation81_spill] sm:$0xff] %v18197_v50  ;;  %v16050_v50 = vld [vmem:[#allocation2 + $0x49] sm:$0xff] }
 0x23e   : > { %12415 = vmatmul.mubr.msk.f32.gmra.mrb[14].mxu0 %vm982_vm0, %v15857_v38  ;;  %18205 = vst [vmem:[#allocation86_spill] sm:$0xff] %v16050_v50 }
 0x23f   : > { %12417 = vmatprep.mubr.msk.f32.mxu0 %vm982_vm0, %v1614_v16  ;;  %v15887_v16 = vld [vmem:[#allocation2 + $0x9f] sm:$0xff] }
 0x242   : > { %12418 = vmatmul.mubr.msk.f32.gmra.mrb[16].mxu0 %vm982_vm0, %v15872_v18 }
 0x243   : > { %12420 = vmatprep.mubr.msk.f32.mxu0 %vm982_vm0, %v1616_v11  ;;  %v15902_v11 = vld [vmem:[#allocation2 + $0xaf] sm:$0xff] }
 0x246   : > { %12421 = vmatmul.mubr.msk.f32.gmra.mrb[18].mxu0 %vm982_vm0, %v15887_v16 }
 0x247   : > { %12423 = vmatprep.mubr.msk.f32.mxu0 %vm982_vm0, %v1618_v1  ;;  %v15917_v1 = vld [vmem:[#allocation2 + $0xbf] sm:$0xff] }
 0x24a   : > { %12424 = vmatmul.mubr.msk.f32.gmra.mrb[20].mxu0 %vm982_vm0, %v15902_v11 }
 0x24b   : > { %12426 = vmatprep.mubr.msk.f32.mxu0 %vm982_vm0, %v1620_v60  ;;  %v15932_v60 = vld [vmem:[#allocation2 + $0xcf] sm:$0xff] }
 0x24e   : > { %12427 = vmatmul.mubr.msk.f32.gmra.mrb[22].mxu0 %vm982_vm0, %v15917_v1 }
 0x24f   : > { %12429 = vmatprep.mubr.msk.f32.mxu0 %vm982_vm0, %v1622_v56  ;;  %v1626_v56 = vsel %vm15937_vm1, %v15941_v52, 0.0  ;;  %vm15979_vm1 = vcmp.lt.s32.totalorder %v1065_v57, 15  ;;  %v18189_v57 = vmov 0 }
 0x250   : > { %v18190_v57 = vsel %vm15994_vm15, 4294967295, %v18189_v57 }
 0x251   : > { %18191 = vst [vmem:[#allocation77_spill] sm:$0xff] %v18190_v57  ;;  %v18201_v57 = vmov 0 }
 0x252   : > { %12430 = vmatmul.mubr.msk.f32.gmra.mrb[24].mxu0 %vm982_vm0, %v15932_v60 }
 0x253   : > { %12432 = vmatprep.mubr.msk.f32.mxu0 %vm982_vm0, %v1624_v5  ;;  %v15965_v5 = vld [vmem:[#allocation2 + $0xef] sm:$0xff] }
 0x256   : > { %12433 = vmatmul.mubr.msk.f32.gmra.mrb[26].mxu0 %vm982_vm0, %v15946_v51 }
 0x257   : > { %12435 = vmatprep.mubr.msk.f32.mxu0 %vm982_vm0, %v1626_v56  ;;  %v18184_v56 = vmov 0 }
 0x258   : > { %v18185_v56 = vsel %vm15979_vm1, 4294967295, %v18184_v56 }
 0x259   : > { %18186 = vst [vmem:[#allocation74_spill] sm:$0xff] %v18185_v56  ;;  %v16023_v56 = vld [vmem:[#allocation2 + $0x31] sm:$0xff] }
 0x25a   : > { %12436 = vmatmul.mubr.msk.f32.gmra.mrb[28].mxu0 %vm982_vm0, %v15965_v5  ;;  %18199 = vst [vmem:[#allocation82_spill] sm:$0xff] %v16023_v56  ;;  %v2415_v47 = vsel %vm16019_vm14, %v16023_v56, 0.0  ;;  %v16056_v56 = vld [vmem:[#allocation2 + $0x51] sm:$0xff] }
 0x25b   : > { %12438 = vmatprep.mubr.msk.f32.mxu0 %vm982_vm0, %v1628_v48  ;;  %v2411_v48 = vsel %vm15979_vm1, %v2315_v45, 0.0  ;;  %vm18194_vm1 = vcmask 1043456   ;;  %v16017_v45 = vld [vmem:[#allocation2 + $0x29] sm:$0xff]  ;;  %18209 = vst [vmem:[#allocation88_spill] sm:$0xff] %v16056_v56 }
 0x25c   : > { %18195 = vst [vmem:[#allocation80_spill] sm:$0xff] %v16017_v45 }
 0x25e   : > { %12439 = vmatmul.mubr.msk.f32.gmra.mrb[30].mxu0 %vm982_vm0, %v15977_v46 }
 0x25f   : > { %12443 = vmatprep.mubr.msk.f32.mxu0 %vm982_vm0, %v2314_v54  ;;  %v16007_v54 = vld [vmem:[%s18117_s2 + $0x10] sm:$0xf] }
 0x262   : > { %12444 = vmatmul.mubr.msk.f32.vlgmr.msra.gmra.mrb[0].mxu0 %vm982_vm0, %v2411_v48  ;;  %v1107_v48 = vand.u32 15, %v16002_v34  ;;  %v16041_v34 = vld [vmem:[#allocation2 + $0x41] sm:$0xff] }
 0x263   : > { %12492 = vmatpush3.msk.msra.mxu0 %vm18194_vm1, %v15759_v23  ;;  %12446 = vmatprep.mubr.msk.f32.mxu0 %vm982_vm0, %v15992_v41  ;;  %v16035_v23 = vld [vmem:[#allocation2 + $0x39] sm:$0xff]  ;;  %18204 = vst [vmem:[#allocation85_spill] sm:$0xff] %v16041_v34  ;;  %v1033_v41 = vadd.s32 88, %v15692_v62 }
 0x264   : > { %12541 = vmatprep.subr.msk.mxu0 %vm18194_vm1, %v16007_v54  ;;  %18200 = vst [vmem:[#allocation83_spill] sm:$0xff] %v16035_v23  ;;  %vm16037_vm15 = vcmp.lt.s32.totalorder %v1107_v48, 15  ;;  %vm16052_vm1 = vcmp.lt.s32.totalorder %v1121_v35, 15  ;;  %v18206_v48 = vmov 0  ;;  %v18211_v35 = vmov 0 }
 0x265   : > { %v18202_v57 = vsel %vm16037_vm15, 4294967295, %v18201_v57  ;;  %v18207_v48 = vsel %vm16052_vm1, 4294967295, %v18206_v48  ;;  %v1135_v33 = vand.u32 15, %v1033_v41 }
 0x266   : > { %12447 = vmatmul.mubr.msk.f32.gmra.mrb[2].mxu0 %vm982_vm0, %v2413_v43  ;;  %18203 = vst [vmem:[#allocation84_spill] sm:$0xff] %v18202_v57  ;;  %v2417_v43 = vsel %vm16037_vm15, %v16041_v34, 0.0  ;;  %18208 = vst [vmem:[#allocation87_spill] sm:$0xff] %v18207_v48  ;;  %v16065_v57 = vld [vmem:[#allocation2 + $0x59] sm:$0xff]  ;;  %v16071_v34 = vld [vmem:[#allocation2 + $0x61] sm:$0xff] }
 0x267   : > { %12449 = vmatprep.mubr.msk.f32.mxu0 %vm982_vm0, %v16017_v45  ;;  %v1035_v45 = vadd.s32 104, %v15692_v62  ;;  %18210 = vst [vmem:[#allocation89_spill] sm:$0xff] %v16065_v57  ;;  %vm16067_vm15 = vcmp.lt.s32.totalorder %v1135_v33, 15  ;;  %18214 = vst [vmem:[#allocation91_spill] sm:$0xff] %v16071_v34  ;;  %v16080_v48 = vld [vmem:[#allocation2 + $0x69] sm:$0xff]  ;;  %v18216_v33 = vmov 0 }
 0x268   : > { %v18212_v35 = vsel %vm16067_vm15, 4294967295, %v18211_v35  ;;  %18215 = vst [vmem:[#allocation92_spill] sm:$0xff] %v16080_v48 }
 0x269   : > { %18213 = vst [vmem:[#allocation90_spill] sm:$0xff] %v18212_v35  ;;  %v1149_v41 = vand.u32 15, %v1035_v45  ;;  %v16095_v35 = vld [vmem:[#allocation2 + $0x79] sm:$0xff] }
 0x26a   : > { %12450 = vmatmul.mubr.msk.f32.gmra.mrb[4].mxu0 %vm982_vm0, %v2415_v47  ;;  %v2419_v47 = vsel %vm16052_vm1, %v16056_v56, 0.0  ;;  %v16086_v56 = vld [vmem:[#allocation2 + $0x71] sm:$0xff]  ;;  %18220 = vst [vmem:[#allocation95_spill] sm:$0xff] %v16095_v35 }
 0x26b   : > { %12452 = vmatprep.mubr.msk.f32.mxu0 %vm982_vm0, %v16035_v23  ;;  %v1037_v23 = vadd.s32 120, %v15692_v62  ;;  %vm16082_vm1 = vcmp.lt.s32.totalorder %v1149_v41, 15  ;;  %18219 = vst [vmem:[#allocation94_spill] sm:$0xff] %v16086_v56  ;;  %v18221_v41 = vmov 0 }
 0x26c   : > { %v18217_v33 = vsel %vm16082_vm1, 4294967295, %v18216_v33 }
 0x26d   : > { %18218 = vst [vmem:[#allocation93_spill] sm:$0xff] %v18217_v33  ;;  %v1163_v45 = vand.u32 15, %v1037_v23  ;;  %v16110_v33 = vld [vmem:[#allocation2 + $0x89] sm:$0xff] }
 0x26e   : > { %12453 = vmatmul.mubr.msk.f32.gmra.mrb[6].mxu0 %vm982_vm0, %v2417_v43  ;;  %v2421_v43 = vsel %vm16067_vm15, %v16071_v34, 0.0  ;;  %v16101_v34 = vld [vmem:[#allocation2 + $0x81] sm:$0xff]  ;;  %18225 = vst [vmem:[#allocation98_spill] sm:$0xff] %v16110_v33 }
 0x26f   : > { %12455 = vmatprep.mubr.msk.f32.mxu0 %vm982_vm0, %v16050_v50  ;;  %v1039_v50 = vadd.s32 136, %v15692_v62  ;;  %vm16097_vm15 = vcmp.lt.s32.totalorder %v1163_v45, 15  ;;  %18224 = vst [vmem:[#allocation97_spill] sm:$0xff] %v16101_v34  ;;  %v18226_v45 = vmov 0 }
 0x270   : > { %v18222_v41 = vsel %vm16097_vm15, 4294967295, %v18221_v41 }
 0x271   : > { %18223 = vst [vmem:[#allocation96_spill] sm:$0xff] %v18222_v41  ;;  %v1177_v23 = vand.u32 15, %v1039_v50  ;;  %v16125_v41 = vld [vmem:[#allocation2 + $0x99] sm:$0xff] }
 0x272   : > { %12456 = vmatmul.mubr.msk.f32.gmra.mrb[8].mxu0 %vm982_vm0, %v2419_v47  ;;  %v2423_v47 = vsel %vm16082_vm1, %v16086_v56, 0.0  ;;  %v16116_v56 = vld [vmem:[#allocation2 + $0x91] sm:$0xff]  ;;  %18230 = vst [vmem:[#allocation101_spill] sm:$0xff] %v16125_v41 }
 0x273   : > { %12458 = vmatprep.mubr.msk.f32.mxu0 %vm982_vm0, %v16065_v57  ;;  %v1041_v57 = vadd.s32 152, %v15692_v62  ;;  %vm16112_vm1 = vcmp.lt.s32.totalorder %v1177_v23, 15  ;;  %18229 = vst [vmem:[#allocation100_spill] sm:$0xff] %v16116_v56  ;;  %v18231_v23 = vmov 0 }
 0x274   : > { %v18227_v45 = vsel %vm16112_vm1, 4294967295, %v18226_v45 }
 0x275   : > { %18228 = vst [vmem:[#allocation99_spill] sm:$0xff] %v18227_v45  ;;  %v1191_v50 = vand.u32 15, %v1041_v57  ;;  %v16140_v45 = vld [vmem:[#allocation2 + $0xa9] sm:$0xff] }
 0x276   : > { %12459 = vmatmul.mubr.msk.f32.gmra.mrb[10].mxu0 %vm982_vm0, %v2421_v43  ;;  %v2425_v43 = vsel %vm16097_vm15, %v16101_v34, 0.0  ;;  %v16131_v34 = vld [vmem:[#allocation2 + $0xa1] sm:$0xff]  ;;  %18235 = vst [vmem:[#allocation104_spill] sm:$0xff] %v16140_v45 }
 0x277   : > { %12461 = vmatprep.mubr.msk.f32.mxu0 %vm982_vm0, %v16080_v48  ;;  %v1043_v48 = vadd.s32 168, %v15692_v62  ;;  %vm16127_vm15 = vcmp.lt.s32.totalorder %v1191_v50, 15  ;;  %18234 = vst [vmem:[#allocation103_spill] sm:$0xff] %v16131_v34  ;;  %v18236_v50 = vmov 0 }
 0x278   : > { %v18232_v23 = vsel %vm16127_vm15, 4294967295, %v18231_v23 }
 0x279   : > { %18233 = vst [vmem:[#allocation102_spill] sm:$0xff] %v18232_v23  ;;  %v1205_v57 = vand.u32 15, %v1043_v48  ;;  %v16155_v23 = vld [vmem:[#allocation2 + $0xb9] sm:$0xff] }
 0x27a   : > { %12462 = vmatmul.mubr.msk.f32.gmra.mrb[12].mxu0 %vm982_vm0, %v2423_v47  ;;  %v2427_v47 = vsel %vm16112_vm1, %v16116_v56, 0.0  ;;  %v16146_v56 = vld [vmem:[#allocation2 + $0xb1] sm:$0xff]  ;;  %18240 = vst [vmem:[#allocation107_spill] sm:$0xff] %v16155_v23 }
 0x27b   : > { %12464 = vmatprep.mubr.msk.f32.mxu0 %vm982_vm0, %v16095_v35  ;;  %v1045_v35 = vadd.s32 184, %v15692_v62  ;;  %vm16142_vm1 = vcmp.lt.s32.totalorder %v1205_v57, 15  ;;  %18239 = vst [vmem:[#allocation106_spill] sm:$0xff] %v16146_v56  ;;  %v18241_v57 = vmov 0 }
 0x27c   : > { %v18237_v50 = vsel %vm16142_vm1, 4294967295, %v18236_v50 }
 0x27d   : > { %18238 = vst [vmem:[#allocation105_spill] sm:$0xff] %v18237_v50  ;;  %v1219_v48 = vand.u32 15, %v1045_v35  ;;  %v16170_v50 = vld [vmem:[#allocation2 + $0xc9] sm:$0xff] }
 0x27e   : > { %12465 = vmatmul.mubr.msk.f32.gmra.mrb[14].mxu0 %vm982_vm0, %v2425_v43  ;;  %v2429_v43 = vsel %vm16127_vm15, %v16131_v34, 0.0  ;;  %v16161_v34 = vld [vmem:[#allocation2 + $0xc1] sm:$0xff] }
 0x27f   : > { %12467 = vmatprep.mubr.msk.f32.mxu0 %vm982_vm0, %v16110_v33  ;;  %v1047_v33 = vadd.s32 200, %v15692_v62  ;;  %vm16157_vm15 = vcmp.lt.s32.totalorder %v1219_v48, 15  ;;  %18244 = vst [vmem:[#allocation109_spill] sm:$0xff] %v16161_v34  ;;  %v18245_v48 = vmov 0 }
 0x280   : > { %v18242_v57 = vsel %vm16157_vm15, 4294967295, %v18241_v57 }
 0x281   : > { %18243 = vst [vmem:[#allocation108_spill] sm:$0xff] %v18242_v57  ;;  %v1233_v35 = vand.u32 15, %v1047_v33  ;;  %v16185_v57 = vld [vmem:[#allocation2 + $0xd9] sm:$0xff] }
 0x282   : > { %12468 = vmatmul.mubr.msk.f32.gmra.mrb[16].mxu0 %vm982_vm0, %v2427_v47  ;;  %v2431_v47 = vsel %vm16142_vm1, %v16146_v56, 0.0  ;;  %v16176_v56 = vld [vmem:[#allocation2 + $0xd1] sm:$0xff] }
 0x283   : > { %12470 = vmatprep.mubr.msk.f32.mxu0 %vm982_vm0, %v16125_v41  ;;  %v1049_v41 = vadd.s32 216, %v15692_v62  ;;  %vm16172_vm1 = vcmp.lt.s32.totalorder %v1233_v35, 15  ;;  %18248 = vst [vmem:[#allocation111_spill] sm:$0xff] %v16176_v56  ;;  %v18249_v35 = vmov 0 }
 0x284   : > { %v18246_v48 = vsel %vm16172_vm1, 4294967295, %v18245_v48 }
 0x285   : > { %18247 = vst [vmem:[#allocation110_spill] sm:$0xff] %v18246_v48  ;;  %v1247_v33 = vand.u32 15, %v1049_v41  ;;  %v16200_v48 = vld [vmem:[#allocation2 + $0xe9] sm:$0xff] }
 0x286   : > { %12471 = vmatmul.mubr.msk.f32.gmra.mrb[18].mxu0 %vm982_vm0, %v2429_v43  ;;  %v2433_v43 = vsel %vm16157_vm15, %v16161_v34, 0.0  ;;  %v16191_v34 = vld [vmem:[#allocation2 + $0xe1] sm:$0xff] }
 0x287   : > { %12473 = vmatprep.mubr.msk.f32.mxu0 %vm982_vm0, %v16140_v45  ;;  %v1051_v45 = vadd.s32 232, %v15692_v62  ;;  %vm16187_vm15 = vcmp.lt.s32.totalorder %v1247_v33, 15  ;;  %v18252_v33 = vmov 0 }
 0x288   : > { %v18250_v35 = vsel %vm16187_vm15, 4294967295, %v18249_v35 }
 0x289   : > { %18251 = vst [vmem:[#allocation112_spill] sm:$0xff] %v18250_v35  ;;  %v1261_v41 = vand.u32 15, %v1051_v45  ;;  %v18255_v35 = vmov 0 }
 0x28a   : > { %12474 = vmatmul.mubr.msk.f32.gmra.mrb[20].mxu0 %vm982_vm0, %v2431_v47  ;;  %v2435_v47 = vsel %vm16172_vm1, %v16176_v56, 0.0  ;;  %v16206_v56 = vld [vmem:[#allocation2 + $0xf1] sm:$0xff] }
 0x28b   : > { %12476 = vmatprep.mubr.msk.f32.mxu0 %vm982_vm0, %v16155_v23  ;;  %v1053_v23 = vadd.s32 248, %v15692_v62  ;;  %vm16202_vm1 = vcmp.lt.s32.totalorder %v1261_v41, 15  ;;  %v16214_v62 = vld [vmem:[#allocation2 + $0xf9] sm:$0xff]  ;;  %v16220_v41 = vld [vmem:[#allocation2 + $0x101] sm:$0xff] }
 0x28c   : > { %v18253_v33 = vsel %vm16202_vm1, 4294967295, %v18252_v33 }
 0x28d   : > { %18254 = vst [vmem:[#allocation113_spill] sm:$0xff] %v18253_v33  ;;  %v1275_v45 = vand.u32 15, %v1053_v23  ;;  %v4068_v33 = vsel %vm15732_vm3, %v15776_v29, 0.0 }
 0x28e   : > { %12477 = vmatmul.mubr.msk.f32.gmra.mrb[22].mxu0 %vm982_vm0, %v2433_v43  ;;  %v2437_v43 = vsel %vm16187_vm15, %v16191_v34, 0.0 }
 0x28f   : > { %12479 = vmatprep.mubr.msk.f32.mxu0 %vm982_vm0, %v16170_v50  ;;  %vm16216_vm15 = vcmp.lt.s32.totalorder %v1275_v45, 15  ;;  %v2834_v45 = vsel %vm15732_vm3, %v15752_v20, 0.0  ;;  %vm18349_vm3 = vnez %v18169_v30  ;;  %v4470_v30 = vld [vmem:[#allocation2 + $0x98] sm:$0xff] }
 0x290   : > { %v18256_v35 = vsel %vm16216_vm15, 4294967295, %v18255_v35  ;;  %v2441_v23 = vsel %vm16216_vm15, %v16220_v41, 0.0  ;;  %vm18257_vm15 = vcmask 1043456  }
 0x292   : > { %12480 = vmatmul.mubr.msk.f32.gmra.mrb[24].mxu0 %vm982_vm0, %v2435_v47  ;;  %v2439_v47 = vsel %vm16202_vm1, %v16206_v56, 0.0 }
 0x293   : > { %12482 = vmatprep.mubr.msk.f32.mxu0 %vm982_vm0, %v16185_v57 }
 0x296   : > { %12483 = vmatmul.mubr.msk.f32.gmra.mrb[26].mxu0 %vm982_vm0, %v2437_v43  ;;  %v2832_v43 = vsel %vm15716_vm2, %v15736_v14, 0.0  ;;  %v2836_v14 = vsel %vm15748_vm4, %v15776_v29, 0.0  ;;  %vm18258_vm2 = vmmov %vm18257_vm15  ;;  %v4080_v29 = vsel %vm15832_vm9, %v15866_v10, 0.0 }
 0x297   : > { %12485 = vmatprep.mubr.msk.f32.mxu0 %vm982_vm0, %v16200_v48 }
 0x29a   : > { %12486 = vmatmul.mubr.msk.f32.gmra.mrb[28].mxu0 %vm982_vm0, %v2439_v47  ;;  %v11123_v47 = vld [vmem:[%s18117_s2 + $0x14] sm:$0xf] }
 0x29b   : > { %12488 = vmatprep.mubr.msk.f32.mxu0 %vm982_vm0, %v16214_v62 }
 0x29e   : > { %12489 = vmatmul.mubr.msk.f32.gmra.mrb[30].mxu0 %vm982_vm0, %v2441_v23  ;;  %v2842_v23 = vsel %vm15802_vm7, %v15821_v22, 0.0  ;;  %v4461_v22 = vld [vmem:[#allocation2 + $0x50] sm:$0xff] }
 0x29f   : > { %12493 = vmatprep.mubr.msk.f32.mxu0 %vm982_vm0, %v2832_v43  ;;  %v2844_v43 = vsel %vm15817_vm8, %v15836_v44, 0.0 }
 0x2a2   : > { %12494 = vmatmul.mubr.msk.f32.vlgmr.msra.gmra.mrb[0].mxu0 %vm982_vm0, %v15765_v24  ;;  %v2838_v24 = vsel %vm15772_vm5, %v15791_v40, 0.0  ;;  %vm18351_vm5 = vnez %v18173_v0 }
 0x2a3   : > { %12542 = vmatpush3.msk.msra.mxu0 %vm18257_vm15, %v16007_v54  ;;  %12496 = vmatprep.mubr.msk.f32.mxu0 %vm982_vm0, %v2834_v45  ;;  %v2840_v54 = vsel %vm15787_vm6, %v15806_v9, 0.0  ;;  %v2846_v45 = vsel %vm15832_vm9, %v15851_v59, 0.0  ;;  %vm18260_vm15 = vnez %v18175_v4  ;;  %v4084_v59 = vsel %vm15862_vm11, %v15896_v63, 0.0  ;;  %v4458_v9 = vld [vmem:[#allocation2 + $0x38] sm:$0xff] }
 0x2a4   : > { %12591 = vmatprep.subr.msk.mxu0 %vm18258_vm2, %v11123_v47  ;;  %vm18259_vm2 = vnez %v18173_v0  ;;  %vm18352_vm6 = vnez %v18175_v4  ;;  %v4474_v0 = vld [vmem:[#allocation2 + $0xb8] sm:$0xff]  ;;  %v4476_v4 = vld [vmem:[#allocation2 + $0xc8] sm:$0xff] }
 0x2a6   : > { %12497 = vmatmul.mubr.msk.f32.gmra.mrb[2].mxu0 %vm982_vm0, %v15782_v37 }
 0x2a7   : > { %12499 = vmatprep.mubr.msk.f32.mxu0 %vm982_vm0, %v2836_v14  ;;  %v2848_v14 = vsel %vm15847_vm10, %v15866_v10, 0.0  ;;  %v4086_v10 = vsel %vm18349_vm3, %v15911_v58, 0.0 }
 0x2aa   : > { %12500 = vmatmul.mubr.msk.f32.gmra.mrb[4].mxu0 %vm982_vm0, %v15797_v2 }
 0x2ab   : > { %12502 = vmatprep.mubr.msk.f32.mxu0 %vm982_vm0, %v2838_v24  ;;  %v2850_v24 = vsel %vm15862_vm11, %v15881_v6, 0.0 }
 0x2ae   : > { %12503 = vmatmul.mubr.msk.f32.gmra.mrb[6].mxu0 %vm982_vm0, %v15812_v17 }
 0x2af   : > { %12505 = vmatprep.mubr.msk.f32.mxu0 %vm982_vm0, %v2840_v54  ;;  %v2852_v54 = vsel %vm15877_vm12, %v15896_v63, 0.0  ;;  %v4090_v63 = vsel %vm18351_vm5, %v15941_v52, 0.0 }
 0x2b2   : > { %12506 = vmatmul.mubr.msk.f32.gmra.mrb[8].mxu0 %vm982_vm0, %v15827_v36 }
 0x2b3   : > { %12508 = vmatprep.mubr.msk.f32.mxu0 %vm982_vm0, %v2842_v23  ;;  %v2854_v23 = vsel %vm15892_vm13, %v15911_v58, 0.0  ;;  %vm18261_vm13 = vnez %v18177_v53  ;;  %v4092_v58 = vsel %vm18352_vm6, %v15958_v49, 0.0 }
 0x2b6   : > { %12509 = vmatmul.mubr.msk.f32.gmra.mrb[10].mxu0 %vm982_vm0, %v15842_v15 }
 0x2b7   : > { %12511 = vmatprep.mubr.msk.f32.mxu0 %vm982_vm0, %v2844_v43  ;;  %v2856_v43 = vsel %vm18259_vm2, %v15926_v55, 0.0  ;;  %vm18262_vm2 = vnez %v18180_v61  ;;  %v18308_v61 = vld [vmem:[#allocation84_spill] sm:$0xff] }
 0x2ba   : > { %12512 = vmatmul.mubr.msk.f32.gmra.mrb[12].mxu0 %vm982_vm0, %v15857_v38 }
 0x2bb   : > { %12514 = vmatprep.mubr.msk.f32.mxu0 %vm982_vm0, %v2846_v45  ;;  %v2858_v45 = vsel %vm18260_vm15, %v15941_v52, 0.0  ;;  %v18354_v52 = vld [vmem:[#allocation73_spill] sm:$0xff] }
 0x2be   : > { %12515 = vmatmul.mubr.msk.f32.gmra.mrb[14].mxu0 %vm982_vm0, %v15872_v18 }
 0x2bf   : > { %12517 = vmatprep.mubr.msk.f32.mxu0 %vm982_vm0, %v2848_v14  ;;  %v2860_v14 = vsel %vm18261_vm13, %v15958_v49, 0.0  ;;  %v4065_v49 = vld [vmem:[#allocation2 + $0x11f] sm:$0xff] }
 0x2c2   : > { %12518 = vmatmul.mubr.msk.f32.gmra.mrb[16].mxu0 %vm982_vm0, %v15887_v16 }
 0x2c3   : > { %12520 = vmatprep.mubr.msk.f32.mxu0 %vm982_vm0, %v2850_v24  ;;  %v16320_v24 = vld [vmem:[#allocation2 + $0x107] sm:$0xff] }
 0x2c6   : > { %12521 = vmatmul.mubr.msk.f32.gmra.mrb[18].mxu0 %vm982_vm0, %v15902_v11 }
 0x2c7   : > { %12523 = vmatprep.mubr.msk.f32.mxu0 %vm982_vm0, %v2852_v54  ;;  %v2862_v54 = vsel %vm18262_vm2, %v16320_v24, 0.0  ;;  %vm18264_vm2 = vcmask 1043456  }
 0x2c8   : > { %vm18265_vm13 = vmmov %vm18264_vm2 }
 0x2c9   : > { %vm18302_vm12 = vmmov %vm18264_vm2 }
 0x2ca   : > { %12524 = vmatmul.mubr.msk.f32.gmra.mrb[20].mxu0 %vm982_vm0, %v15917_v1 }
 0x2cb   : > { %12526 = vmatprep.mubr.msk.f32.mxu0 %vm982_vm0, %v2854_v23  ;;  %v16331_v23 = vld [vmem:[#allocation2 + $0x10f] sm:$0xff] }
 0x2cc   : > { %18263 = vst [vmem:[#allocation114_spill] sm:$0xff] %v16331_v23 }
 0x2ce   : > { %12527 = vmatmul.mubr.msk.f32.gmra.mrb[22].mxu0 %vm982_vm0, %v15932_v60 }
 0x2cf   : > { %12529 = vmatprep.mubr.msk.f32.mxu0 %vm982_vm0, %v2856_v43  ;;  %v11157_v43 = vld [vmem:[%s18117_s2 + $0x18] sm:$0xf] }
 0x2d2   : > { %12530 = vmatmul.mubr.msk.f32.gmra.mrb[24].mxu0 %vm982_vm0, %v15946_v51 }
 0x2d3   : > { %12532 = vmatprep.mubr.msk.f32.mxu0 %vm982_vm0, %v2858_v45  ;;  %v18266_v45 = vld [vmem:[#allocation40_spill] sm:$0xff] }
 0x2d6   : > { %12533 = vmatmul.mubr.msk.f32.gmra.mrb[26].mxu0 %vm982_vm0, %v15965_v5 }
 0x2d7   : > { %12535 = vmatprep.mubr.msk.f32.mxu0 %vm982_vm0, %v2860_v14  ;;  %v18268_v14 = vld [vmem:[#allocation42_spill] sm:$0xff] }
 0x2da   : > { %12536 = vmatmul.mubr.msk.f32.gmra.mrb[28].mxu0 %vm982_vm0, %v15977_v46 }
 0x2db   : > { %12538 = vmatprep.mubr.msk.f32.mxu0 %vm982_vm0, %v2862_v54  ;;  %v18272_v54 = vld [vmem:[#allocation46_spill] sm:$0xff] }
 0x2de   : > { %12539 = vmatmul.mubr.msk.f32.gmra.mrb[30].mxu0 %vm982_vm0, %v16331_v23 }
 0x2df   : > { %12543 = vmatprep.mubr.msk.f32.mxu0 %vm982_vm0, %v15565_v25  ;;  %v18267_v25 = vld [vmem:[#allocation41_spill] sm:$0xff] }
 0x2e2   : > { %12544 = vmatmul.mubr.msk.f32.vlgmr.msra.gmra.mrb[0].mxu0 %vm982_vm0, %v15574_v28  ;;  %v18269_v28 = vld [vmem:[#allocation43_spill] sm:$0xff] }
 0x2e3   : > { %12592 = vmatpush3.msk.msra.mxu0 %vm18264_vm2, %v11123_v47  ;;  %12546 = vmatprep.mubr.msk.f32.mxu0 %vm982_vm0, %v15582_v31  ;;  %v18270_v47 = vld [vmem:[#allocation44_spill] sm:$0xff]  ;;  %v18271_v31 = vld [vmem:[#allocation45_spill] sm:$0xff] }
 0x2e4   : > { %12641 = vmatprep.subr.msk.mxu0 %vm18265_vm13, %v11157_v43 }
 0x2e6   : > { %12547 = vmatmul.mubr.msk.f32.gmra.mrb[2].mxu0 %vm982_vm0, %v15588_v32  ;;  %v18273_v32 = vld [vmem:[#allocation47_spill] sm:$0xff] }
 0x2e7   : > { %12549 = vmatprep.mubr.msk.f32.mxu0 %vm982_vm0, %v18266_v45  ;;  %v18274_v45 = vld [vmem:[#allocation48_spill] sm:$0xff] }
 0x2ea   : > { %12550 = vmatmul.mubr.msk.f32.gmra.mrb[4].mxu0 %vm982_vm0, %v18267_v25  ;;  %v18275_v25 = vld [vmem:[#allocation49_spill] sm:$0xff] }
 0x2eb   : > { %12552 = vmatprep.mubr.msk.f32.mxu0 %vm982_vm0, %v18268_v14  ;;  %v18276_v14 = vld [vmem:[#allocation50_spill] sm:$0xff] }
 0x2ee   : > { %12553 = vmatmul.mubr.msk.f32.gmra.mrb[6].mxu0 %vm982_vm0, %v18269_v28  ;;  %v18277_v28 = vld [vmem:[#allocation51_spill] sm:$0xff] }
 0x2ef   : > { %12555 = vmatprep.mubr.msk.f32.mxu0 %vm982_vm0, %v18270_v47  ;;  %v18278_v47 = vld [vmem:[#allocation52_spill] sm:$0xff] }
 0x2f2   : > { %12556 = vmatmul.mubr.msk.f32.gmra.mrb[8].mxu0 %vm982_vm0, %v18271_v31  ;;  %v18279_v31 = vld [vmem:[#allocation53_spill] sm:$0xff] }
 0x2f3   : > { %12558 = vmatprep.mubr.msk.f32.mxu0 %vm982_vm0, %v18272_v54  ;;  %v18280_v54 = vld [vmem:[#allocation54_spill] sm:$0xff] }
 0x2f6   : > { %12559 = vmatmul.mubr.msk.f32.gmra.mrb[10].mxu0 %vm982_vm0, %v18273_v32  ;;  %v18281_v32 = vld [vmem:[#allocation55_spill] sm:$0xff] }
 0x2f7   : > { %12561 = vmatprep.mubr.msk.f32.mxu0 %vm982_vm0, %v18274_v45  ;;  %v18282_v45 = vld [vmem:[#allocation56_spill] sm:$0xff] }
 0x2fa   : > { %12562 = vmatmul.mubr.msk.f32.gmra.mrb[12].mxu0 %vm982_vm0, %v18275_v25  ;;  %v18283_v25 = vld [vmem:[#allocation57_spill] sm:$0xff] }
 0x2fb   : > { %12564 = vmatprep.mubr.msk.f32.mxu0 %vm982_vm0, %v18276_v14  ;;  %v18284_v14 = vld [vmem:[#allocation58_spill] sm:$0xff] }
 0x2fe   : > { %12565 = vmatmul.mubr.msk.f32.gmra.mrb[14].mxu0 %vm982_vm0, %v18277_v28  ;;  %v18285_v28 = vld [vmem:[#allocation59_spill] sm:$0xff] }
 0x2ff   : > { %12567 = vmatprep.mubr.msk.f32.mxu0 %vm982_vm0, %v18278_v47  ;;  %v18286_v47 = vld [vmem:[#allocation60_spill] sm:$0xff] }
 0x302   : > { %12568 = vmatmul.mubr.msk.f32.gmra.mrb[16].mxu0 %vm982_vm0, %v18279_v31  ;;  %v18287_v31 = vld [vmem:[#allocation62_spill] sm:$0xff] }
 0x303   : > { %12570 = vmatprep.mubr.msk.f32.mxu0 %vm982_vm0, %v18280_v54  ;;  %v18288_v54 = vld [vmem:[#allocation63_spill] sm:$0xff] }
 0x306   : > { %12571 = vmatmul.mubr.msk.f32.gmra.mrb[18].mxu0 %vm982_vm0, %v18281_v32  ;;  %v18289_v32 = vld [vmem:[#allocation65_spill] sm:$0xff] }
 0x307   : > { %12573 = vmatprep.mubr.msk.f32.mxu0 %vm982_vm0, %v18282_v45  ;;  %v18290_v45 = vld [vmem:[#allocation66_spill] sm:$0xff] }
 0x30a   : > { %12574 = vmatmul.mubr.msk.f32.gmra.mrb[20].mxu0 %vm982_vm0, %v18283_v25  ;;  %v16398_v25 = vld [vmem:[#allocation2 + $0x108] sm:$0xff] }
 0x30b   : > { %12576 = vmatprep.mubr.msk.f32.mxu0 %vm982_vm0, %v18284_v14  ;;  %18291 = vst [vmem:[#allocation40_spill] sm:$0xff] %v16398_v25  ;;  %v18292_v14 = vld [vmem:[#allocation68_spill] sm:$0xff] }
 0x30e   : > { %12577 = vmatmul.mubr.msk.f32.gmra.mrb[22].mxu0 %vm982_vm0, %v18285_v28  ;;  %v16404_v28 = vld [vmem:[#allocation2 + $0x110] sm:$0xff] }
 0x30f   : > { %12579 = vmatprep.mubr.msk.f32.mxu0 %vm982_vm0, %v18286_v47  ;;  %18293 = vst [vmem:[#allocation41_spill] sm:$0xff] %v16404_v28  ;;  %v18294_v47 = vld [vmem:[#allocation76_spill] sm:$0xff] }
 0x312   : > { %12580 = vmatmul.mubr.msk.f32.gmra.mrb[24].mxu0 %vm982_vm0, %v18287_v31  ;;  %v18295_v31 = vld [vmem:[#allocation78_spill] sm:$0xff] }
 0x313   : > { %12582 = vmatprep.mubr.msk.f32.mxu0 %vm982_vm0, %v18288_v54  ;;  %v18296_v54 = vld [vmem:[#allocation74_spill] sm:$0xff] }
 0x314   : > { %vm18297_vm13 = vnez %v18296_v54  ;;  %v18314_v54 = vld [vmem:[#allocation92_spill] sm:$0xff] }
 0x316   : > { %12583 = vmatmul.mubr.msk.f32.gmra.mrb[26].mxu0 %vm982_vm0, %v18289_v32  ;;  %v3645_v32 = vsel %vm18297_vm13, %v18295_v31, 0.0  ;;  %v18304_v31 = vld [vmem:[#allocation85_spill] sm:$0xff] }
 0x317   : > { %12585 = vmatprep.mubr.msk.f32.mxu0 %vm982_vm0, %v18290_v45  ;;  %v11191_v45 = vld [vmem:[%s18117_s2 + $0x1c] sm:$0xf] }
 0x31a   : > { %12586 = vmatmul.mubr.msk.f32.gmra.mrb[28].mxu0 %vm982_vm0, %v18292_v14  ;;  %v18298_v14 = vld [vmem:[#allocation80_spill] sm:$0xff] }
 0x31b   : > { %12588 = vmatprep.mubr.msk.f32.mxu0 %vm982_vm0, %v16398_v25  ;;  %v18299_v25 = vld [vmem:[#allocation82_spill] sm:$0xff] }
 0x31e   : > { %12589 = vmatmul.mubr.msk.f32.gmra.mrb[30].mxu0 %vm982_vm0, %v16404_v28  ;;  %v18300_v28 = vld [vmem:[#allocation77_spill] sm:$0xff] }
 0x31f   : > { %12593 = vmatprep.mubr.msk.f32.mxu0 %vm982_vm0, %v18294_v47  ;;  %vm18301_vm15 = vnez %v18300_v28  ;;  %v18303_v47 = vld [vmem:[#allocation83_spill] sm:$0xff] }
 0x320   : > { %v3647_v23 = vsel %vm18301_vm15, %v18299_v25, 0.0  ;;  %v18310_v25 = vld [vmem:[#allocation89_spill] sm:$0xff] }
 0x322   : > { %12594 = vmatmul.mubr.msk.f32.vlgmr.msra.gmra.mrb[0].mxu0 %vm982_vm0, %v3645_v32  ;;  %v3649_v32 = vsel %vm16019_vm14, %v18304_v31, 0.0 }
 0x323   : > { %12642 = vmatpush3.msk.msra.mxu0 %vm18264_vm2, %v11157_v43  ;;  %12596 = vmatprep.mubr.msk.f32.mxu0 %vm982_vm0, %v18298_v14  ;;  %v18306_v43 = vld [vmem:[#allocation86_spill] sm:$0xff]  ;;  %v18307_v14 = vld [vmem:[#allocation88_spill] sm:$0xff]  ;;  %vm18309_vm2 = vnez %v18308_v61  ;;  %v18318_v61 = vld [vmem:[#allocation95_spill] sm:$0xff] }
 0x324   : > { %12691 = vmatprep.subr.msk.mxu0 %vm18302_vm12, %v11191_v45  ;;  %v3651_v28 = vsel %vm18309_vm2, %v18307_v14, 0.0 }
 0x326   : > { %12597 = vmatmul.mubr.msk.f32.gmra.mrb[2].mxu0 %vm982_vm0, %v3647_v23  ;;  %v18311_v23 = vld [vmem:[#allocation91_spill] sm:$0xff] }
 0x327   : > { %12599 = vmatprep.mubr.msk.f32.mxu0 %vm982_vm0, %v18303_v47  ;;  %v18312_v47 = vld [vmem:[#allocation87_spill] sm:$0xff] }
 0x328   : > { %vm18313_vm12 = vnez %v18312_v47  ;;  %v18322_v47 = vld [vmem:[#allocation98_spill] sm:$0xff] }
 0x329   : > { %v3653_v46 = vsel %vm18313_vm12, %v18311_v23, 0.0 }
 0x32a   : > { %12600 = vmatmul.mubr.msk.f32.gmra.mrb[4].mxu0 %vm982_vm0, %v3649_v32  ;;  %v18315_v32 = vld [vmem:[#allocation94_spill] sm:$0xff] }
 0x32b   : > { %12602 = vmatprep.mubr.msk.f32.mxu0 %vm982_vm0, %v18306_v43  ;;  %v18316_v43 = vld [vmem:[#allocation90_spill] sm:$0xff] }
 0x32c   : > { %vm18317_vm14 = vnez %v18316_v43  ;;  %v18326_v43 = vld [vmem:[#allocation101_spill] sm:$0xff] }
 0x32d   : > { %v3655_v31 = vsel %vm18317_vm14, %v18315_v32, 0.0 }
 0x32e   : > { %12603 = vmatmul.mubr.msk.f32.gmra.mrb[6].mxu0 %vm982_vm0, %v3651_v28  ;;  %v18319_v28 = vld [vmem:[#allocation97_spill] sm:$0xff] }
 0x32f   : > { %12605 = vmatprep.mubr.msk.f32.mxu0 %vm982_vm0, %v18310_v25  ;;  %v18320_v25 = vld [vmem:[#allocation93_spill] sm:$0xff] }
 0x330   : > { %vm18321_vm2 = vnez %v18320_v25  ;;  %v18330_v25 = vld [vmem:[#allocation104_spill] sm:$0xff] }
 0x331   : > { %v3657_v14 = vsel %vm18321_vm2, %v18319_v28, 0.0 }
 0x332   : > { %12606 = vmatmul.mubr.msk.f32.gmra.mrb[8].mxu0 %vm982_vm0, %v3653_v46  ;;  %v18323_v46 = vld [vmem:[#allocation100_spill] sm:$0xff] }
 0x333   : > { %12608 = vmatprep.mubr.msk.f32.mxu0 %vm982_vm0, %v18314_v54  ;;  %v18324_v54 = vld [vmem:[#allocation96_spill] sm:$0xff] }
 0x334   : > { %vm18325_vm12 = vnez %v18324_v54  ;;  %v18334_v54 = vld [vmem:[#allocation107_spill] sm:$0xff] }
 0x335   : > { %v3659_v23 = vsel %vm18325_vm12, %v18323_v46, 0.0 }
 0x336   : > { %12609 = vmatmul.mubr.msk.f32.gmra.mrb[10].mxu0 %vm982_vm0, %v3655_v31  ;;  %v18327_v31 = vld [vmem:[#allocation103_spill] sm:$0xff] }
 0x337   : > { %12611 = vmatprep.mubr.msk.f32.mxu0 %vm982_vm0, %v18318_v61  ;;  %v18328_v61 = vld [vmem:[#allocation99_spill] sm:$0xff] }
 0x338   : > { %vm18329_vm14 = vnez %v18328_v61  ;;  %v18339_v61 = vld [vmem:[#allocation108_spill] sm:$0xff] }
 0x339   : > { %v3661_v32 = vsel %vm18329_vm14, %v18327_v31, 0.0  ;;  %vm18340_vm14 = vnez %v18339_v61  ;;  %v16504_v61 = vld [vmem:[#allocation2 + $0x111] sm:$0xff] }
 0x33a   : > { %12612 = vmatmul.mubr.msk.f32.gmra.mrb[12].mxu0 %vm982_vm0, %v3657_v14  ;;  %v18331_v14 = vld [vmem:[#allocation106_spill] sm:$0xff] }
 0x33b   : > { %12614 = vmatprep.mubr.msk.f32.mxu0 %vm982_vm0, %v18322_v47  ;;  %v18332_v47 = vld [vmem:[#allocation102_spill] sm:$0xff] }
 0x33c   : > { %vm18333_vm2 = vnez %v18332_v47 }
 0x33d   : > { %v3663_v28 = vsel %vm18333_vm2, %v18331_v14, 0.0 }
 0x33e   : > { %12615 = vmatmul.mubr.msk.f32.gmra.mrb[14].mxu0 %vm982_vm0, %v3659_v23  ;;  %v18335_v23 = vld [vmem:[#allocation109_spill] sm:$0xff] }
 0x33f   : > { %12617 = vmatprep.mubr.msk.f32.mxu0 %vm982_vm0, %v18326_v43  ;;  %v18336_v43 = vld [vmem:[#allocation105_spill] sm:$0xff] }
 0x340   : > { %vm18337_vm12 = vnez %v18336_v43 }
 0x341   : > { %v3665_v46 = vsel %vm18337_vm12, %v18335_v23, 0.0 }
 0x342   : > { %12618 = vmatmul.mubr.msk.f32.gmra.mrb[16].mxu0 %vm982_vm0, %v3661_v32  ;;  %v18338_v32 = vld [vmem:[#allocation111_spill] sm:$0xff] }
 0x343   : > { %12620 = vmatprep.mubr.msk.f32.mxu0 %vm982_vm0, %v18330_v25  ;;  %v3667_v25 = vsel %vm18340_vm14, %v18338_v32, 0.0 }
 0x346   : > { %12621 = vmatmul.mubr.msk.f32.gmra.mrb[18].mxu0 %vm982_vm0, %v3663_v28  ;;  %v18341_v28 = vld [vmem:[#allocation110_spill] sm:$0xff] }
 0x347   : > { %12623 = vmatprep.mubr.msk.f32.mxu0 %vm982_vm0, %v18334_v54  ;;  %vm18342_vm2 = vnez %v18341_v28  ;;  %v16502_v28 = vld [vmem:[#allocation2 + $0x109] sm:$0xff] }
 0x348   : > { %v3669_v47 = vsel %vm18342_vm2, %v16191_v34, 0.0  ;;  %vm18346_vm2 = vnez %v18146_v7  ;;  %v4070_v7 = vsel %vm15748_vm4, %v15791_v40, 0.0  ;;  %vm18350_vm4 = vnez %v18171_v12  ;;  %v4472_v12 = vld [vmem:[#allocation2 + $0xa8] sm:$0xff] }
 0x34a   : > { %12624 = vmatmul.mubr.msk.f32.gmra.mrb[20].mxu0 %vm982_vm0, %v3665_v46  ;;  %v18343_v46 = vld [vmem:[#allocation112_spill] sm:$0xff] }
 0x34b   : > { %12626 = vmatprep.mubr.msk.f32.mxu0 %vm982_vm0, %v16170_v50  ;;  %vm18344_vm12 = vnez %v18343_v46 }
 0x34c   : > { %v3671_v43 = vsel %vm18344_vm12, %v16206_v56, 0.0  ;;  %vm18345_vm12 = vnez %v18256_v35 }
 0x34e   : > { %12627 = vmatmul.mubr.msk.f32.gmra.mrb[22].mxu0 %vm982_vm0, %v3667_v25  ;;  %v3673_v25 = vsel %vm16202_vm1, %v16220_v41, 0.0 }
 0x34f   : > { %12629 = vmatprep.mubr.msk.f32.mxu0 %vm982_vm0, %v16185_v57 }
 0x352   : > { %12630 = vmatmul.mubr.msk.f32.gmra.mrb[24].mxu0 %vm982_vm0, %v3669_v47  ;;  %v3675_v47 = vsel %vm18345_vm12, %v16504_v61, 0.0  ;;  %vm18347_vm12 = vcmask 1043456  }
 0x353   : > { %12632 = vmatprep.mubr.msk.f32.mxu0 %vm982_vm0, %v16200_v48 }
 0x356   : > { %12633 = vmatmul.mubr.msk.f32.gmra.mrb[26].mxu0 %vm982_vm0, %v3671_v43  ;;  %v4066_v43 = vsel %vm18346_vm2, %v15752_v20, 0.0  ;;  %vm18348_vm2 = vmmov %vm18347_vm12  ;;  %v4076_v20 = vsel %vm15802_vm7, %v15836_v44, 0.0  ;;  %vm18353_vm7 = vnez %v18177_v53  ;;  %v4457_v53 = vld [vmem:[#allocation2 + $0x30] sm:$0xff]  ;;  %v4464_v44 = vld [vmem:[#allocation2 + $0x68] sm:$0xff] }
 0x357   : > { %12635 = vmatprep.mubr.msk.f32.mxu0 %vm982_vm0, %v16214_v62  ;;  %vm18358_vm9 = vmmov %vm18348_vm2 }
 0x35a   : > { %12636 = vmatmul.mubr.msk.f32.gmra.mrb[28].mxu0 %vm982_vm0, %v3673_v25  ;;  %v11225_v25 = vld [vmem:[%s18117_s2 + $0x20] sm:$0xf] }
 0x35b   : > { %12638 = vmatprep.mubr.msk.f32.mxu0 %vm982_vm0, %v16502_v28 }
 0x35e   : > { %12639 = vmatmul.mubr.msk.f32.gmra.mrb[30].mxu0 %vm982_vm0, %v3675_v47  ;;  %v4482_v47 = vld [vmem:[#allocation2 + $0xf8] sm:$0xff] }
 0x35f   : > { %12643 = vmatprep.mubr.msk.f32.mxu0 %vm982_vm0, %v4066_v43  ;;  %v4483_v43 = vld [vmem:[#allocation2 + $0x100] sm:$0xff] }
 0x362   : > { %12644 = vmatmul.mubr.msk.f32.vlgmr.msra.gmra.mrb[0].mxu0 %vm982_vm0, %v15782_v37  ;;  %v4082_v37 = vsel %vm15847_vm10, %v15881_v6, 0.0  ;;  %v4088_v6 = vsel %vm18350_vm4, %v15926_v55, 0.0  ;;  %v4094_v55 = vsel %vm18353_vm7, %v16320_v24, 0.0  ;;  %v4480_v24 = vld [vmem:[#allocation2 + $0xe8] sm:$0xff]  ;;  %vm18400_vm7 = vnez %v18343_v46 }
 0x363   : > { %12692 = vmatpush3.msk.msra.mxu0 %vm18347_vm12, %v11191_v45  ;;  %12646 = vmatprep.mubr.msk.f32.mxu0 %vm982_vm0, %v4068_v33  ;;  %v4479_v33 = vld [vmem:[#allocation2 + $0xe0] sm:$0xff]  ;;  %v4481_v45 = vld [vmem:[#allocation2 + $0xf0] sm:$0xff] }
 0x364   : > { %12741 = vmatprep.subr.msk.mxu0 %vm18348_vm2, %v11225_v25 }
 0x366   : > { %12647 = vmatmul.mubr.msk.f32.gmra.mrb[2].mxu0 %vm982_vm0, %v15797_v2  ;;  %v18357_v2 = vld [vmem:[#allocation114_spill] sm:$0xff] }
 0x367   : > { %12649 = vmatprep.mubr.msk.f32.mxu0 %vm982_vm0, %v4070_v7  ;;  %v4486_v7 = vld [vmem:[#allocation2 + $0x118] sm:$0xff] }
 0x36a   : > { %12650 = vmatmul.mubr.msk.f32.gmra.mrb[4].mxu0 %vm982_vm0, %v15812_v17  ;;  %v4459_v17 = vld [vmem:[#allocation2 + $0x40] sm:$0xff] }
 0x36b   : > { %12652 = vmatprep.mubr.msk.f32.mxu0 %vm982_vm0, %v4072_v13  ;;  %v18360_v13 = vld [vmem:[#allocation41_spill] sm:$0xff] }
 0x36e   : > { %12653 = vmatmul.mubr.msk.f32.gmra.mrb[6].mxu0 %vm982_vm0, %v15827_v36  ;;  %v4462_v36 = vld [vmem:[#allocation2 + $0x58] sm:$0xff] }
 0x36f   : > { %12655 = vmatprep.mubr.msk.f32.mxu0 %vm982_vm0, %v4074_v19  ;;  %v4487_v19 = vld [vmem:[#allocation2 + $0x120] sm:$0xff] }
 0x372   : > { %12656 = vmatmul.mubr.msk.f32.gmra.mrb[8].mxu0 %vm982_vm0, %v15842_v15  ;;  %v4465_v15 = vld [vmem:[#allocation2 + $0x70] sm:$0xff] }
 0x373   : > { %12658 = vmatprep.mubr.msk.f32.mxu0 %vm982_vm0, %v4076_v20  ;;  %v18361_v20 = vld [vmem:[#allocation80_spill] sm:$0xff] }
 0x376   : > { %12659 = vmatmul.mubr.msk.f32.gmra.mrb[10].mxu0 %vm982_vm0, %v15857_v38  ;;  %v4467_v38 = vld [vmem:[#allocation2 + $0x80] sm:$0xff] }
 0x377   : > { %12661 = vmatprep.mubr.msk.f32.mxu0 %vm982_vm0, %v4078_v27  ;;  %v18362_v27 = vld [vmem:[#allocation82_spill] sm:$0xff] }
 0x37a   : > { %12662 = vmatmul.mubr.msk.f32.gmra.mrb[12].mxu0 %vm982_vm0, %v15872_v18  ;;  %v4469_v18 = vld [vmem:[#allocation2 + $0x90] sm:$0xff] }
 0x37b   : > { %12664 = vmatprep.mubr.msk.f32.mxu0 %vm982_vm0, %v4080_v29 }
 0x37e   : > { %12665 = vmatmul.mubr.msk.f32.gmra.mrb[14].mxu0 %vm982_vm0, %v15887_v16  ;;  %v4471_v16 = vld [vmem:[#allocation2 + $0xa0] sm:$0xff] }
 0x37f   : > { %12667 = vmatprep.mubr.msk.f32.mxu0 %vm982_vm0, %v4082_v37  ;;  %v4879_v37 = vsel %vm18297_vm13, %v18362_v27, 0.0 }
 0x382   : > { %12668 = vmatmul.mubr.msk.f32.gmra.mrb[16].mxu0 %vm982_vm0, %v15902_v11  ;;  %v4473_v11 = vld [vmem:[#allocation2 + $0xb0] sm:$0xff] }
 0x383   : > { %12670 = vmatprep.mubr.msk.f32.mxu0 %vm982_vm0, %v4084_v59  ;;  %v18364_v59 = vld [vmem:[#allocation83_spill] sm:$0xff] }
 0x386   : > { %12671 = vmatmul.mubr.msk.f32.gmra.mrb[18].mxu0 %vm982_vm0, %v15917_v1  ;;  %v4475_v1 = vld [vmem:[#allocation2 + $0xc0] sm:$0xff] }
 0x387   : > { %12673 = vmatprep.mubr.msk.f32.mxu0 %vm982_vm0, %v4086_v10  ;;  %v18365_v10 = vld [vmem:[#allocation85_spill] sm:$0xff] }
 0x38a   : > { %12674 = vmatmul.mubr.msk.f32.gmra.mrb[20].mxu0 %vm982_vm0, %v15932_v60  ;;  %v4477_v60 = vld [vmem:[#allocation2 + $0xd0] sm:$0xff] }
 0x38b   : > { %12676 = vmatprep.mubr.msk.f32.mxu0 %vm982_vm0, %v4088_v6 }
 0x38e   : > { %12677 = vmatmul.mubr.msk.f32.gmra.mrb[22].mxu0 %vm982_vm0, %v15946_v51  ;;  %v18355_v51 = vld [vmem:[#allocation71_spill] sm:$0xff] }
 0x38f   : > { %12679 = vmatprep.mubr.msk.f32.mxu0 %vm982_vm0, %v4090_v63  ;;  %vm18356_vm8 = vnez %v18355_v51  ;;  %v4881_v63 = vsel %vm18301_vm15, %v18365_v10, 0.0  ;;  %v18371_v51 = vld [vmem:[#allocation89_spill] sm:$0xff] }
 0x390   : > { %v4096_v40 = vsel %vm18356_vm8, %v4064_v39, 0.0  ;;  %v18369_v39 = vld [vmem:[#allocation81_spill] sm:$0xff] }
 0x391   : > { %vm18370_vm10 = vnez %v18369_v39 }
 0x392   : > { %12680 = vmatmul.mubr.msk.f32.gmra.mrb[24].mxu0 %vm982_vm0, %v15965_v5  ;;  %v4478_v5 = vld [vmem:[#allocation2 + $0xd8] sm:$0xff] }
 0x393   : > { %12682 = vmatprep.mubr.msk.f32.mxu0 %vm982_vm0, %v4092_v58  ;;  %v18367_v58 = vld [vmem:[#allocation86_spill] sm:$0xff] }
 0x396   : > { %12683 = vmatmul.mubr.msk.f32.gmra.mrb[26].mxu0 %vm982_vm0, %v18354_v52 }
 0x397   : > { %12685 = vmatprep.mubr.msk.f32.mxu0 %vm982_vm0, %v4094_v55  ;;  %v18368_v55 = vld [vmem:[#allocation88_spill] sm:$0xff] }
 0x398   : > { %v4883_v52 = vsel %vm18370_vm10, %v18368_v55, 0.0 }
 0x39a   : > { %12686 = vmatmul.mubr.msk.f32.gmra.mrb[28].mxu0 %vm982_vm0, %v18357_v2  ;;  %v18373_v2 = vld [vmem:[#allocation84_spill] sm:$0xff] }
 0x39b   : > { %12688 = vmatprep.mubr.msk.f32.mxu0 %vm982_vm0, %v4096_v40  ;;  %v18372_v40 = vld [vmem:[#allocation91_spill] sm:$0xff]  ;;  %vm18374_vm11 = vnez %v18373_v2 }
 0x39e   : > { %12689 = vmatmul.mubr.msk.f32.gmra.mrb[30].mxu0 %vm982_vm0, %v4065_v49  ;;  %v4885_v49 = vsel %vm18374_vm11, %v18372_v40, 0.0 }
 0x39f   : > { %12693 = vmatprep.mubr.msk.f32.mxu0 %vm982_vm0, %v4456_v8  ;;  %v18375_v8 = vld [vmem:[#allocation92_spill] sm:$0xff] }
 0x3a2   : > { %12694 = vmatmul.mubr.msk.f32.vlgmr.msra.gmra.mrb[0].mxu0 %vm982_vm0, %v4457_v53  ;;  %v18376_v53 = vld [vmem:[#allocation94_spill] sm:$0xff] }
 0x3a3   : > { %12742 = vmatpush3.msk.msra.mxu0 %vm18358_vm9, %v11225_v25  ;;  %12696 = vmatprep.mubr.msk.f32.mxu0 %vm982_vm0, %v4458_v9  ;;  %v18359_v25 = vld [vmem:[#allocation40_spill] sm:$0xff]  ;;  %v18377_v9 = vld [vmem:[#allocation87_spill] sm:$0xff] }
 0x3a4   : > { %vm18378_vm15 = vnez %v18377_v9 }
 0x3a6   : > { %12697 = vmatmul.mubr.msk.f32.gmra.mrb[2].mxu0 %vm982_vm0, %v4459_v17  ;;  %v4887_v17 = vsel %vm18378_vm15, %v18376_v53, 0.0 }
 0x3a7   : > { %12699 = vmatprep.mubr.msk.f32.mxu0 %vm982_vm0, %v4460_v21  ;;  %v18379_v21 = vld [vmem:[#allocation95_spill] sm:$0xff] }
 0x3aa   : > { %12700 = vmatmul.mubr.msk.f32.gmra.mrb[4].mxu0 %vm982_vm0, %v4461_v22  ;;  %v18380_v22 = vld [vmem:[#allocation97_spill] sm:$0xff] }
 0x3ab   : > { %12702 = vmatprep.mubr.msk.f32.mxu0 %vm982_vm0, %v4462_v36  ;;  %v18381_v36 = vld [vmem:[#allocation90_spill] sm:$0xff] }
 0x3ac   : > { %vm18382_vm13 = vnez %v18381_v36 }
 0x3ae   : > { %12703 = vmatmul.mubr.msk.f32.gmra.mrb[6].mxu0 %vm982_vm0, %v4463_v42  ;;  %v4889_v42 = vsel %vm18382_vm13, %v18380_v22, 0.0 }
 0x3af   : > { %12705 = vmatprep.mubr.msk.f32.mxu0 %vm982_vm0, %v4464_v44  ;;  %v18383_v44 = vld [vmem:[#allocation98_spill] sm:$0xff] }
 0x3b2   : > { %12706 = vmatmul.mubr.msk.f32.gmra.mrb[8].mxu0 %vm982_vm0, %v4465_v15  ;;  %v18384_v15 = vld [vmem:[#allocation100_spill] sm:$0xff] }
 0x3b3   : > { %12708 = vmatprep.mubr.msk.f32.mxu0 %vm982_vm0, %v4466_v26  ;;  %v18385_v26 = vld [vmem:[#allocation93_spill] sm:$0xff] }
 0x3b4   : > { %vm18386_vm12 = vnez %v18385_v26 }
 0x3b6   : > { %12709 = vmatmul.mubr.msk.f32.gmra.mrb[10].mxu0 %vm982_vm0, %v4467_v38  ;;  %v4891_v38 = vsel %vm18386_vm12, %v18384_v15, 0.0 }
 0x3b7   : > { %12711 = vmatprep.mubr.msk.f32.mxu0 %vm982_vm0, %v4468_v3  ;;  %v18387_v3 = vld [vmem:[#allocation101_spill] sm:$0xff] }
 0x3ba   : > { %12712 = vmatmul.mubr.msk.f32.gmra.mrb[12].mxu0 %vm982_vm0, %v4469_v18  ;;  %v18388_v18 = vld [vmem:[#allocation96_spill] sm:$0xff] }
 0x3bb   : > { %12714 = vmatprep.mubr.msk.f32.mxu0 %vm982_vm0, %v4470_v30  ;;  %vm18389_vm2 = vnez %v18388_v18 }
 0x3bc   : > { %v4893_v30 = vsel %vm18389_vm2, %v18327_v31, 0.0  ;;  %v18395_v31 = vld [vmem:[#allocation105_spill] sm:$0xff] }
 0x3bd   : > { %vm18396_vm5 = vnez %v18395_v31 }
 0x3be   : > { %12715 = vmatmul.mubr.msk.f32.gmra.mrb[14].mxu0 %vm982_vm0, %v4471_v16  ;;  %v18390_v16 = vld [vmem:[#allocation104_spill] sm:$0xff] }
 0x3bf   : > { %12717 = vmatprep.mubr.msk.f32.mxu0 %vm982_vm0, %v4472_v12  ;;  %v18391_v12 = vld [vmem:[#allocation99_spill] sm:$0xff] }
 0x3c0   : > { %vm18392_vm3 = vnez %v18391_v12 }
 0x3c2   : > { %12718 = vmatmul.mubr.msk.f32.gmra.mrb[16].mxu0 %vm982_vm0, %v4473_v11  ;;  %v4895_v11 = vsel %vm18392_vm3, %v18331_v14, 0.0  ;;  %v4901_v14 = vsel %vm18340_vm14, %v16191_v34, 0.0  ;;  %vm18402_vm14 = vnez %v18256_v35 }
 0x3c3   : > { %12720 = vmatprep.mubr.msk.f32.mxu0 %vm982_vm0, %v4474_v0  ;;  %v18393_v0 = vld [vmem:[#allocation102_spill] sm:$0xff] }
 0x3c4   : > { %vm18394_vm4 = vnez %v18393_v0 }
 0x3c6   : > { %12721 = vmatmul.mubr.msk.f32.gmra.mrb[18].mxu0 %vm982_vm0, %v4475_v1  ;;  %v4897_v1 = vsel %vm18394_vm4, %v18335_v23, 0.0 }
 0x3c7   : > { %12723 = vmatprep.mubr.msk.f32.mxu0 %vm982_vm0, %v4476_v4  ;;  %v4899_v4 = vsel %vm18396_vm5, %v18338_v32, 0.0  ;;  %v4876_v32 = vld [vmem:[#allocation2 + $0x119] sm:$0xff] }
 0x3ca   : > { %12724 = vmatmul.mubr.msk.f32.gmra.mrb[20].mxu0 %vm982_vm0, %v4477_v60 }
 0x3cb   : > { %12726 = vmatprep.mubr.msk.f32.mxu0 %vm982_vm0, %v4478_v5 }
 0x3ce   : > { %12727 = vmatmul.mubr.msk.f32.gmra.mrb[22].mxu0 %vm982_vm0, %v4479_v33 }
 0x3cf   : > { %12729 = vmatprep.mubr.msk.f32.mxu0 %vm982_vm0, %v4480_v24 }
 0x3d2   : > { %12730 = vmatmul.mubr.msk.f32.gmra.mrb[24].mxu0 %vm982_vm0, %v4481_v45 }
 0x3d3   : > { %12732 = vmatprep.mubr.msk.f32.mxu0 %vm982_vm0, %v4482_v47 }
 0x3d6   : > { %12733 = vmatmul.mubr.msk.f32.gmra.mrb[26].mxu0 %vm982_vm0, %v4483_v43 }
 0x3d7   : > { %12735 = vmatprep.mubr.msk.f32.mxu0 %vm982_vm0, %v18359_v25 }
 0x3da   : > { %12736 = vmatmul.mubr.msk.f32.gmra.mrb[28].mxu0 %vm982_vm0, %v18360_v13 }
 0x3db   : > { %12738 = vmatprep.mubr.msk.f32.mxu0 %vm982_vm0, %v4486_v7 }
 0x3de   : > { %12739 = vmatmul.mubr.msk.f32.gmra.mrb[30].mxu0 %vm982_vm0, %v4487_v19 }
 0x3df   : > { %12743 = vmatprep.mubr.msk.f32.mxu0 %vm982_vm0, %v18361_v20 }
 0x3e2   : > { %12744 = vmatmul.mubr.msk.f32.vlgmr.msra.gmra.mrb[0].mxu0 %vm982_vm0, %v4879_v37 }
 0x3e3   : > { %12746 = vmatprep.mubr.msk.f32.mxu0 %vm982_vm0, %v18364_v59 }
 0x3e6   : > { %12747 = vmatmul.mubr.msk.f32.gmra.mrb[2].mxu0 %vm982_vm0, %v4881_v63 }
 0x3e7   : > { %12749 = vmatprep.mubr.msk.f32.mxu0 %vm982_vm0, %v18367_v58 }
 0x3ea   : > { %12750 = vmatmul.mubr.msk.f32.gmra.mrb[4].mxu0 %vm982_vm0, %v4883_v52 }
 0x3eb   : > { %12752 = vmatprep.mubr.msk.f32.mxu0 %vm982_vm0, %v18371_v51 }
 0x3ee   : > { %12753 = vmatmul.mubr.msk.f32.gmra.mrb[6].mxu0 %vm982_vm0, %v4885_v49 }
 0x3ef   : > { %12755 = vmatprep.mubr.msk.f32.mxu0 %vm982_vm0, %v18375_v8 }
 0x3f2   : > { %12756 = vmatmul.mubr.msk.f32.gmra.mrb[8].mxu0 %vm982_vm0, %v4887_v17 }
 0x3f3   : > { %12758 = vmatprep.mubr.msk.f32.mxu0 %vm982_vm0, %v18379_v21 }
 0x3f6   : > { %12759 = vmatmul.mubr.msk.f32.gmra.mrb[10].mxu0 %vm982_vm0, %v4889_v42 }
 0x3f7   : > { %12761 = vmatprep.mubr.msk.f32.mxu0 %vm982_vm0, %v18383_v44 }
 0x3fa   : > { %12762 = vmatmul.mubr.msk.f32.gmra.mrb[12].mxu0 %vm982_vm0, %v4891_v38 }
 0x3fb   : > { %12764 = vmatprep.mubr.msk.f32.mxu0 %vm982_vm0, %v18387_v3 }
 0x3fe   : > { %12765 = vmatmul.mubr.msk.f32.gmra.mrb[14].mxu0 %vm982_vm0, %v4893_v30 }
 0x3ff   : > { %12767 = vmatprep.mubr.msk.f32.mxu0 %vm982_vm0, %v18390_v16 }
 0x402   : > { %12768 = vmatmul.mubr.msk.f32.gmra.mrb[16].mxu0 %vm982_vm0, %v4895_v11 }
 0x403   : > { %12770 = vmatprep.mubr.msk.f32.mxu0 %vm982_vm0, %v18334_v54 }
 0x406   : > { %12771 = vmatmul.mubr.msk.f32.gmra.mrb[18].mxu0 %vm982_vm0, %v4897_v1 }
 0x407   : > { %12773 = vmatprep.mubr.msk.f32.mxu0 %vm982_vm0, %v16170_v50  ;;  %v18398_v50 = vld [vmem:[#allocation110_spill] sm:$0xff] }
 0x408   : > { %vm18399_vm6 = vnez %v18398_v50 }
 0x409   : > { %v4903_v23 = vsel %vm18399_vm6, %v16206_v56, 0.0  ;;  %v4877_v56 = vld [vmem:[#allocation2 + $0x121] sm:$0xff] }
 0x40a   : > { %12774 = vmatmul.mubr.msk.f32.gmra.mrb[20].mxu0 %vm982_vm0, %v4899_v4 }
 0x40b   : > { %12776 = vmatprep.mubr.msk.f32.mxu0 %vm982_vm0, %v16185_v57  ;;  %v4905_v57 = vsel %vm18400_vm7, %v16220_v41, 0.0  ;;  %v5340_v41 = vld [vmem:[%s18403_s29 + $0x8] sm:$0xff] }
 0x40c   : > { %5419 = vmatprep.mubr.f32.mxu1 %v5340_v41 }
 0x40e   : > { %12777 = vmatmul.mubr.msk.f32.gmra.mrb[22].mxu0 %vm982_vm0, %v4901_v14 }
 0x40f   : > { %12779 = vmatprep.mubr.msk.f32.mxu0 %vm982_vm0, %v16200_v48  ;;  %v4907_v48 = vsel %vm16202_vm1, %v16504_v61, 0.0  ;;  %v16747_v61 = vld [vmem:[%s18404_s19] ss:$0 sm:$0xff]  ;;  %vm6389_vm1 = vcmask 130048   ;;  %s10722_s19 = sshll.u32 %s944_s13, 4  ;;  %s17804_s19 = int_to_ptr.vmem [resolvable:$true] %s10722_s19 }
 0x410   : > { %s14822_s11 = scalar_lea.vmem %s17804_s19, 16 }
 0x411   : > { %p14823_p10 = scmp.ne.s32.totalorder %s17804_s19, %s14822_s11 }
 0x412   : > { %12780 = vmatmul.mubr.msk.f32.gmra.mrb[24].mxu0 %vm982_vm0, %v4903_v23 }
 0x413   : > { %12782 = vmatprep.mubr.msk.f32.mxu0 %vm982_vm0, %v16214_v62  ;;  %v4909_v62 = vsel %vm18402_vm14, %v4877_v56, 0.0  ;;  %p14824_p8 = pnand %p14823_p10, %p18466_p11 }
 0x415   : > { %p14825_p5 = pneg %p14824_p8 }
 0x416   : > { %12783 = vmatmul.mubr.msk.f32.gmra.mrb[26].mxu0 %vm982_vm0, %v4905_v57 }
 0x417   : > { %12785 = vmatprep.mubr.msk.f32.mxu0 %vm982_vm0, %v16502_v28 }
 0x41a   : > { %12786 = vmatmul.mubr.msk.f32.gmra.mrb[28].mxu0 %vm982_vm0, %v4907_v48 }
 0x41b   : > { %12788 = vmatprep.mubr.msk.f32.mxu0 %vm982_vm0, %v4876_v32 }
 0x41e   : > { %12789 = vmatmul.mubr.msk.f32.gmra.mrb[30].mxu0 %vm982_vm0, %v4909_v62  ;;  %vm18051_vm0 = vcmask 64512  }
 0x4b5   : > { %v12745_v28 = vpop.f32.mrb[0].mxu0 }
 0x4b6   : > { %v5276_v46 = vadd.f32 %v12745_v28, %v16747_v61  ;;  %v5077_v60 = vpop.f32.mrb[1].mxu0 }
 0x4b7   : > { %v5275_v5 = vadd.f32 %v16747_v61, %v5077_v60 }
 0x4b8   : > { %v5308_v35 = vmax.f32 %v5276_v46, 0.0 }
 0x4b9   : > { %v5307_v33 = vmax.f32 %v5275_v5, 0.0  ;;  %v12748_v24 = vpop.f32.mrb[2].mxu0 }
 0x4ba   : > { %v5278_v45 = vadd.f32 %v12748_v24, %v16747_v61  ;;  %v5087_v47 = vpop.f32.mrb[3].mxu0 }
 0x4bb   : > { %v16752_v43 = vpack.c.bf16 %v5308_v35, %v5307_v33  ;;  %v5277_v25 = vadd.f32 %v16747_v61, %v5087_v47 }
 0x4bc   : > { %v5310_v7 = vmax.f32 %v5278_v45, 0.0 }
 0x4bd   : > { %v5309_v13 = vmax.f32 %v5277_v25, 0.0  ;;  %v12751_v19 = vpop.f32.mrb[4].mxu0 }
 0x4be   : > { %v5280_v20 = vadd.f32 %v12751_v19, %v16747_v61  ;;  %v5097_v27 = vpop.f32.mrb[5].mxu0 }
 0x4bf   : > { %v16756_v29 = vpack.c.bf16 %v5310_v7, %v5309_v13  ;;  %v5279_v37 = vadd.f32 %v16747_v61, %v5097_v27 }
 0x4c0   : > { %v5312_v59 = vmax.f32 %v5280_v20, 0.0 }
 0x4c1   : > { %v5311_v10 = vmax.f32 %v5279_v37, 0.0  ;;  %v12754_v6 = vpop.f32.mrb[6].mxu0 }
 0x4c2   : > { %v5282_v63 = vadd.f32 %v12754_v6, %v16747_v61  ;;  %v5107_v58 = vpop.f32.mrb[7].mxu0 }
 0x4c3   : > { %v16760_v55 = vpack.c.bf16 %v5312_v59, %v5311_v10  ;;  %v5281_v39 = vadd.f32 %v16747_v61, %v5107_v58 }
 0x4c4   : > { %v5314_v52 = vmax.f32 %v5282_v63, 0.0 }
 0x4c5   : > { %v5313_v51 = vmax.f32 %v5281_v39, 0.0  ;;  %v12757_v40 = vpop.f32.mrb[8].mxu0 }
 0x4c6   : > { %v5284_v2 = vadd.f32 %v12757_v40, %v16747_v61  ;;  %v5117_v49 = vpop.f32.mrb[9].mxu0 }
 0x4c7   : > { %v16764_v8 = vpack.c.bf16 %v5314_v52, %v5313_v51  ;;  %v5283_v53 = vadd.f32 %v16747_v61, %v5117_v49 }
 0x4c8   : > { %v5316_v9 = vmax.f32 %v5284_v2, 0.0 }
 0x4c9   : > { %v5315_v17 = vmax.f32 %v5283_v53, 0.0  ;;  %v12760_v21 = vpop.f32.mrb[10].mxu0 }
 0x4ca   : > { %v5286_v22 = vadd.f32 %v12760_v21, %v16747_v61  ;;  %v5127_v36 = vpop.f32.mrb[11].mxu0 }
 0x4cb   : > { %v16768_v42 = vpack.c.bf16 %v5316_v9, %v5315_v17  ;;  %v5285_v44 = vadd.f32 %v16747_v61, %v5127_v36 }
 0x4cc   : > { %v5318_v15 = vmax.f32 %v5286_v22, 0.0 }
 0x4cd   : > { %v5317_v26 = vmax.f32 %v5285_v44, 0.0  ;;  %v12763_v38 = vpop.f32.mrb[12].mxu0 }
 0x4ce   : > { %v5288_v3 = vadd.f32 %v12763_v38, %v16747_v61  ;;  %v5137_v18 = vpop.f32.mrb[13].mxu0 }
 0x4cf   : > { %v16772_v30 = vpack.c.bf16 %v5318_v15, %v5317_v26  ;;  %v5287_v16 = vadd.f32 %v16747_v61, %v5137_v18 }
 0x4d0   : > { %v5320_v12 = vmax.f32 %v5288_v3, 0.0 }
 0x4d1   : > { %v5319_v11 = vmax.f32 %v5287_v16, 0.0  ;;  %v12766_v0 = vpop.f32.mrb[14].mxu0 }
 0x4d2   : > { %v5290_v1 = vadd.f32 %v12766_v0, %v16747_v61  ;;  %v5147_v31 = vpop.f32.mrb[15].mxu0 }
 0x4d3   : > { %v16776_v4 = vpack.c.bf16 %v5320_v12, %v5319_v11  ;;  %v5289_v54 = vadd.f32 %v16747_v61, %v5147_v31 }
 0x4d4   : > { %v5322_v14 = vmax.f32 %v5290_v1, 0.0 }
 0x4d5   : > { %v5321_v50 = vmax.f32 %v5289_v54, 0.0  ;;  %v12769_v23 = vpop.f32.mrb[16].mxu0 }
 0x4d6   : > { %v5292_v57 = vadd.f32 %v12769_v23, %v16747_v61  ;;  %v5157_v34 = vpop.f32.mrb[17].mxu0 }
 0x4d7   : > { %v16780_v48 = vpack.c.bf16 %v5322_v14, %v5321_v50  ;;  %v5291_v32 = vadd.f32 %v16747_v61, %v5157_v34  ;;  %v5341_v34 = vld [vmem:[%s18403_s29 + $0x10] sm:$0xff] }
 0x4d8   : > { %v5324_v56 = vmax.f32 %v5292_v57, 0.0  ;;  %v5339_v57 = vld [vmem:[%s18403_s29] sm:$0xff] }
 0x4d9   : > { %v5323_v62 = vmax.f32 %v5291_v32, 0.0  ;;  %v12772_v41 = vpop.f32.mrb[18].mxu0  ;;  %v5344_v32 = vld [vmem:[%s18403_s29 + $0x28] sm:$0xff] }
 0x4da   : > { %v5294_v28 = vadd.f32 %v12772_v41, %v16747_v61  ;;  %v5167_v46 = vpop.f32.mrb[19].mxu0  ;;  %v5345_v41 = vld [vmem:[%s18403_s29 + $0x30] sm:$0xff] }
 0x4db   : > { %v16784_v60 = vpack.c.bf16 %v5324_v56, %v5323_v62  ;;  %v5293_v5 = vadd.f32 %v16747_v61, %v5167_v46  ;;  %v5343_v56 = vld [vmem:[%s18403_s29 + $0x20] sm:$0xff]  ;;  %v5346_v62 = vld [vmem:[%s18403_s29 + $0x38] sm:$0xff] }
 0x4dc   : > { %v5326_v35 = vmax.f32 %v5294_v28, 0.0  ;;  %v5348_v28 = vld [vmem:[%s18403_s29 + $0x48] sm:$0xff]  ;;  %v5347_v46 = vld [vmem:[%s18403_s29 + $0x40] sm:$0xff] }
 0x4dd   : > { %v5325_v33 = vmax.f32 %v5293_v5, 0.0  ;;  %v12775_v24 = vpop.f32.mrb[20].mxu0  ;;  %13418 = vmatprep.subr.bf16.mxu1 %v16784_v60  ;;  %v5350_v5 = vld [vmem:[%s18403_s29 + $0x58] sm:$0xff] }
 0x4de   : > { %v5296_v45 = vadd.f32 %v12775_v24, %v16747_v61  ;;  %v5177_v47 = vpop.f32.mrb[21].mxu0  ;;  %13420 = vmatpush3.bf16.msra.mxu1 %v16752_v43  ;;  %v5351_v24 = vld [vmem:[%s18403_s29 + $0x60] sm:$0xff] }
 0x4df   : > { %v16790_v25 = vpack.c.bf16 %v5326_v35, %v5325_v33  ;;  %v5295_v7 = vadd.f32 %v16747_v61, %v5177_v47  ;;  %v5349_v35 = vld [vmem:[%s18403_s29 + $0x50] sm:$0xff]  ;;  %v5352_v33 = vld [vmem:[%s18403_s29 + $0x68] sm:$0xff] }
 0x4e0   : > { %v5328_v13 = vmax.f32 %v5296_v45, 0.0  ;;  %v5354_v45 = vld [vmem:[%s18403_s29 + $0x78] sm:$0xff]  ;;  %v5353_v47 = vld [vmem:[%s18403_s29 + $0x70] sm:$0xff] }
 0x4e1   : > { %v5327_v19 = vmax.f32 %v5295_v7, 0.0  ;;  %v12778_v20 = vpop.f32.mrb[22].mxu0  ;;  %13422 = vmatprep.subr.bf16.mxu1 %v16790_v25  ;;  %v11261_v7 = vld [vmem:[%s18403_s29 + $0x88] sm:$0xff] }
 0x4e2   : > { %v5298_v27 = vadd.f32 %v12778_v20, %v16747_v61  ;;  %v5187_v37 = vpop.f32.mrb[23].mxu0  ;;  %13424 = vmatpush3.bf16.msra.mxu1 %v16756_v29  ;;  %v11262_v20 = vld [vmem:[%s18403_s29 + $0x90] sm:$0xff] }
 0x4e3   : > { %v16796_v59 = vpack.c.bf16 %v5328_v13, %v5327_v19  ;;  %v5297_v10 = vadd.f32 %v16747_v61, %v5187_v37  ;;  %v11260_v13 = vld [vmem:[%s18403_s29 + $0x80] sm:$0xff]  ;;  %v11263_v19 = vld [vmem:[%s18403_s29 + $0x98] sm:$0xff] }
 0x4e4   : > { %v5330_v6 = vmax.f32 %v5298_v27, 0.0  ;;  %v11265_v27 = vld [vmem:[%s18403_s29 + $0xa8] sm:$0xff]  ;;  %v11264_v37 = vld [vmem:[%s18403_s29 + $0xa0] sm:$0xff] }
 0x4e5   : > { %v5329_v63 = vmax.f32 %v5297_v10, 0.0  ;;  %v12781_v58 = vpop.f32.mrb[24].mxu0  ;;  %13426 = vmatprep.subr.bf16.mxu1 %v16796_v59  ;;  %v11267_v10 = vld [vmem:[%s18403_s29 + $0xb8] sm:$0xff] }
 0x4e6   : > { %v5300_v39 = vadd.f32 %v12781_v58, %v16747_v61  ;;  %v5197_v52 = vpop.f32.mrb[25].mxu0  ;;  %13428 = vmatpush3.bf16.msra.mxu1 %v16760_v55  ;;  %v11268_v58 = vld [vmem:[%s18403_s29 + $0xc0] sm:$0xff] }
 0x4e7   : > { %v16802_v51 = vpack.c.bf16 %v5330_v6, %v5329_v63  ;;  %v5299_v40 = vadd.f32 %v16747_v61, %v5197_v52  ;;  %v11266_v6 = vld [vmem:[%s18403_s29 + $0xb0] sm:$0xff]  ;;  %v11269_v63 = vld [vmem:[%s18403_s29 + $0xc8] sm:$0xff] }
 0x4e8   : > { %v5332_v2 = vmax.f32 %v5300_v39, 0.0  ;;  %v11271_v39 = vld [vmem:[%s18403_s29 + $0xd8] sm:$0xff]  ;;  %v11270_v52 = vld [vmem:[%s18403_s29 + $0xd0] sm:$0xff] }
 0x4e9   : > { %v5331_v49 = vmax.f32 %v5299_v40, 0.0  ;;  %v12784_v53 = vpop.f32.mrb[26].mxu0  ;;  %13430 = vmatprep.subr.bf16.mxu1 %v16802_v51  ;;  %v11273_v40 = vld [vmem:[%s18403_s29 + $0xe8] sm:$0xff] }
 0x4ea   : > { %v5302_v9 = vadd.f32 %v12784_v53, %v16747_v61  ;;  %v5207_v17 = vpop.f32.mrb[27].mxu0  ;;  %13432 = vmatpush3.bf16.msra.mxu1 %v16764_v8  ;;  %v11274_v53 = vld [vmem:[%s18403_s29 + $0xf0] sm:$0xff] }
 0x4eb   : > { %v16808_v21 = vpack.c.bf16 %v5332_v2, %v5331_v49  ;;  %v5301_v22 = vadd.f32 %v16747_v61, %v5207_v17  ;;  %v11272_v2 = vld [vmem:[%s18403_s29 + $0xe0] sm:$0xff]  ;;  %v11275_v49 = vld [vmem:[%s18403_s29 + $0xf8] sm:$0xff] }
 0x4ec   : > { %v5334_v36 = vmax.f32 %v5302_v9, 0.0  ;;  %v5584_v9 = vld [vmem:[#allocation8 + $0x8] sm:$0xff]  ;;  %v5460_v17 = vld [vmem:[#allocation8] sm:$0xff] }
 0x4ed   : > { %v5333_v44 = vmax.f32 %v5301_v22, 0.0  ;;  %v12787_v15 = vpop.f32.mrb[28].mxu0  ;;  %13434 = vmatprep.subr.bf16.mxu1 %v16808_v21 }
 0x4ee   : > { %v5304_v26 = vadd.f32 %v12787_v15, %v16747_v61  ;;  %v5217_v38 = vpop.f32.mrb[29].mxu0  ;;  %13436 = vmatpush3.bf16.msra.mxu1 %v16768_v42 }
 0x4ef   : > { %v16814_v3 = vpack.c.bf16 %v5334_v36, %v5333_v44  ;;  %v5303_v18 = vadd.f32 %v16747_v61, %v5217_v38 }
 0x4f0   : > { %v5336_v16 = vmax.f32 %v5304_v26, 0.0 }
 0x4f1   : > { %v5335_v12 = vmax.f32 %v5303_v18, 0.0  ;;  %v12790_v11 = vpop.f32.mrb[30].mxu0  ;;  %13438 = vmatprep.subr.bf16.mxu1 %v16814_v3 }
 0x4f2   : > { %v5306_v0 = vadd.f32 %v12790_v11, %v16747_v61  ;;  %v5227_v1 = vpop.f32.mrb[31].mxu0  ;;  %13440 = vmatpush3.bf16.msra.mxu1 %v16772_v30 }
 0x4f3   : > { %v16820_v31 = vpack.c.bf16 %v5336_v16, %v5335_v12  ;;  %v5305_v54 = vadd.f32 %v16747_v61, %v5227_v1  ;;  %v5342_v61 = vld [vmem:[%s18403_s29 + $0x18] sm:$0xff] }
 0x4f4   : > { %v5338_v14 = vmax.f32 %v5306_v0, 0.0 }
 0x4f5   : > { %v5337_v50 = vmax.f32 %v5305_v54, 0.0  ;;  %13442 = vmatprep.subr.bf16.mxu1 %v16820_v31 }
 0x4f6   : > { %13444 = vmatpush3.bf16.msra.mxu1 %v16776_v4 }
 0x4f7   : > { %v16825_v23 = vpack.c.bf16 %v5338_v14, %v5337_v50 }
 0x4f9   : > { %13446 = vmatprep.subr.bf16.mxu1 %v16825_v23 }
 0x4fa   : > { %13448 = vmatpush3.bf16.msra.mxu1 %v16780_v48 }
 0x4fb   : > { %13450 = vmatprep.subr.bf16.mxu1 %v16784_v60 }
 0x4fd   : > { %5420 = vmatmul.mubr.f32.vlgmr.msra.gmra.mrb[0].mxu1 %v5339_v57 }
 0x4fe   : > { %13452 = vmatpush3.bf16.msra.mxu1 %v16752_v43  ;;  %5424 = vmatprep.mubr.f32.mxu1 %v5342_v61 }
 0x4ff   : > { %13454 = vmatprep.subr.bf16.mxu1 %v16790_v25 }
 0x501   : > { %5425 = vmatmul.mubr.f32.gmra.mrb[2].mxu1 %v5341_v34 }
 0x502   : > { %13456 = vmatpush3.bf16.msra.mxu1 %v16756_v29  ;;  %5429 = vmatprep.mubr.f32.mxu1 %v5344_v32 }
 0x503   : > { %13458 = vmatprep.subr.bf16.mxu1 %v16796_v59 }
 0x505   : > { %5430 = vmatmul.mubr.f32.gmra.mrb[4].mxu1 %v5343_v56 }
 0x506   : > { %13460 = vmatpush3.bf16.msra.mxu1 %v16760_v55  ;;  %5434 = vmatprep.mubr.f32.mxu1 %v5346_v62 }
 0x507   : > { %13462 = vmatprep.subr.bf16.mxu1 %v16802_v51 }
 0x509   : > { %5435 = vmatmul.mubr.f32.gmra.mrb[6].mxu1 %v5345_v41 }
 0x50a   : > { %13464 = vmatpush3.bf16.msra.mxu1 %v16764_v8  ;;  %5439 = vmatprep.mubr.f32.mxu1 %v5348_v28 }
 0x50b   : > { %13466 = vmatprep.subr.bf16.mxu1 %v16808_v21 }
 0x50d   : > { %5440 = vmatmul.mubr.f32.gmra.mrb[8].mxu1 %v5347_v46 }
 0x50e   : > { %13468 = vmatpush3.bf16.msra.mxu1 %v16768_v42  ;;  %5444 = vmatprep.mubr.f32.mxu1 %v5350_v5 }
 0x50f   : > { %13470 = vmatprep.subr.bf16.mxu1 %v16814_v3 }
 0x511   : > { %5445 = vmatmul.mubr.f32.gmra.mrb[10].mxu1 %v5349_v35 }
 0x512   : > { %13472 = vmatpush3.bf16.msra.mxu1 %v16772_v30  ;;  %5449 = vmatprep.mubr.f32.mxu1 %v5352_v33 }
 0x513   : > { %13474 = vmatprep.subr.bf16.mxu1 %v16820_v31 }
 0x515   : > { %5450 = vmatmul.mubr.f32.gmra.mrb[12].mxu1 %v5351_v24 }
 0x516   : > { %13476 = vmatpush3.bf16.msra.mxu1 %v16776_v4  ;;  %5454 = vmatprep.mubr.f32.mxu1 %v5354_v45 }
 0x517   : > { %13478 = vmatprep.subr.bf16.mxu1 %v16825_v23 }
 0x519   : > { %5455 = vmatmul.mubr.f32.gmra.mrb[14].mxu1 %v5353_v47 }
 0x51a   : > { %13480 = vmatpush3.bf16.msra.mxu1 %v16780_v48  ;;  %5542 = vmatprep.mubr.f32.mxu1 %v11261_v7 }
 0x51b   : > { %12791 = vmatprep.subr.mxu1 %v5584_v9 }
 0x51d   : > { %5543 = vmatmul.mubr.f32.vlgmr.msra.gmra.mrb[16].mxu1 %v11260_v13 }
 0x51e   : > { %5547 = vmatprep.mubr.f32.mxu1 %v11263_v19  ;;  %12792 = vmatpush3.msra.mxu1 %v5584_v9 }
 0x51f   : > { %12805 = vmatprep.subr.mxu1 %v5460_v17 }
 0x521   : > { %5548 = vmatmul.mubr.f32.gmra.mrb[18].mxu1 %v11262_v20 }
 0x522   : > { %5552 = vmatprep.mubr.f32.mxu1 %v11265_v27 }
 0x525   : > { %5553 = vmatmul.mubr.f32.gmra.mrb[20].mxu1 %v11264_v37 }
 0x526   : > { %5557 = vmatprep.mubr.f32.mxu1 %v11267_v10 }
 0x529   : > { %5558 = vmatmul.mubr.f32.gmra.mrb[22].mxu1 %v11266_v6 }
 0x52a   : > { %5562 = vmatprep.mubr.f32.mxu1 %v11269_v63 }
 0x52d   : > { %5563 = vmatmul.mubr.f32.gmra.mrb[24].mxu1 %v11268_v58 }
 0x52e   : > { %5567 = vmatprep.mubr.f32.mxu1 %v11271_v39 }
 0x531   : > { %5568 = vmatmul.mubr.f32.gmra.mrb[26].mxu1 %v11270_v52 }
 0x532   : > { %5572 = vmatprep.mubr.f32.mxu1 %v11273_v40 }
 0x535   : > { %5573 = vmatmul.mubr.f32.gmra.mrb[28].mxu1 %v11272_v2 }
 0x536   : > { %5577 = vmatprep.mubr.f32.mxu1 %v11275_v49 }
 0x539   : > { %5578 = vmatmul.mubr.f32.gmra.mrb[30].mxu1 %v11274_v53 }
 0x5d0   : > { %v11809_v22 = vpop.f32.mrb[0].mxu1 }
 0x5d1   : > { %v11810_v36 = vpop.f32.mrb[1].mxu1 }
 0x5d2   : > { %v11811_v44 = vadd.f32 %v11810_v36, %v11809_v22  ;;  %v11293_v22 = vld [vmem:[%s18403_s29 + $0x108] sm:$0xff] }
 0x5d3   : > { %v5967_v36 = vld [vmem:[#allocation8 + $0x10] sm:$0xff] }
 0x5d4   : > { %v11812_v15 = vpop.f32.mrb[2].mxu1 }
 0x5d5   : > { %v11813_v26 = vpop.f32.mrb[3].mxu1 }
 0x5d6   : > { %v11814_v38 = vadd.f32 %v11813_v26, %v11812_v15  ;;  %v11295_v15 = vld [vmem:[%s18403_s29 + $0x118] sm:$0xff]  ;;  %v11294_v26 = vld [vmem:[%s18403_s29 + $0x110] sm:$0xff] }
 0x5d8   : > { %v11815_v18 = vpop.f32.mrb[4].mxu1 }
 0x5d9   : > { %v11816_v16 = vpop.f32.mrb[5].mxu1 }
 0x5da   : > { %v11817_v12 = vadd.f32 %v11816_v16, %v11815_v18  ;;  %v11296_v18 = vld [vmem:[%s18403_s29 + $0x120] sm:$0xff]  ;;  %v11299_v16 = vld [vmem:[%s18403_s29 + $0x138] sm:$0xff] }
 0x5dc   : > { %v11818_v11 = vpop.f32.mrb[6].mxu1 }
 0x5dd   : > { %v11819_v0 = vpop.f32.mrb[7].mxu1 }
 0x5de   : > { %v11820_v1 = vadd.f32 %v11819_v0, %v11818_v11  ;;  %v11300_v11 = vld [vmem:[%s18403_s29 + $0x140] sm:$0xff]  ;;  %v11303_v0 = vld [vmem:[%s18403_s29 + $0x158] sm:$0xff] }
 0x5e0   : > { %v11821_v54 = vpop.f32.mrb[8].mxu1 }
 0x5e1   : > { %v11822_v14 = vpop.f32.mrb[9].mxu1 }
 0x5e2   : > { %v11823_v50 = vadd.f32 %v11822_v14, %v11821_v54  ;;  %v11305_v54 = vld [vmem:[%s18403_s29 + $0x168] sm:$0xff]  ;;  %v11304_v14 = vld [vmem:[%s18403_s29 + $0x160] sm:$0xff] }
 0x5e4   : > { %v11824_v57 = vpop.f32.mrb[10].mxu1 }
 0x5e5   : > { %v11825_v61 = vpop.f32.mrb[11].mxu1 }
 0x5e6   : > { %v11826_v34 = vadd.f32 %v11825_v61, %v11824_v57  ;;  %v11306_v57 = vld [vmem:[%s18403_s29 + $0x170] sm:$0xff] }
 0x5e8   : > { %v11827_v32 = vpop.f32.mrb[12].mxu1 }
 0x5e9   : > { %v11828_v56 = vpop.f32.mrb[13].mxu1 }
 0x5ea   : > { %v11829_v62 = vadd.f32 %v11828_v56, %v11827_v32 }
 0x5ec   : > { %v11830_v41 = vpop.f32.mrb[14].mxu1 }
 0x5ed   : > { %v11831_v28 = vpop.f32.mrb[15].mxu1 }
 0x5ee   : > { %v11832_v46 = vadd.f32 %v11831_v28, %v11830_v41 }
 0x5f0   : > { %v11865_v5 = vpop.f32.mrb[16].mxu1 }
 0x5f1   : > { %v11866_v35 = vpop.f32.mrb[17].mxu1 }
 0x5f2   : > { %v11867_v33 = vadd.f32 %v11866_v35, %v11865_v5 }
 0x5f4   : > { %v11868_v24 = vpop.f32.mrb[18].mxu1  ;;  %12793 = vmatprep.mubr.msk.f32.mxu1 %vm18051_vm0, %v11867_v33 }
 0x5f5   : > { %v11869_v45 = vpop.f32.mrb[19].mxu1 }
 0x5f6   : > { %v11870_v47 = vadd.f32 %v11869_v45, %v11868_v24 }
 0x5f8   : > { %v11871_v7 = vpop.f32.mrb[20].mxu1  ;;  %12794 = vmatmul.mubr.msk.f32.vlgmr.msra.gmra.mrb[32].mxu1 %vm18051_vm0, %v11870_v47 }
 0x5f9   : > { %12806 = vmatpush3.msra.mxu1 %v5460_v17  ;;  %v11872_v13 = vpop.f32.mrb[21].mxu1 }
 0x5fa   : > { %v11873_v19 = vadd.f32 %v11872_v13, %v11871_v7  ;;  %13482 = vmatprep.subr.bf16.mxu1 %v16784_v60 }
 0x5fc   : > { %v11874_v20 = vpop.f32.mrb[22].mxu1  ;;  %12796 = vmatprep.mubr.msk.f32.mxu1 %vm18051_vm0, %v11873_v19 }
 0x5fd   : > { %v11875_v27 = vpop.f32.mrb[23].mxu1 }
 0x5fe   : > { %v11876_v37 = vadd.f32 %v11875_v27, %v11874_v20  ;;  %v11322_v20 = vld [vmem:[%s18403_s29 + $0x1b0] sm:$0xff]  ;;  %v11325_v27 = vld [vmem:[%s18403_s29 + $0x1c8] sm:$0xff] }
 0x600   : > { %v11877_v10 = vpop.f32.mrb[24].mxu1  ;;  %12797 = vmatmul.mubr.msk.f32.gmra.mrb[34].mxu1 %vm18051_vm0, %v11876_v37  ;;  %v11324_v37 = vld [vmem:[%s18403_s29 + $0x1c0] sm:$0xff] }
 0x601   : > { %v11878_v6 = vpop.f32.mrb[25].mxu1 }
 0x602   : > { %v11879_v63 = vadd.f32 %v11878_v6, %v11877_v10  ;;  %v11327_v10 = vld [vmem:[%s18403_s29 + $0x1d8] sm:$0xff]  ;;  %v11326_v6 = vld [vmem:[%s18403_s29 + $0x1d0] sm:$0xff] }
 0x604   : > { %v11880_v58 = vpop.f32.mrb[26].mxu1  ;;  %12799 = vmatprep.mubr.msk.f32.mxu1 %vm18051_vm0, %v11879_v63  ;;  %v11329_v63 = vld [vmem:[%s18403_s29 + $0x1e8] sm:$0xff] }
 0x605   : > { %v11881_v39 = vpop.f32.mrb[27].mxu1 }
 0x606   : > { %v11882_v52 = vadd.f32 %v11881_v39, %v11880_v58  ;;  %v11328_v58 = vld [vmem:[%s18403_s29 + $0x1e0] sm:$0xff]  ;;  %v11331_v39 = vld [vmem:[%s18403_s29 + $0x1f8] sm:$0xff] }
 0x608   : > { %v11883_v40 = vpop.f32.mrb[28].mxu1  ;;  %12800 = vmatmul.mubr.msk.f32.gmra.mrb[36].mxu1 %vm18051_vm0, %v11882_v52  ;;  %v11330_v52 = vld [vmem:[%s18403_s29 + $0x1f0] sm:$0xff] }
 0x609   : > { %v11884_v2 = vpop.f32.mrb[29].mxu1 }
 0x60a   : > { %v11885_v49 = vadd.f32 %v11884_v2, %v11883_v40 }
 0x60c   : > { %v11886_v53 = vpop.f32.mrb[30].mxu1  ;;  %12802 = vmatprep.mubr.msk.f32.mxu1 %vm18051_vm0, %v11885_v49 }
 0x60d   : > { %v11887_v9 = vpop.f32.mrb[31].mxu1 }
 0x60e   : > { %v11888_v17 = vadd.f32 %v11887_v9, %v11886_v53 }
 0x610   : > { %12803 = vmatmul.mubr.msk.f32.gmra.mrb[38].mxu1 %vm18051_vm0, %v11888_v17 }
 0x611   : > { %12807 = vmatprep.mubr.msk.f32.mxu1 %vm18051_vm0, %v11811_v44  ;;  %v11292_v44 = vld [vmem:[%s18403_s29 + $0x100] sm:$0xff] }
 0x614   : > { %12808 = vmatmul.mubr.msk.f32.vlgmr.msra.gmra.mrb[32].mxu1 %vm18051_vm0, %v11814_v38  ;;  %v11297_v38 = vld [vmem:[%s18403_s29 + $0x128] sm:$0xff] }
 0x615   : > { %13484 = vmatpush3.bf16.msra.mxu1 %v16752_v43  ;;  %12810 = vmatprep.mubr.msk.f32.mxu1 %vm18051_vm0, %v11817_v12  ;;  %v11301_v12 = vld [vmem:[%s18403_s29 + $0x148] sm:$0xff] }
 0x616   : > { %13486 = vmatprep.subr.bf16.mxu1 %v16790_v25 }
 0x618   : > { %12811 = vmatmul.mubr.msk.f32.gmra.mrb[34].mxu1 %vm18051_vm0, %v11820_v1  ;;  %v11302_v1 = vld [vmem:[%s18403_s29 + $0x150] sm:$0xff] }
 0x619   : > { %13488 = vmatpush3.bf16.msra.mxu1 %v16756_v29  ;;  %12813 = vmatprep.mubr.msk.f32.mxu1 %vm18051_vm0, %v11823_v50  ;;  %v11307_v50 = vld [vmem:[%s18403_s29 + $0x178] sm:$0xff] }
 0x61a   : > { %13490 = vmatprep.subr.bf16.mxu1 %v16796_v59 }
 0x61c   : > { %12814 = vmatmul.mubr.msk.f32.gmra.mrb[36].mxu1 %vm18051_vm0, %v11826_v34 }
 0x61d   : > { %13492 = vmatpush3.bf16.msra.mxu1 %v16760_v55  ;;  %12816 = vmatprep.mubr.msk.f32.mxu1 %vm18051_vm0, %v11829_v62 }
 0x61e   : > { %13494 = vmatprep.subr.bf16.mxu1 %v16802_v51 }
 0x620   : > { %12817 = vmatmul.mubr.msk.f32.gmra.mrb[38].mxu1 %vm18051_vm0, %v11832_v46 }
 0x621   : > { %13496 = vmatpush3.bf16.msra.mxu1 %v16764_v8  ;;  %5925 = vmatprep.mubr.f32.mxu1 %v11293_v22 }
 0x622   : > { %13498 = vmatprep.subr.bf16.mxu1 %v16808_v21 }
 0x625   : > { %13500 = vmatpush3.bf16.msra.mxu1 %v16768_v42 }
 0x626   : > { %13502 = vmatprep.subr.bf16.mxu1 %v16814_v3 }
 0x629   : > { %13504 = vmatpush3.bf16.msra.mxu1 %v16772_v30 }
 0x62a   : > { %13506 = vmatprep.subr.bf16.mxu1 %v16820_v31 }
 0x62d   : > { %13508 = vmatpush3.bf16.msra.mxu1 %v16776_v4 }
 0x62e   : > { %13510 = vmatprep.subr.bf16.mxu1 %v16825_v23 }
 0x631   : > { %13512 = vmatpush3.bf16.msra.mxu1 %v16780_v48 }
 0x632   : > { %12819 = vmatprep.subr.mxu1 %v5967_v36 }
 0x634   : > { %5926 = vmatmul.mubr.f32.vlgmr.msra.gmra.mrb[40].mxu1 %v11292_v44 }
 0x635   : > { %12820 = vmatpush3.msra.mxu1 %v5967_v36  ;;  %5930 = vmatprep.mubr.f32.mxu1 %v11295_v15 }
 0x636   : > { %13514 = vmatprep.subr.bf16.mxu1 %v16784_v60  ;;  %v11298_v60 = vld [vmem:[%s18403_s29 + $0x130] sm:$0xff] }
 0x638   : > { %5931 = vmatmul.mubr.f32.gmra.mrb[42].mxu1 %v11294_v26 }
 0x639   : > { %5935 = vmatprep.mubr.f32.mxu1 %v11297_v38 }
 0x63c   : > { %5936 = vmatmul.mubr.f32.gmra.mrb[44].mxu1 %v11296_v18 }
 0x63d   : > { %5940 = vmatprep.mubr.f32.mxu1 %v11299_v16 }
 0x640   : > { %5941 = vmatmul.mubr.f32.gmra.mrb[46].mxu1 %v11298_v60 }
 0x641   : > { %5945 = vmatprep.mubr.f32.mxu1 %v11301_v12 }
 0x644   : > { %5946 = vmatmul.mubr.f32.gmra.mrb[48].mxu1 %v11300_v11 }
 0x645   : > { %5950 = vmatprep.mubr.f32.mxu1 %v11303_v0 }
 0x648   : > { %5951 = vmatmul.mubr.f32.gmra.mrb[50].mxu1 %v11302_v1 }
 0x649   : > { %5955 = vmatprep.mubr.f32.mxu1 %v11305_v54 }
 0x64c   : > { %5956 = vmatmul.mubr.f32.gmra.mrb[52].mxu1 %v11304_v14 }
 0x64d   : > { %5960 = vmatprep.mubr.f32.mxu1 %v11307_v50 }
 0x650   : > { %5961 = vmatmul.mubr.f32.gmra.mrb[54].mxu1 %v11306_v57 }
 0x707   : > { %v11939_v61 = vpop.f32.mrb[40].mxu1 }
 0x708   : > { %v11940_v34 = vpop.f32.mrb[41].mxu1 }
 0x709   : > { %v11941_v32 = vadd.f32 %v11940_v34, %v11939_v61  ;;  %v18405_v34 = vmov 0.0  }
 0x70a   : > { %6390 = vst.msk [vmem:[#allocation3] sm:$0xff] %vm6389_vm1, %v18405_v34  ;;  %6391 = vst.msk [vmem:[#allocation3 + $0x8] sm:$0xff] %vm6389_vm1, %v18405_v34 }
 0x70b   : > { %v11942_v56 = vpop.f32.mrb[42].mxu1  ;;  %12821 = vmatprep.mubr.msk.f32.mxu1 %vm18051_vm0, %v11941_v32  ;;  %6392 = vst.msk [vmem:[#allocation3 + $0x50] sm:$0xff] %vm6389_vm1, %v18405_v34  ;;  %6393 = vst.msk [vmem:[#allocation3 + $0x58] sm:$0xff] %vm6389_vm1, %v18405_v34  ;;  %v6557_v32 = vld [vmem:[#allocation11 + $0x10] sm:$0xff] }
 0x70c   : > { %v11943_v62 = vpop.f32.mrb[43].mxu1 }
 0x70d   : > { %v11944_v41 = vadd.f32 %v11943_v62, %v11942_v56  ;;  %v6558_v56 = vld [vmem:[#allocation11 + $0x18] sm:$0xff] }
 0x70e   : > { %v13545_v62 = vpack.c.bf16 %v6558_v56, %v6557_v32 }
 0x70f   : > { %12822 = vmatmul.mubr.msk.f32.vlgmr.msra.gmra.mrb[32].mxu1 %vm18051_vm0, %v11944_v41  ;;  %v11945_v28 = vpop.f32.mrb[44].mxu1 }
 0x710   : > { %13516 = vmatpush3.bf16.msra.mxu1 %v16752_v43  ;;  %v11946_v46 = vpop.f32.mrb[45].mxu1 }
 0x711   : > { %13518 = vmatprep.subr.bf16.mxu1 %v16790_v25  ;;  %v11947_v5 = vadd.f32 %v11946_v46, %v11945_v28  ;;  %v6548_v41 = vld [vmem:[#allocation3 + $0x8] sm:$0xff] }
 0x712   : > { %v6546_v28 = vld [vmem:[#allocation11] sm:$0xff]  ;;  %v6547_v46 = vld [vmem:[#allocation11 + $0x8] sm:$0xff] }
 0x713   : > { %v11948_v35 = vpop.f32.mrb[46].mxu1  ;;  %12824 = vmatprep.mubr.msk.f32.mxu1 %vm18051_vm0, %v11947_v5  ;;  %v13549_v5 = vpack.c.bf16 %v6547_v46, %v6546_v28 }
 0x714   : > { %13520 = vmatpush3.bf16.msra.mxu1 %v16756_v29  ;;  %v11949_v33 = vpop.f32.mrb[47].mxu1 }
 0x715   : > { %13522 = vmatprep.subr.bf16.mxu1 %v16796_v59  ;;  %v11950_v24 = vadd.f32 %v11949_v33, %v11948_v35  ;;  %v11340_v35 = vld [vmem:[#allocation10] ss:$0 sm:$0xff] }
 0x717   : > { %v11951_v45 = vpop.f32.mrb[48].mxu1  ;;  %12825 = vmatmul.mubr.msk.f32.gmra.mrb[34].mxu1 %vm18051_vm0, %v11950_v24 }
 0x718   : > { %13524 = vmatpush3.bf16.msra.mxu1 %v16760_v55  ;;  %v11952_v47 = vpop.f32.mrb[49].mxu1 }
 0x719   : > { %13526 = vmatprep.subr.bf16.mxu1 %v16802_v51  ;;  %v11953_v43 = vadd.f32 %v11952_v47, %v11951_v45 }
 0x71b   : > { %v11954_v25 = vpop.f32.mrb[50].mxu1  ;;  %12827 = vmatprep.mubr.msk.f32.mxu1 %vm18051_vm0, %v11953_v43 }
 0x71c   : > { %13528 = vmatpush3.bf16.msra.mxu1 %v16764_v8  ;;  %v11955_v7 = vpop.f32.mrb[51].mxu1 }
 0x71d   : > { %13530 = vmatprep.subr.bf16.mxu1 %v16808_v21  ;;  %v11956_v29 = vadd.f32 %v11955_v7, %v11954_v25  ;;  %v11317_v21 = vld [vmem:[%s18403_s29 + $0x188] sm:$0xff] }
 0x71f   : > { %v11957_v59 = vpop.f32.mrb[52].mxu1  ;;  %12828 = vmatmul.mubr.msk.f32.gmra.mrb[36].mxu1 %vm18051_vm0, %v11956_v29 }
 0x720   : > { %13532 = vmatpush3.bf16.msra.mxu1 %v16768_v42  ;;  %v11958_v13 = vpop.f32.mrb[53].mxu1  ;;  %v6228_v42 = vld [vmem:[#allocation8 + $0x18] sm:$0xff] }
 0x721   : > { %13534 = vmatprep.subr.bf16.mxu1 %v16814_v3  ;;  %v11959_v55 = vadd.f32 %v11958_v13, %v11957_v59  ;;  %v11319_v3 = vld [vmem:[%s18403_s29 + $0x198] sm:$0xff] }
 0x722   : > { %v6850_v13 = vld [vmem:[#allocation11 + $0x20] sm:$0xff] }
 0x723   : > { %v11960_v51 = vpop.f32.mrb[54].mxu1  ;;  %12830 = vmatprep.mubr.msk.f32.mxu1 %vm18051_vm0, %v11959_v55  ;;  %v6851_v55 = vld [vmem:[#allocation11 + $0x28] sm:$0xff] }
 0x724   : > { %13536 = vmatpush3.bf16.msra.mxu1 %v16772_v30  ;;  %v11961_v19 = vpop.f32.mrb[55].mxu1  ;;  %v11316_v30 = vld [vmem:[%s18403_s29 + $0x180] sm:$0xff] }
 0x725   : > { %13538 = vmatprep.subr.bf16.mxu1 %v16820_v31  ;;  %v11962_v8 = vadd.f32 %v11961_v19, %v11960_v51  ;;  %v11320_v31 = vld [vmem:[%s18403_s29 + $0x1a0] sm:$0xff] }
 0x727   : > { %12831 = vmatmul.mubr.msk.f32.gmra.mrb[38].mxu1 %vm18051_vm0, %v11962_v8 }
 0x728   : > { %13540 = vmatpush3.bf16.msra.mxu1 %v16776_v4  ;;  %6186 = vmatprep.mubr.f32.mxu1 %v11317_v21  ;;  %v11318_v4 = vld [vmem:[%s18403_s29 + $0x190] sm:$0xff]  ;;  %v17109_v21 = vpack.c.bf16 %v6851_v55, %v6850_v13  ;;  %v7006_v13 = vld [vmem:[#allocation11 + $0x30] sm:$0xff] }
 0x729   : > { %13542 = vmatprep.subr.bf16.mxu1 %v16825_v23  ;;  %v11323_v23 = vld [vmem:[%s18403_s29 + $0x1b8] sm:$0xff]  ;;  %v7007_v55 = vld [vmem:[#allocation11 + $0x38] sm:$0xff] }
 0x72c   : > { %13544 = vmatpush3.bf16.msra.mxu1 %v16780_v48  ;;  %v11321_v48 = vld [vmem:[%s18403_s29 + $0x1a8] sm:$0xff] }
 0x72d   : > { %12833 = vmatprep.subr.mxu1 %v6228_v42 }
 0x72f   : > { %6187 = vmatmul.mubr.f32.vlgmr.msra.gmra.mrb[56].mxu1 %v11316_v30 }
 0x730   : > { %6191 = vmatprep.mubr.f32.mxu1 %v11319_v3  ;;  %12834 = vmatpush3.msra.mxu1 %v6228_v42 }
 0x731   : > { %13546 = vmatprep.subr.bf16.mxu1 %v13545_v62 }
 0x733   : > { %6192 = vmatmul.mubr.f32.gmra.mrb[58].mxu1 %v11318_v4 }
 0x734   : > { %6196 = vmatprep.mubr.f32.mxu1 %v11321_v48 }
 0x737   : > { %6197 = vmatmul.mubr.f32.gmra.mrb[60].mxu1 %v11320_v31 }
 0x738   : > { %6201 = vmatprep.mubr.f32.mxu1 %v11323_v23 }
 0x73b   : > { %6202 = vmatmul.mubr.f32.gmra.mrb[62].mxu1 %v11322_v20  ;;  %v18406_v20 = vld [vmem:[#allocation61_spill] sm:$0xff] }
 0x73c   : > { %6206 = vmatprep.mubr.f32.mxu1 %v11325_v27  ;;  %v6406_v27 = vand.u32 7, %v18406_v20 }
 0x73e   : > { %vm17151_vm10 = vcmp.lt.s32.totalorder %v6406_v27, 7  ;;  %vm17220_vm3 = vcmp.gt.s32.totalorder %v6406_v27, 0  ;;  %v7933_v27 = vld [vmem:[#allocation16 + $0x8] sm:$0xff] }
 0x73f   : > { %6207 = vmatmul.mubr.f32.gmra.mrb[64].mxu1 %v11324_v37  ;;  %v18407_v37 = vld [vmem:[#allocation70_spill] sm:$0xff] }
 0x740   : > { %6211 = vmatprep.mubr.f32.mxu1 %v11327_v10  ;;  %v6413_v10 = vand.u32 7, %v18407_v37 }
 0x742   : > { %vm17143_vm8 = vcmp.gt.s32.totalorder %v6413_v10, 0  ;;  %vm17155_vm11 = vcmp.lt.s32.totalorder %v6413_v10, 7 }
 0x743   : > { %6212 = vmatmul.mubr.f32.gmra.mrb[66].mxu1 %v11326_v6  ;;  %v18408_v6 = vld [vmem:[#allocation64_spill] sm:$0xff] }
 0x744   : > { %6216 = vmatprep.mubr.f32.mxu1 %v11329_v63  ;;  %v6420_v63 = vand.u32 7, %v18408_v6  ;;  %v13557_v6 = vpack.c.bf16 %v7007_v55, %v7006_v13  ;;  %v7155_v13 = vld [vmem:[#allocation11 + $0x48] sm:$0xff] }
 0x746   : > { %vm17147_vm9 = vcmp.gt.s32.totalorder %v6420_v63, 0  ;;  %vm17199_vm12 = vcmp.lt.s32.totalorder %v6420_v63, 7 }
 0x747   : > { %6217 = vmatmul.mubr.f32.gmra.mrb[68].mxu1 %v11328_v58 }
 0x748   : > { %6221 = vmatprep.mubr.f32.mxu1 %v11331_v39 }
 0x74b   : > { %6222 = vmatmul.mubr.f32.gmra.mrb[70].mxu1 %v11330_v52 }
 0x802   : > { %v12004_v40 = vpop.f32.mrb[56].mxu1 }
 0x803   : > { %v12005_v2 = vpop.f32.mrb[57].mxu1 }
 0x804   : > { %v12006_v49 = vadd.f32 %v12005_v2, %v12004_v40 }
 0x806   : > { %v12007_v53 = vpop.f32.mrb[58].mxu1  ;;  %12835 = vmatprep.mubr.msk.f32.mxu1 %vm18051_vm0, %v12006_v49 }
 0x807   : > { %v12008_v9 = vpop.f32.mrb[59].mxu1 }
 0x808   : > { %v12009_v17 = vadd.f32 %v12008_v9, %v12007_v53 }
 0x80a   : > { %v12010_v22 = vpop.f32.mrb[60].mxu1  ;;  %12836 = vmatmul.mubr.msk.f32.vlgmr.msra.gmra.mrb[32].mxu1 %vm18051_vm0, %v12009_v17  ;;  %v7612_v17 = vld [vmem:[#allocation3 + $0x50] sm:$0xff] }
 0x80b   : > { %v12011_v36 = vpop.f32.mrb[61].mxu1  ;;  %13548 = vmatpush3.bf16.msra.mxu1 %v13545_v62 }
 0x80c   : > { %v12012_v44 = vadd.f32 %v12011_v36, %v12010_v22  ;;  %13550 = vmatprep.subr.bf16.mxu1 %v13549_v5 }
 0x80e   : > { %v12013_v15 = vpop.f32.mrb[62].mxu1  ;;  %12838 = vmatprep.mubr.msk.f32.mxu1 %vm18051_vm0, %v12012_v44 }
 0x80f   : > { %v12014_v26 = vpop.f32.mrb[63].mxu1 }
 0x810   : > { %v12015_v38 = vadd.f32 %v12014_v26, %v12013_v15 }
 0x812   : > { %v12016_v18 = vpop.f32.mrb[64].mxu1  ;;  %12839 = vmatmul.mubr.msk.f32.gmra.mrb[34].mxu1 %vm18051_vm0, %v12015_v38 }
 0x813   : > { %v12017_v16 = vpop.f32.mrb[65].mxu1 }
 0x814   : > { %v12018_v60 = vadd.f32 %v12017_v16, %v12016_v18 }
 0x816   : > { %v12019_v12 = vpop.f32.mrb[66].mxu1  ;;  %12841 = vmatprep.mubr.msk.f32.mxu1 %vm18051_vm0, %v12018_v60 }
 0x817   : > { %v12020_v11 = vpop.f32.mrb[67].mxu1 }
 0x818   : > { %v12021_v0 = vadd.f32 %v12020_v11, %v12019_v12 }
 0x81a   : > { %v12022_v1 = vpop.f32.mrb[68].mxu1  ;;  %12842 = vmatmul.mubr.msk.f32.gmra.mrb[36].mxu1 %vm18051_vm0, %v12021_v0  ;;  %v18417_v0 = vld [vmem:[#allocation72_spill] sm:$0xff] }
 0x81b   : > { %v12023_v54 = vpop.f32.mrb[69].mxu1 }
 0x81c   : > { %v12024_v14 = vadd.f32 %v12023_v54, %v12022_v1  ;;  %v6427_v1 = vand.u32 7, %v18417_v0  ;;  %v18418_v54 = vld [vmem:[#allocation67_spill] sm:$0xff] }
 0x81e   : > { %v12025_v50 = vpop.f32.mrb[70].mxu1  ;;  %12844 = vmatprep.mubr.msk.f32.mxu1 %vm18051_vm0, %v12024_v14  ;;  %v6434_v14 = vand.u32 7, %v18418_v54  ;;  %vm17191_vm15 = vcmp.gt.s32.totalorder %v6427_v1, 0  ;;  %vm17203_vm2 = vcmp.lt.s32.totalorder %v6427_v1, 7  ;;  %v18437_v1 = vld [vmem:[#allocation79_spill] sm:$0xff] }
 0x81f   : > { %v12026_v57 = vpop.f32.mrb[71].mxu1  ;;  %v6455_v54 = vand.u32 7, %v18437_v1 }
 0x820   : > { %v12027_v61 = vadd.f32 %v12026_v57, %v12025_v50  ;;  %vm17195_vm13 = vcmp.gt.s32.totalorder %v6434_v14, 0  ;;  %vm17243_vm5 = vcmp.lt.s32.totalorder %v6434_v14, 7  ;;  %v8104_v14 = vld [vmem:[#allocation14 + $0x18] sm:$0xff] }
 0x821   : > { %vm17289_vm14 = vcmp.gt.s32.totalorder %v6455_v54, 0 }
 0x822   : > { %12845 = vmatmul.mubr.msk.f32.gmra.mrb[38].mxu1 %vm18051_vm0, %v12027_v61 }
 0x823   : > { %12851 = vmatprep.mubr.msk.f32.mxu1 %vm6389_vm1, %v6548_v41 }
 0x8dd   : > { %v12837_v33 = vpop.f32.mrb[32].mxu1 }
 0x8de   : > { %v6374_v24 = vadd.f32 %v12837_v33, %v11340_v35  ;;  %v6319_v45 = vpop.f32.mrb[33].mxu1 }
 0x8df   : > { %v6373_v47 = vadd.f32 %v11340_v35, %v6319_v45 }
 0x8e0   : > { %v6382_v43 = vmax.f32 %v6374_v24, 0.0 }
 0x8e1   : > { %v6381_v25 = vmax.f32 %v6373_v47, 0.0 }
 0x8e2   : > { %6395 = vst.msk [vmem:[#allocation3 + $0x18] sm:$0xff] %vm6389_vm1, %v6382_v43  ;;  %v6514_v43 = vld [vmem:[#allocation3 + $0x7] sm:$0xff] }
 0x8e3   : > { %6394 = vst.msk [vmem:[#allocation3 + $0x10] sm:$0xff] %vm6389_vm1, %v6381_v25  ;;  %v18427_v25 = vld [vmem:[#allocation75_spill] sm:$0xff] }
 0x8e5   : > { %v12840_v7 = vpop.f32.mrb[34].mxu1 }
 0x8e6   : > { %v6376_v29 = vadd.f32 %v12840_v7, %v11340_v35  ;;  %v6329_v59 = vpop.f32.mrb[35].mxu1  ;;  %v6441_v7 = vand.u32 7, %v18427_v25 }
 0x8e7   : > { %v6375_v51 = vadd.f32 %v11340_v35, %v6329_v59  ;;  %v6538_v59 = vsel %vm17220_vm3, %v6514_v43, 0.0 }
 0x8e8   : > { %v6384_v19 = vmax.f32 %v6376_v29, 0.0  ;;  %vm17234_vm4 = vcmp.gt.s32.totalorder %v6441_v7, 0  ;;  %vm17247_vm6 = vcmp.lt.s32.totalorder %v6441_v7, 7 }
 0x8e9   : > { %v6383_v8 = vmax.f32 %v6375_v51, 0.0  ;;  %v17117_v30 = vld [vmem:[#allocation3 + $0x18] sm:$0xff] }
 0x8ea   : > { %6397 = vst.msk [vmem:[#allocation3 + $0x28] sm:$0xff] %vm6389_vm1, %v6384_v19  ;;  %v17112_v42 = vld [vmem:[#allocation3 + $0x10] sm:$0xff] }
 0x8eb   : > { %6396 = vst.msk [vmem:[#allocation3 + $0x20] sm:$0xff] %vm6389_vm1, %v6383_v8  ;;  %12852 = vmatmul.mubr.msk.f32.vlgmr.msra.gmra.mrb[72].mxu1 %vm6389_vm1, %v17112_v42  ;;  %v6817_v25 = vld [vmem:[#allocation3 + $0x9] sm:$0xff] }
 0x8ec   : > { %12854 = vmatprep.mubr.msk.f32.mxu1 %vm6389_vm1, %v17117_v30  ;;  %13552 = vmatpush3.bf16.msra.mxu1 %v13549_v5  ;;  %v6841_v55 = vsel %vm17151_vm10, %v6817_v25, 0.0  ;;  %v8017_v25 = vld [vmem:[#allocation14 + $0x8] sm:$0xff] }
 0x8ed   : > { %v12843_v3 = vpop.f32.mrb[36].mxu1  ;;  %13554 = vmatprep.subr.bf16.mxu1 %v17109_v21 }
 0x8ee   : > { %v6378_v4 = vadd.f32 %v12843_v3, %v11340_v35  ;;  %v6339_v48 = vpop.f32.mrb[37].mxu1  ;;  %v6515_v3 = vld [vmem:[#allocation3 + $0xf] sm:$0xff] }
 0x8ef   : > { %v6377_v31 = vadd.f32 %v11340_v35, %v6339_v48 }
 0x8f0   : > { %v6386_v23 = vmax.f32 %v6378_v4, 0.0 }
 0x8f1   : > { %v6385_v58 = vmax.f32 %v6377_v31, 0.0  ;;  %v17135_v2 = vld [vmem:[#allocation3 + $0x28] sm:$0xff]  ;;  %v17241_v31 = vld [vmem:[#allocation3 + $0x17] sm:$0xff] }
 0x8f2   : > { %6399 = vst.msk [vmem:[#allocation3 + $0x38] sm:$0xff] %vm6389_vm1, %v6386_v23  ;;  %v17126_v39 = vld [vmem:[#allocation3 + $0x20] sm:$0xff] }
 0x8f3   : > { %v17128_v52 = vld [vmem:[#allocation3 + $0x1f] sm:$0xff]  ;;  %v17130_v40 = vld [vmem:[#allocation3 + $0x27] sm:$0xff]  ;;  %6398 = vst.msk [vmem:[#allocation3 + $0x30] sm:$0xff] %vm6389_vm1, %v6385_v58  ;;  %12855 = vmatmul.mubr.msk.f32.gmra.mrb[74].mxu1 %vm6389_vm1, %v17126_v39 }
 0x8f4   : > { %v17137_v49 = vld [vmem:[#allocation3 + $0x19] sm:$0xff]  ;;  %v17139_v53 = vld [vmem:[#allocation3 + $0x21] sm:$0xff]  ;;  %12857 = vmatprep.mubr.msk.f32.mxu1 %vm6389_vm1, %v17135_v2  ;;  %v7458_v15 = vsel %vm17143_vm8, %v17128_v52, 0.0  ;;  %v7459_v26 = vsel %vm17147_vm9, %v17130_v40, 0.0  ;;  %v6542_v0 = vsel %vm17195_vm13, %v17130_v40, 0.0 }
 0x8f5   : > { %v12846_v44 = vpop.f32.mrb[38].mxu1  ;;  %v7761_v38 = vsel %vm17151_vm10, %v17137_v49, 0.0  ;;  %v7762_v18 = vsel %vm17155_vm11, %v17139_v53, 0.0 }
 0x8f6   : > { %v6380_v16 = vadd.f32 %v12846_v44, %v11340_v35  ;;  %v6349_v60 = vpop.f32.mrb[39].mxu1  ;;  %v6539_v44 = vsel %vm17143_vm8, %v6515_v3, 0.0 }
 0x8f7   : > { %v6379_v12 = vadd.f32 %v11340_v35, %v6349_v60  ;;  %v18425_v35 = vmov 0  ;;  %v18436_v60 = vld [vmem:[#allocation69_spill] sm:$0xff] }
 0x8f8   : > { %v6388_v11 = vmax.f32 %v6380_v16, 0.0  ;;  %v18426_v35 = vsel %vm17203_vm2, 4294967295, %v18425_v35  ;;  %v6540_v16 = vsel %vm17147_vm9, %v17241_v31, 0.0 }
 0x8f9   : > { %v6387_v50 = vmax.f32 %v6379_v12, 0.0  ;;  %v17183_v56 = vld [vmem:[#allocation3 + $0x38] sm:$0xff]  ;;  %v6448_v12 = vand.u32 7, %v18436_v60 }
 0x8fa   : > { %6401 = vst.msk [vmem:[#allocation3 + $0x48] sm:$0xff] %vm6389_vm1, %v6388_v11  ;;  %v17174_v57 = vld [vmem:[#allocation3 + $0x30] sm:$0xff]  ;;  %v6541_v11 = vsel %vm17191_vm15, %v17128_v52, 0.0 }
 0x8fb   : > { %v17176_v61 = vld [vmem:[#allocation3 + $0x2f] sm:$0xff]  ;;  %v17178_v32 = vld [vmem:[#allocation3 + $0x37] sm:$0xff]  ;;  %6400 = vst.msk [vmem:[#allocation3 + $0x40] sm:$0xff] %vm6389_vm1, %v6387_v50  ;;  %12858 = vmatmul.mubr.msk.f32.gmra.mrb[76].mxu1 %vm6389_vm1, %v17174_v57  ;;  %vm17278_vm7 = vcmp.gt.s32.totalorder %v6448_v12, 0  ;;  %vm17316_vm0 = vcmp.lt.s32.totalorder %v6448_v12, 7 }
 0x8fc   : > { %v17185_v62 = vld [vmem:[#allocation3 + $0x29] sm:$0xff]  ;;  %v17187_v41 = vld [vmem:[#allocation3 + $0x31] sm:$0xff]  ;;  %12860 = vmatprep.mubr.msk.f32.mxu1 %vm6389_vm1, %v17183_v56  ;;  %v7460_v33 = vsel %vm17191_vm15, %v17176_v61, 0.0  ;;  %v7461_v24 = vsel %vm17195_vm13, %v17178_v32, 0.0  ;;  %v6544_v50 = vsel %vm17278_vm7, %v17178_v32, 0.0 }
 0x8fd   : > { %v7763_v45 = vsel %vm17199_vm12, %v17185_v62, 0.0  ;;  %v7764_v47 = vsel %vm17203_vm2, %v17187_v41, 0.0  ;;  %v6845_v1 = vsel %vm17243_vm5, %v17185_v62, 0.0 }
 0x902   : > { %v17226_v51 = vld [vmem:[#allocation3 + $0x40] sm:$0xff] }
 0x903   : > { %v17228_v19 = vld [vmem:[#allocation3 + $0x3f] sm:$0xff]  ;;  %12861 = vmatmul.mubr.msk.f32.gmra.mrb[78].mxu1 %vm6389_vm1, %v17226_v51 }
 0x904   : > { %v17230_v8 = vld [vmem:[#allocation3 + $0x39] sm:$0xff]  ;;  %v17238_v48 = vld [vmem:[#allocation3 + $0x41] sm:$0xff]  ;;  %12867 = vmatprep.mubr.msk.f32.mxu1 %vm6389_vm1, %v6538_v59  ;;  %v7462_v10 = vsel %vm17234_vm4, %v17228_v19, 0.0  ;;  %v6545_v7 = vsel %vm17289_vm14, %v17228_v19, 0.0 }
 0x905   : > { %v7765_v63 = vsel %vm17243_vm5, %v17230_v8, 0.0  ;;  %v7766_v58 = vsel %vm17247_vm6, %v17238_v48, 0.0  ;;  %v7154_v59 = vld [vmem:[#allocation11 + $0x40] sm:$0xff] }
 0x907   : > { %12868 = vmatmul.mubr.msk.f32.vlgmr.msra.gmra.mrb[72].mxu1 %vm6389_vm1, %v6539_v44  ;;  %v6818_v44 = vld [vmem:[#allocation3 + $0x11] sm:$0xff] }
 0x908   : > { %12870 = vmatprep.mubr.msk.f32.mxu1 %vm6389_vm1, %v6540_v16  ;;  %13556 = vmatpush3.bf16.msra.mxu1 %v17109_v21  ;;  %v6543_v21 = vsel %vm17234_vm4, %v17176_v61, 0.0  ;;  %v13561_v16 = vpack.c.bf16 %v7155_v13, %v7154_v59  ;;  %v6842_v60 = vsel %vm17155_vm11, %v6818_v44, 0.0  ;;  %v7311_v59 = vld [vmem:[#allocation11 + $0x58] sm:$0xff]  ;;  %v6997_v13 = vsel %vm17220_vm3, %v6515_v3, 0.0 }
 0x909   : > { %13558 = vmatprep.subr.bf16.mxu1 %v13557_v6  ;;  %v7000_v3 = vsel %vm17191_vm15, %v17130_v40, 0.0  ;;  %v7456_v40 = vld [vmem:[#allocation3 + $0x4f] sm:$0xff] }
 0x90a   : > { %v7464_v9 = vsel %vm17289_vm14, %v7456_v40, 0.0 }
 0x90b   : > { %12871 = vmatmul.mubr.msk.f32.gmra.mrb[74].mxu1 %vm6389_vm1, %v6541_v11  ;;  %v6843_v11 = vsel %vm17199_vm12, %v17137_v49, 0.0 }
 0x90c   : > { %12873 = vmatprep.mubr.msk.f32.mxu1 %vm6389_vm1, %v6542_v0  ;;  %v6844_v0 = vsel %vm17203_vm2, %v17139_v53, 0.0  ;;  %vm17327_vm2 = vcmp.lt.s32.totalorder %v6455_v54, 7  ;;  %v6998_v54 = vsel %vm17143_vm8, %v17241_v31, 0.0 }
 0x90d   : > { %v6848_v12 = vsel %vm17327_vm2, %v17238_v48, 0.0 }
 0x90f   : > { %12874 = vmatmul.mubr.msk.f32.gmra.mrb[76].mxu1 %vm6389_vm1, %v6543_v21  ;;  %v8016_v21 = vld [vmem:[#allocation14] sm:$0xff] }
 0x910   : > { %12876 = vmatprep.mubr.msk.f32.mxu1 %vm6389_vm1, %v6544_v50  ;;  %v6847_v50 = vsel %vm17316_vm0, %v17230_v8, 0.0 }
 0x913   : > { %12877 = vmatmul.mubr.msk.f32.gmra.mrb[78].mxu1 %vm6389_vm1, %v6545_v7  ;;  %v7310_v7 = vld [vmem:[#allocation11 + $0x50] sm:$0xff] }
 0x914   : > { %12883 = vmatprep.mubr.msk.f32.mxu1 %vm6389_vm1, %v6841_v55  ;;  %v13565_v55 = vpack.c.bf16 %v7311_v59, %v7310_v7  ;;  %v7614_v59 = vld [vmem:[#allocation11 + $0x70] sm:$0xff] }
 0x917   : > { %12884 = vmatmul.mubr.msk.f32.vlgmr.msra.gmra.mrb[72].mxu1 %vm6389_vm1, %v6842_v60  ;;  %v6999_v60 = vsel %vm17147_vm9, %v17128_v52, 0.0  ;;  %vm7934_vm9 = vcmask 523264  }
 0x918   : > { %12886 = vmatprep.mubr.msk.f32.mxu1 %vm6389_vm1, %v6843_v11  ;;  %13560 = vmatpush3.bf16.msra.mxu1 %v13557_v6  ;;  %v6846_v6 = vsel %vm17247_vm6, %v17187_v41, 0.0  ;;  %v7001_v11 = vsel %vm17195_vm13, %v17176_v61, 0.0 }
 0x919   : > { %13562 = vmatprep.subr.bf16.mxu1 %v13561_v16 }
 0x91b   : > { %12887 = vmatmul.mubr.msk.f32.gmra.mrb[74].mxu1 %vm6389_vm1, %v6844_v0  ;;  %v7002_v0 = vsel %vm17234_vm4, %v17178_v32, 0.0  ;;  %vm10693_vm4 = vcmask 1040384  }
 0x91c   : > { %12889 = vmatprep.mubr.msk.f32.mxu1 %vm6389_vm1, %v6845_v1  ;;  %v6996_v1 = vld [vmem:[#allocation3 + $0x47] sm:$0xff] }
 0x91d   : > { %v7463_v52 = vsel %vm17278_vm7, %v6996_v1, 0.0 }
 0x91f   : > { %12890 = vmatmul.mubr.msk.f32.gmra.mrb[76].mxu1 %vm6389_vm1, %v6846_v6  ;;  %v7004_v6 = vsel %vm17289_vm14, %v6996_v1, 0.0  ;;  %v13617_v1 = vpack.c.bf16 %v8017_v25, %v8016_v21  ;;  %v8936_v21 = vld [vmem:[#allocation19 + $0x78] sm:$0xff]  ;;  %v9566_v25 = vld [vmem:[#allocation22 + $0x4] sm:$0xf] }
 0x920   : > { %12892 = vmatprep.mubr.msk.f32.mxu1 %vm6389_vm1, %v6847_v50  ;;  %v7466_v50 = vld [vmem:[#allocation11 + $0x60] sm:$0xff] }
 0x923   : > { %12893 = vmatmul.mubr.msk.f32.gmra.mrb[78].mxu1 %vm6389_vm1, %v6848_v12  ;;  %v7467_v12 = vld [vmem:[#allocation11 + $0x68] sm:$0xff] }
 0x924   : > { %12899 = vmatprep.mubr.msk.f32.mxu1 %vm6389_vm1, %v6997_v13  ;;  %v13569_v7 = vpack.c.bf16 %v7467_v12, %v7466_v50  ;;  %v7615_v13 = vld [vmem:[#allocation11 + $0x78] sm:$0xff]  ;;  %v7770_v12 = vld [vmem:[#allocation11 + $0x80] sm:$0xff] }
 0x927   : > { %12900 = vmatmul.mubr.msk.f32.vlgmr.msra.gmra.mrb[72].mxu1 %vm6389_vm1, %v6998_v54  ;;  %v13573_v54 = vpack.c.bf16 %v7615_v13, %v7614_v59  ;;  %v7457_v59 = vsel %vm17220_vm3, %v17241_v31, 0.0 }
 0x928   : > { %12902 = vmatprep.mubr.msk.f32.mxu1 %vm6389_vm1, %v6999_v60  ;;  %13564 = vmatpush3.bf16.msra.mxu1 %v13561_v16  ;;  %v7003_v16 = vsel %vm17278_vm7, %v17228_v19, 0.0  ;;  %v7302_v60 = vsel %vm17155_vm11, %v17137_v49, 0.0  ;;  %v7932_v49 = vld [vmem:[#allocation16] sm:$0xff] }
 0x929   : > { %13566 = vmatprep.subr.bf16.mxu1 %v13565_v55 }
 0x92b   : > { %12903 = vmatmul.mubr.msk.f32.gmra.mrb[74].mxu1 %vm6389_vm1, %v7000_v3  ;;  %v7303_v3 = vsel %vm17199_vm12, %v17139_v53, 0.0  ;;  %v11413_v53 = vld [vmem:[#allocation13] ss:$0 sm:$0xff]  ;;  %vm14938_vm12 = vmmov 0  }
 0x92c   : > { %12905 = vmatprep.mubr.msk.f32.mxu1 %vm6389_vm1, %v7001_v11  ;;  %v7305_v11 = vsel %vm17243_vm5, %v17187_v41, 0.0  ;;  %13263 = vmatprep.mubr.msk.f32.mxu0 %vm14938_vm12, %v18405_v34 }
 0x92f   : > { %12906 = vmatmul.mubr.msk.f32.gmra.mrb[76].mxu1 %vm6389_vm1, %v7002_v0  ;;  %v7306_v0 = vsel %vm17247_vm6, %v17230_v8, 0.0 }
 0x930   : > { %12908 = vmatprep.mubr.msk.f32.mxu1 %vm6389_vm1, %v7003_v16  ;;  %v7307_v16 = vsel %vm17316_vm0, %v17238_v48, 0.0 }
 0x933   : > { %12909 = vmatmul.mubr.msk.f32.gmra.mrb[78].mxu1 %vm6389_vm1, %v7004_v6  ;;  %v7300_v6 = vld [vmem:[#allocation3 + $0x49] sm:$0xff] }
 0x934   : > { %12915 = vmatprep.mubr.msk.f32.mxu1 %vm6389_vm1, %v17112_v42  ;;  %v7152_v42 = vld [vmem:[#allocation3 + $0x48] sm:$0xff]  ;;  %v7308_v50 = vsel %vm17327_vm2, %v7300_v6, 0.0 }
 0x937   : > { %12916 = vmatmul.mubr.msk.f32.vlgmr.msra.gmra.mrb[72].mxu1 %vm6389_vm1, %v17117_v30 }
 0x938   : > { %12918 = vmatprep.mubr.msk.f32.mxu1 %vm6389_vm1, %v17126_v39  ;;  %13568 = vmatpush3.bf16.msra.mxu1 %v13565_v55  ;;  %v7301_v55 = vsel %vm17151_vm10, %v6818_v44, 0.0  ;;  %vm18446_vm10 = vnez %v18426_v35 }
 0x939   : > { %13570 = vmatprep.subr.bf16.mxu1 %v13569_v7  ;;  %v7304_v44 = vsel %vm18446_vm10, %v17185_v62, 0.0 }
 0x93b   : > { %12919 = vmatmul.mubr.msk.f32.gmra.mrb[74].mxu1 %vm6389_vm1, %v17135_v2 }
 0x93c   : > { %12921 = vmatprep.mubr.msk.f32.mxu1 %vm6389_vm1, %v17174_v57 }
 0x93f   : > { %12922 = vmatmul.mubr.msk.f32.gmra.mrb[76].mxu1 %vm6389_vm1, %v17183_v56 }
 0x940   : > { %12924 = vmatprep.mubr.msk.f32.mxu1 %vm6389_vm1, %v17226_v51 }
 0x943   : > { %12925 = vmatmul.mubr.msk.f32.gmra.mrb[78].mxu1 %vm6389_vm1, %v7152_v42 }
 0x944   : > { %12931 = vmatprep.mubr.msk.f32.mxu1 %vm6389_vm1, %v7301_v55 }
 0x947   : > { %12932 = vmatmul.mubr.msk.f32.vlgmr.msra.gmra.mrb[72].mxu1 %vm6389_vm1, %v7302_v60 }
 0x948   : > { %12934 = vmatprep.mubr.msk.f32.mxu1 %vm6389_vm1, %v7303_v3  ;;  %13572 = vmatpush3.bf16.msra.mxu1 %v13569_v7  ;;  %v7771_v7 = vld [vmem:[#allocation11 + $0x88] sm:$0xff]  ;;  %v8268_v3 = vld [vmem:[#allocation16 + $0x20] sm:$0xff] }
 0x949   : > { %13574 = vmatprep.subr.bf16.mxu1 %v13573_v54  ;;  %v13577_v13 = vpack.c.bf16 %v7771_v7, %v7770_v12  ;;  %v8438_v12 = vld [vmem:[#allocation16 + $0x30] sm:$0xff] }
 0x94a   : > { %v8522_v7 = vld [vmem:[#allocation14 + $0x30] sm:$0xff] }
 0x94b   : > { %12935 = vmatmul.mubr.msk.f32.gmra.mrb[74].mxu1 %vm6389_vm1, %v7304_v44  ;;  %v8352_v44 = vld [vmem:[#allocation14 + $0x20] sm:$0xff] }
 0x94c   : > { %12937 = vmatprep.mubr.msk.f32.mxu1 %vm6389_vm1, %v7305_v11  ;;  %v8353_v11 = vld [vmem:[#allocation14 + $0x28] sm:$0xff] }
 0x94f   : > { %12938 = vmatmul.mubr.msk.f32.gmra.mrb[76].mxu1 %vm6389_vm1, %v7306_v0  ;;  %v13637_v0 = vpack.c.bf16 %v8353_v11, %v8352_v44 }
 0x950   : > { %12940 = vmatprep.mubr.msk.f32.mxu1 %vm6389_vm1, %v7307_v16  ;;  %v8269_v16 = vld [vmem:[#allocation16 + $0x28] sm:$0xff] }
 0x953   : > { %12941 = vmatmul.mubr.msk.f32.gmra.mrb[78].mxu1 %vm6389_vm1, %v7308_v50 }
 0x954   : > { %12947 = vmatprep.mubr.msk.f32.mxu1 %vm6389_vm1, %v7457_v59  ;;  %v8523_v59 = vld [vmem:[#allocation14 + $0x38] sm:$0xff] }
 0x957   : > { %12948 = vmatmul.mubr.msk.f32.vlgmr.msra.gmra.mrb[72].mxu1 %vm6389_vm1, %v7458_v15 }
 0x958   : > { %12950 = vmatprep.mubr.msk.f32.mxu1 %vm6389_vm1, %v7459_v26  ;;  %13576 = vmatpush3.bf16.msra.mxu1 %v13573_v54 }
 0x959   : > { %13578 = vmatprep.subr.bf16.mxu1 %v13577_v13 }
 0x95b   : > { %12951 = vmatmul.mubr.msk.f32.gmra.mrb[74].mxu1 %vm6389_vm1, %v7460_v33 }
 0x95c   : > { %12953 = vmatprep.mubr.msk.f32.mxu1 %vm6389_vm1, %v7461_v24 }
 0x95f   : > { %12954 = vmatmul.mubr.msk.f32.gmra.mrb[76].mxu1 %vm6389_vm1, %v7462_v10  ;;  %v8019_v10 = vld [vmem:[#allocation16 + $0x10] sm:$0xff] }
 0x960   : > { %12956 = vmatprep.mubr.msk.f32.mxu1 %vm6389_vm1, %v7463_v52  ;;  %v8439_v52 = vld [vmem:[#allocation16 + $0x38] sm:$0xff] }
 0x963   : > { %12957 = vmatmul.mubr.msk.f32.gmra.mrb[78].mxu1 %vm6389_vm1, %v7464_v9 }
 0x964   : > { %12963 = vmatprep.mubr.msk.f32.mxu1 %vm6389_vm1, %v17117_v30  ;;  %v7760_v30 = vld [vmem:[#allocation3 + $0x51] sm:$0xff] }
 0x967   : > { %12964 = vmatmul.mubr.msk.f32.vlgmr.msra.gmra.mrb[72].mxu1 %vm6389_vm1, %v17126_v39  ;;  %v7767_v39 = vsel %vm17316_vm0, %v7300_v6, 0.0  ;;  %vm8618_vm0 = vcmask 261120  }
 0x968   : > { %12966 = vmatprep.mubr.msk.f32.mxu1 %vm6389_vm1, %v17135_v2  ;;  %13580 = vmatpush3.bf16.msra.mxu1 %v13577_v13  ;;  %v7768_v2 = vsel %vm17327_vm2, %v7760_v30, 0.0  ;;  %v13657_v13 = vpack.c.bf16 %v8523_v59, %v8522_v7  ;;  %8619 = vst.msk [vmem:[#allocation4] sm:$0xff] %vm8618_vm0, %v18405_v34  ;;  %8620 = vst.msk [vmem:[#allocation4 + $0x18] sm:$0xff] %vm8618_vm0, %v18405_v34  ;;  %v8667_v30 = vld [vmem:[#allocation19 + $0x28] sm:$0xff]  ;;  %v9115_v7 = vld [vmem:[#allocation19 + $0xa0] sm:$0xff]  ;;  %vm18459_vm2 = vcmask 64512  }
 0x969   : > { %v9116_v59 = vld [vmem:[#allocation19 + $0xa8] sm:$0xff] }
 0x96b   : > { %12967 = vmatmul.mubr.msk.f32.gmra.mrb[74].mxu1 %vm6389_vm1, %v17174_v57 }
 0x96c   : > { %12969 = vmatprep.mubr.msk.f32.mxu1 %vm6389_vm1, %v17183_v56 }
 0x96f   : > { %12970 = vmatmul.mubr.msk.f32.gmra.mrb[76].mxu1 %vm6389_vm1, %v17226_v51 }
 0x970   : > { %12972 = vmatprep.mubr.msk.f32.mxu1 %vm6389_vm1, %v7152_v42 }
 0x973   : > { %12973 = vmatmul.mubr.msk.f32.gmra.mrb[78].mxu1 %vm6389_vm1, %v7612_v17  ;;  %v8666_v17 = vld [vmem:[#allocation19 + $0x20] sm:$0xff] }
 0x974   : > { %12979 = vmatprep.mubr.msk.f32.mxu1 %vm6389_vm1, %v7761_v38 }
 0x977   : > { %12980 = vmatmul.mubr.msk.f32.vlgmr.msra.gmra.mrb[72].mxu1 %vm6389_vm1, %v7762_v18 }
 0x978   : > { %12982 = vmatprep.mubr.msk.f32.mxu1 %vm6389_vm1, %v7763_v45 }
 0x97b   : > { %12983 = vmatmul.mubr.msk.f32.gmra.mrb[74].mxu1 %vm6389_vm1, %v7764_v47 }
 0x97c   : > { %12985 = vmatprep.mubr.msk.f32.mxu1 %vm6389_vm1, %v7765_v63  ;;  %v8020_v63 = vld [vmem:[#allocation16 + $0x18] sm:$0xff] }
 0x97f   : > { %12986 = vmatmul.mubr.msk.f32.gmra.mrb[76].mxu1 %vm6389_vm1, %v7766_v58  ;;  %v8103_v58 = vld [vmem:[#allocation14 + $0x10] sm:$0xff] }
 0x980   : > { %12988 = vmatprep.mubr.msk.f32.mxu1 %vm6389_vm1, %v7767_v39  ;;  %v13613_v43 = vpack.c.bf16 %v8104_v14, %v8103_v58  ;;  %v13661_v39 = vpack.c.bf16 %v8667_v30, %v8666_v17 }
 0x983   : > { %12989 = vmatmul.mubr.msk.f32.gmra.mrb[78].mxu1 %vm6389_vm1, %v7768_v2  ;;  %v8668_v2 = vld [vmem:[#allocation19 + $0x30] sm:$0xff] }
 0x984   : > { %13007 = vmatprep.mubr.msk.f32.mxu1 %vm7934_vm9, %v7932_v49  ;;  %v8669_v49 = vld [vmem:[#allocation19 + $0x38] sm:$0xff] }
 0xa4a   : > { %v12981_v22 = vpop.f32.mrb[72].mxu1 }
 0xa4b   : > { %v7917_v36 = vadd.f32 %v12981_v22, %v11413_v53  ;;  %v7862_v15 = vpop.f32.mrb[73].mxu1  ;;  %v8659_v22 = vld [vmem:[#allocation19] sm:$0xff] }
 0xa4c   : > { %v7916_v26 = vadd.f32 %v11413_v53, %v7862_v15 }
 0xa4d   : > { %v7925_v38 = vmax.f32 %v7917_v36, 0.0  ;;  %v8660_v36 = vld [vmem:[#allocation19 + $0x8] sm:$0xff] }
 0xa4e   : > { %v7924_v18 = vmax.f32 %v7916_v26, 0.0  ;;  %v12984_v57 = vpop.f32.mrb[74].mxu1  ;;  %v13669_v15 = vpack.c.bf16 %v8660_v36, %v8659_v22  ;;  %v11430_v26 = vld [vmem:[#allocation17] ss:$0 sm:$0xff]  ;;  %v9209_v36 = vld [vmem:[#allocation19 + $0xd0] sm:$0xff] }
 0xa4f   : > { %v7919_v61 = vadd.f32 %v12984_v57, %v11413_v53  ;;  %v7872_v32 = vpop.f32.mrb[75].mxu1 }
 0xa50   : > { %v17497_v56 = vpack.c.bf16 %v7925_v38, %v7924_v18  ;;  %v7918_v62 = vadd.f32 %v11413_v53, %v7872_v32 }
 0xa51   : > { %v7927_v41 = vmax.f32 %v7919_v61, 0.0 }
 0xa52   : > { %v7926_v28 = vmax.f32 %v7918_v62, 0.0  ;;  %v12987_v46 = vpop.f32.mrb[76].mxu1  ;;  %13582 = vmatprep.subr.bf16.mxu1 %v17497_v56  ;;  %v8627_v62 = vand.u32 3, %v18406_v20  ;;  %v8634_v20 = vand.u32 3, %v18407_v37 }
 0xa53   : > { %v7921_v5 = vadd.f32 %v12987_v46, %v11413_v53  ;;  %v7882_v35 = vpop.f32.mrb[77].mxu1  ;;  %13584 = vmatpush3.bf16.msra.mxu1 %v17497_v56 }
 0xa54   : > { %v17501_v33 = vpack.c.bf16 %v7927_v41, %v7926_v28  ;;  %v7920_v24 = vadd.f32 %v11413_v53, %v7882_v35  ;;  %v8661_v41 = vld [vmem:[#allocation19 + $0x10] sm:$0xff]  ;;  %v8662_v28 = vld [vmem:[#allocation19 + $0x18] sm:$0xff]  ;;  %vm17559_vm10 = vcmp.gt.s32.totalorder %v8627_v62, 0  ;;  %vm17572_vm11 = vcmp.gt.s32.totalorder %v8634_v20, 0 }
 0xa55   : > { %v7929_v45 = vmax.f32 %v7921_v5, 0.0  ;;  %vm17578_vm15 = vcmp.lt.s32.totalorder %v8627_v62, 3  ;;  %vm17589_vm13 = vcmp.lt.s32.totalorder %v8634_v20, 3  ;;  %v9299_v62 = vld [vmem:[#allocation19 + $0xf0] sm:$0xff] }
 0xa56   : > { %v7928_v47 = vmax.f32 %v7920_v24, 0.0  ;;  %v12990_v29 = vpop.f32.mrb[78].mxu1  ;;  %13586 = vmatprep.subr.bf16.mxu1 %v17501_v33  ;;  %v13673_v24 = vpack.c.bf16 %v8662_v28, %v8661_v41  ;;  %v9300_v41 = vld [vmem:[#allocation19 + $0xf8] sm:$0xff] }
 0xa57   : > { %v7923_v51 = vadd.f32 %v12990_v29, %v11413_v53  ;;  %v7892_v19 = vpop.f32.mrb[79].mxu1  ;;  %13588 = vmatpush3.bf16.msra.mxu1 %v17501_v33  ;;  %v8842_v29 = vld [vmem:[#allocation19 + $0x48] sm:$0xff] }
 0xa58   : > { %v17505_v8 = vpack.c.bf16 %v7929_v45, %v7928_v47  ;;  %v7922_v4 = vadd.f32 %v11413_v53, %v7892_v19  ;;  %v13665_v53 = vpack.c.bf16 %v8669_v49, %v8668_v2  ;;  %v8841_v47 = vld [vmem:[#allocation19 + $0x40] sm:$0xff]  ;;  %v8843_v19 = vld [vmem:[#allocation19 + $0x50] sm:$0xff]  ;;  %v9208_v49 = vld [vmem:[#allocation19 + $0xc8] sm:$0xff] }
 0xa59   : > { %v7931_v48 = vmax.f32 %v7923_v51, 0.0  ;;  %v13677_v51 = vpack.c.bf16 %v8842_v29, %v8841_v47  ;;  %v9207_v2 = vld [vmem:[#allocation19 + $0xc0] sm:$0xff]  ;;  %v9391_v47 = vld [vmem:[#allocation19 + $0x110] sm:$0xff]  ;;  %v9392_v29 = vld [vmem:[#allocation19 + $0x118] sm:$0xff] }
 0xa5a   : > { %v7930_v31 = vmax.f32 %v7922_v4, 0.0  ;;  %13590 = vmatprep.subr.bf16.mxu1 %v17505_v8  ;;  %v13709_v22 = vpack.c.bf16 %v9208_v49, %v9207_v2  ;;  %v13729_v20 = vpack.c.bf16 %v9392_v29, %v9391_v47  ;;  %v14937_v4 = vmov 0.0|0.0   ;;  %v11466_v2 = vld [vmem:[%s18456_s0 + $0x68] sm:$0xff]  ;;  %v11467_v49 = vld [vmem:[%s18456_s0 + $0x70] sm:$0xff]  ;;  %v10189_v47 = vld [vmem:[#allocation23 + $0x20] sm:$0xff] }
 0xa5b   : > { %13592 = vmatpush3.bf16.msra.mxu1 %v17505_v8  ;;  %13763 = vmatprep.subr.bf16.mxu0 %v14937_v4  ;;  %v10190_v29 = vld [vmem:[#allocation23 + $0x28] sm:$0xff] }
 0xa5c   : > { %v17509_v23 = vpack.c.bf16 %v7931_v48, %v7930_v31 }
 0xa5e   : > { %13594 = vmatprep.subr.bf16.mxu1 %v17509_v23 }
 0xa5f   : > { %13596 = vmatpush3.bf16.msra.mxu1 %v17509_v23 }
 0xa60   : > { %13598 = vmatprep.subr.bf16.mxu1 %v17497_v56 }
 0xa62   : > { %13008 = vmatmul.mubr.msk.f32.vlgmr.msra.gmra.mrb[80].mxu1 %vm7934_vm9, %v7933_v27 }
 0xa63   : > { %13600 = vmatpush3.bf16.msra.mxu1 %v17497_v56  ;;  %13026 = vmatprep.mubr.msk.f32.mxu1 %vm7934_vm9, %v8019_v10  ;;  %v8933_v10 = vld [vmem:[#allocation19 + $0x60] sm:$0xff] }
 0xa64   : > { %13602 = vmatprep.subr.bf16.mxu1 %v17501_v33 }
 0xa67   : > { %13604 = vmatpush3.bf16.msra.mxu1 %v17501_v33 }
 0xa68   : > { %13606 = vmatprep.subr.bf16.mxu1 %v17505_v8 }
 0xa6b   : > { %13608 = vmatpush3.bf16.msra.mxu1 %v17505_v8 }
 0xa6c   : > { %13610 = vmatprep.subr.bf16.mxu1 %v17509_v23 }
 0xa6f   : > { %13612 = vmatpush3.bf16.msra.mxu1 %v17509_v23 }
 0xa70   : > { %13614 = vmatprep.subr.bf16.mxu1 %v13613_v43 }
 0xa72   : > { %13027 = vmatmul.mubr.msk.f32.vlgmr.msra.gmra.mrb[82].mxu1 %vm7934_vm9, %v8020_v63  ;;  %v8934_v63 = vld [vmem:[#allocation19 + $0x68] sm:$0xff] }
 0xa73   : > { %13616 = vmatpush3.bf16.msra.mxu1 %v13613_v43  ;;  %v13685_v14 = vpack.c.bf16 %v8934_v63, %v8933_v10  ;;  %v8935_v43 = vld [vmem:[#allocation19 + $0x70] sm:$0xff] }
 0xa74   : > { %13618 = vmatprep.subr.bf16.mxu1 %v13617_v1 }
 0xb35   : > { %v13009_v42 = vpop.f32.mrb[80].mxu1 }
 0xb36   : > { %v8007_v55 = vpop.f32.mrb[81].mxu1 }
 0xb45   : > { %v13028_v54 = vpop.f32.mrb[82].mxu1 }
 0xb46   : > { %v8093_v60 = vpop.f32.mrb[83].mxu1 }
 0xb47   : > { %13033 = vmatprep.mubr.msk.f32.mxu1 %vm6389_vm1, %v8093_v60  ;;  %v9023_v60 = vld [vmem:[#allocation19 + $0x80] sm:$0xff] }
 0xb48   : > { %13034 = vmatmul.mubr.msk.f32.vlgmr.msra.gmra.mrb[84].mxu1 %vm6389_vm1, %v13028_v54 }
 0xb49   : > { %13620 = vmatpush3.bf16.msra.mxu1 %v13617_v1  ;;  %13040 = vmatprep.mubr.msk.f32.mxu1 %vm6389_vm1, %v8007_v55  ;;  %v13689_v55 = vpack.c.bf16 %v8936_v21, %v8935_v43  ;;  %v11452_v43 = vld [vmem:[%s18456_s0 + $0x20] sm:$0xff]  ;;  %v11453_v21 = vld [vmem:[%s18456_s0 + $0x28] sm:$0xff] }
 0xb4a   : > { %13622 = vmatprep.subr.bf16.mxu1 %v17497_v56 }
 0xb50   : > { %13041 = vmatmul.mubr.msk.f32.vlgmr.msra.gmra.mrb[84].mxu1 %vm6389_vm1, %v13009_v42 }
 0xb51   : > { %13624 = vmatpush3.bf16.msra.mxu1 %v17497_v56  ;;  %13059 = vmatprep.mubr.msk.f32.mxu1 %vm7934_vm9, %v8268_v3  ;;  %v9024_v3 = vld [vmem:[#allocation19 + $0x88] sm:$0xff] }
 0xb52   : > { %13626 = vmatprep.subr.bf16.mxu1 %v17501_v33  ;;  %v13693_v11 = vpack.c.bf16 %v9024_v3, %v9023_v60  ;;  %v9561_v60 = vld [vmem:[%s18456_s0] sm:$0xff]  ;;  %v9562_v3 = vld [vmem:[%s18456_s0 + $0x8] sm:$0xff] }
 0xb55   : > { %13628 = vmatpush3.bf16.msra.mxu1 %v17501_v33 }
 0xb56   : > { %13630 = vmatprep.subr.bf16.mxu1 %v17505_v8 }
 0xb59   : > { %13632 = vmatpush3.bf16.msra.mxu1 %v17505_v8 }
 0xb5a   : > { %13634 = vmatprep.subr.bf16.mxu1 %v17509_v23 }
 0xb5d   : > { %13636 = vmatpush3.bf16.msra.mxu1 %v17509_v23 }
 0xb5e   : > { %13638 = vmatprep.subr.bf16.mxu1 %v13637_v0 }
 0xb60   : > { %13060 = vmatmul.mubr.msk.f32.vlgmr.msra.gmra.mrb[86].mxu1 %vm7934_vm9, %v8269_v16  ;;  %v9026_v16 = vld [vmem:[#allocation19 + $0x98] sm:$0xff] }
 0xb61   : > { %13640 = vmatpush3.bf16.msra.mxu1 %v13637_v0  ;;  %v9025_v0 = vld [vmem:[#allocation19 + $0x90] sm:$0xff] }
 0xb62   : > { %13642 = vmatprep.subr.bf16.mxu1 %v17497_v56 }
 0xc33   : > { %v13061_v6 = vpop.f32.mrb[86].mxu1 }
 0xc34   : > { %v8342_v50 = vpop.f32.mrb[87].mxu1 }
 0xc35   : > { %13066 = vmatprep.mubr.msk.f32.mxu1 %vm6389_vm1, %v8342_v50  ;;  %v13697_v50 = vpack.c.bf16 %v9026_v16, %v9025_v0  ;;  %v13746_v0 = vpack.c.bf16 %v9562_v3, %v9561_v60  ;;  %v9563_v16 = vld [vmem:[%s18456_s0 + $0x10] sm:$0xff]  ;;  %v10522_v60 = vld [vmem:[#allocation25 + $0x40] sm:$0xff]  ;;  %v10523_v3 = vld [vmem:[#allocation25 + $0x48] sm:$0xff] }
 0xc36   : > { %13067 = vmatmul.mubr.msk.f32.vlgmr.msra.gmra.mrb[84].mxu1 %vm6389_vm1, %v13061_v6 }
 0xc37   : > { %13644 = vmatpush3.bf16.msra.mxu1 %v17497_v56  ;;  %13085 = vmatprep.mubr.msk.f32.mxu1 %vm7934_vm9, %v8438_v12 }
 0xc38   : > { %13646 = vmatprep.subr.bf16.mxu1 %v17501_v33 }
 0xc3b   : > { %13648 = vmatpush3.bf16.msra.mxu1 %v17501_v33 }
 0xc3c   : > { %13650 = vmatprep.subr.bf16.mxu1 %v17505_v8 }
 0xc3f   : > { %13652 = vmatpush3.bf16.msra.mxu1 %v17505_v8  ;;  %v8844_v8 = vld [vmem:[#allocation19 + $0x58] sm:$0xff] }
 0xc40   : > { %13654 = vmatprep.subr.bf16.mxu1 %v17509_v23  ;;  %v13681_v37 = vpack.c.bf16 %v8844_v8, %v8843_v19 }
 0xc43   : > { %13656 = vmatpush3.bf16.msra.mxu1 %v17509_v23 }
 0xc44   : > { %13658 = vmatprep.subr.bf16.mxu1 %v13657_v13 }
 0xc46   : > { %13086 = vmatmul.mubr.msk.f32.vlgmr.msra.gmra.mrb[88].mxu1 %vm7934_vm9, %v8439_v52  ;;  %v13701_v52 = vpack.c.bf16 %v9116_v59, %v9115_v7  ;;  %v9792_v59 = vld [vmem:[#allocation22 + $0x8] sm:$0xf] }
 0xc47   : > { %13660 = vmatpush3.bf16.msra.mxu1 %v13657_v13 }
 0xc48   : > { %13662 = vmatprep.subr.bf16.mxu1 %v13661_v39 }
 0xd19   : > { %v13087_v40 = vpop.f32.mrb[88].mxu1 }
 0xd1a   : > { %v8512_v9 = vpop.f32.mrb[89].mxu1 }
 0xd1b   : > { %13092 = vmatprep.mubr.msk.f32.mxu1 %vm6389_vm1, %v8512_v9  ;;  %v9118_v9 = vld [vmem:[#allocation19 + $0xb8] sm:$0xff] }
 0xd1c   : > { %13093 = vmatmul.mubr.msk.f32.vlgmr.msra.gmra.mrb[84].mxu1 %vm6389_vm1, %v13087_v40  ;;  %v9117_v40 = vld [vmem:[#allocation19 + $0xb0] sm:$0xff] }
 0xd1d   : > { %13664 = vmatpush3.bf16.msra.mxu1 %v13661_v39  ;;  %v13705_v30 = vpack.c.bf16 %v9118_v9, %v9117_v40  ;;  %v11461_v9 = vld [vmem:[%s18456_s0 + $0x50] sm:$0xff] }
 0xd1e   : > { %13666 = vmatprep.subr.bf16.mxu1 %v13665_v53 }
 0xd21   : > { %13668 = vmatpush3.bf16.msra.mxu1 %v13665_v53 }
 0xd22   : > { %13670 = vmatprep.subr.bf16.mxu1 %v13669_v15 }
 0xdef   : > { %v13094_v38 = vpop.f32.mrb[84].mxu1 }
 0xdf0   : > { %v8615_v18 = vadd.f32 %v13094_v38, %v11430_v26  ;;  %v8596_v57 = vpop.f32.mrb[85].mxu1 }
 0xdf1   : > { %v8614_v61 = vadd.f32 %v11430_v26, %v8596_v57  ;;  %v9297_v57 = vld [vmem:[#allocation19 + $0xe0] sm:$0xff] }
 0xdf2   : > { %v8617_v32 = vmax.f32 %v8615_v18, 0.0 }
 0xdf3   : > { %v8616_v56 = vmax.f32 %v8614_v61, 0.0  ;;  %v9298_v61 = vld [vmem:[#allocation19 + $0xe8] sm:$0xff] }
 0xdf4   : > { %8622 = vst.msk [vmem:[#allocation4 + $0x10] sm:$0xff] %vm8618_vm0, %v8617_v32 }
 0xdf5   : > { %8621 = vst.msk [vmem:[#allocation4 + $0x8] sm:$0xff] %vm8618_vm0, %v8616_v56  ;;  %v13717_v56 = vpack.c.bf16 %v9298_v61, %v9297_v57 }
 0xdfb   : > { %v9021_v39 = vld [vmem:[#allocation4 + $0x10] sm:$0xff] }
 0xdfc   : > { %v8663_v5 = vld [vmem:[#allocation4 + $0x4] sm:$0xff]  ;;  %v17563_v35 = vld [vmem:[#allocation4 + $0xc] sm:$0xff]  ;;  %v9385_v8 = vld [vmem:[#allocation4 + $0x15] sm:$0xff] }
 0xdfd   : > { %v8651_v33 = vld [vmem:[#allocation4 + $0x3] sm:$0xff]  ;;  %13103 = vmatprep.mubr.msk.f32.mxu1 %vm8618_vm0, %v8663_v5  ;;  %v17576_v48 = vld [vmem:[#allocation4 + $0xb] sm:$0xff]  ;;  %v9203_v28 = vld [vmem:[#allocation4 + $0x13] sm:$0xff]  ;;  %v13721_v5 = vpack.c.bf16 %v9300_v41, %v9299_v62 }
 0xdfe   : > { %v8657_v45 = vsel %vm17559_vm10, %v8651_v33, 0.0  ;;  %13104 = vmatmul.mubr.msk.f32.vlgmr.msra.gmra.mrb[90].mxu1 %vm8618_vm0, %v17563_v35  ;;  %v8832_v23 = vld [vmem:[#allocation4 + $0x5] sm:$0xff]  ;;  %v8658_v27 = vsel %vm17572_vm11, %v17576_v48, 0.0  ;;  %v17593_v1 = vld [vmem:[#allocation4 + $0xd] sm:$0xff]  ;;  %v9204_v32 = vsel %vm17559_vm10, %v17576_v48, 0.0  ;;  %v9205_v33 = vsel %vm17572_vm11, %v9203_v28, 0.0 }
 0xdff   : > { %13672 = vmatpush3.bf16.msra.mxu1 %v13669_v15  ;;  %13114 = vmatprep.mubr.msk.f32.mxu1 %vm8618_vm0, %v8657_v45  ;;  %v8838_v58 = vsel %vm17578_vm15, %v8832_v23, 0.0  ;;  %v8928_v42 = vld [vmem:[#allocation4 + $0x7] sm:$0xff]  ;;  %v8839_v54 = vsel %vm17589_vm13, %v17593_v1, 0.0  ;;  %v8929_v6 = vld [vmem:[#allocation4 + $0xf] sm:$0xff]  ;;  %v9386_v19 = vsel %vm17578_vm15, %v17593_v1, 0.0  ;;  %v13740_v1 = vpack.c.bf16 %v11453_v21, %v11452_v43 }
 0xe00   : > { %13674 = vmatprep.subr.bf16.mxu1 %v13673_v24  ;;  %v8930_v44 = vsel %vm17559_vm10, %v8928_v42, 0.0  ;;  %v8931_v12 = vsel %vm17572_vm11, %v8929_v6, 0.0  ;;  %v9020_v13 = vld [vmem:[#allocation4 + $0x8] sm:$0xff]  ;;  %v9210_v15 = vld [vmem:[#allocation19 + $0xd8] sm:$0xff]  ;;  %v9390_v45 = vld [vmem:[#allocation19 + $0x108] sm:$0xff] }
 0xe01   : > { %v9110_v17 = vld [vmem:[#allocation4 + $0x9] sm:$0xff]  ;;  %v9111_v26 = vld [vmem:[#allocation4 + $0x11] sm:$0xff]  ;;  %v13713_v38 = vpack.c.bf16 %v9210_v15, %v9209_v36  ;;  %v11454_v42 = vld [vmem:[%s18456_s0 + $0x30] sm:$0xff] }
 0xe02   : > { %v9112_v53 = vsel %vm17578_vm15, %v9110_v17, 0.0  ;;  %v9113_v18 = vsel %vm17589_vm13, %v9111_v26, 0.0  ;;  %v11449_v48 = vld [vmem:[#allocation20] ss:$0 sm:$0xff]  ;;  %v9564_v6 = vld [vmem:[%s18456_s0 + $0x18] sm:$0xff]  ;;  %v10110_v62 = vld [vmem:[%s18457_s3] sm:$0xff] }
 0xe03   : > { %13676 = vmatpush3.bf16.msra.mxu1 %v13673_v24  ;;  %v9389_v24 = vld [vmem:[#allocation19 + $0x100] sm:$0xff]  ;;  %v13749_v7 = vpack.c.bf16 %v9564_v6, %v9563_v16  ;;  %v11462_v17 = vld [vmem:[%s18456_s0 + $0x58] sm:$0xff]  ;;  %v10109_v41 = vld [vmem:[%s18458_s12] sm:$0x1]  ;;  %s18462_s3 = sld [smem:[#allocation133_spill]]  ;;  %s10710_s12 = scalar_lea.sflag [#allocation7], %s15461_s7 }
 0xe04   : > { %13678 = vmatprep.subr.bf16.mxu1 %v13677_v51  ;;  %v13725_v46 = vpack.c.bf16 %v9390_v45, %v9389_v24  ;;  %v10185_v28 = vld [vmem:[#allocation23] sm:$0xff]  ;;  %v10188_v24 = vld [vmem:[#allocation23 + $0x18] sm:$0xff] }
 0xe05   : > { %v10518_v21 = vld [vmem:[#allocation25 + $0x20] sm:$0xff] }
 0xe06   : > { %13115 = vmatmul.mubr.msk.f32.vlgmr.msra.gmra.mrb[90].mxu1 %vm8618_vm0, %v8658_v27  ;;  %v10526_v6 = vld [vmem:[#allocation25 + $0x60] sm:$0xff] }
 0xe07   : > { %13680 = vmatpush3.bf16.msra.mxu1 %v13677_v51  ;;  %13125 = vmatprep.mubr.msk.f32.mxu1 %vm8618_vm0, %v8838_v58  ;;  %v9295_v51 = vld [vmem:[#allocation4 + $0x14] sm:$0xff] }
 0xe08   : > { %13682 = vmatprep.subr.bf16.mxu1 %v13681_v37 }
 0xe0b   : > { %13684 = vmatpush3.bf16.msra.mxu1 %v13681_v37 }
 0xe0c   : > { %13686 = vmatprep.subr.bf16.mxu1 %v13685_v14 }
 0xe0e   : > { %13126 = vmatmul.mubr.msk.f32.vlgmr.msra.gmra.mrb[90].mxu1 %vm8618_vm0, %v8839_v54 }
 0xe0f   : > { %13688 = vmatpush3.bf16.msra.mxu1 %v13685_v14  ;;  %13136 = vmatprep.mubr.msk.f32.mxu1 %vm8618_vm0, %v8930_v44  ;;  %v9487_v14 = vld [vmem:[#allocation22] sm:$0xf] }
 0xe10   : > { %13690 = vmatprep.subr.bf16.mxu1 %v13689_v55 }
 0xe13   : > { %13692 = vmatpush3.bf16.msra.mxu1 %v13689_v55  ;;  %v11455_v55 = vld [vmem:[%s18456_s0 + $0x38] sm:$0xff] }
 0xe14   : > { %13694 = vmatprep.subr.bf16.mxu1 %v13693_v11  ;;  %v13743_v54 = vpack.c.bf16 %v11455_v55, %v11454_v42  ;;  %v10520_v42 = vld [vmem:[#allocation25 + $0x30] sm:$0xff]  ;;  %v10521_v55 = vld [vmem:[#allocation25 + $0x38] sm:$0xff] }
 0xe16   : > { %13137 = vmatmul.mubr.msk.f32.vlgmr.msra.gmra.mrb[90].mxu1 %vm8618_vm0, %v8931_v12 }
 0xe17   : > { %13696 = vmatpush3.bf16.msra.mxu1 %v13693_v11  ;;  %13147 = vmatprep.mubr.msk.f32.mxu1 %vm8618_vm0, %v9020_v13  ;;  %v11459_v13 = vld [vmem:[%s18456_s0 + $0x40] sm:$0xff] }
 0xe18   : > { %13698 = vmatprep.subr.bf16.mxu1 %v13697_v50 }
 0xe1b   : > { %13700 = vmatpush3.bf16.msra.mxu1 %v13697_v50 }
 0xe1c   : > { %13702 = vmatprep.subr.bf16.mxu1 %v13701_v52 }
 0xe1e   : > { %13148 = vmatmul.mubr.msk.f32.vlgmr.msra.gmra.mrb[90].mxu1 %vm8618_vm0, %v9021_v39  ;;  %v11465_v39 = vld [vmem:[%s18456_s0 + $0x60] sm:$0xff] }
 0xe1f   : > { %13704 = vmatpush3.bf16.msra.mxu1 %v13701_v52  ;;  %13158 = vmatprep.mubr.msk.f32.mxu1 %vm8618_vm0, %v9112_v53  ;;  %v11460_v52 = vld [vmem:[%s18456_s0 + $0x48] sm:$0xff]  ;;  %v13764_v53 = vpack.c.bf16 %v11466_v2, %v11465_v39 }
 0xe20   : > { %13706 = vmatprep.subr.bf16.mxu1 %v13705_v30  ;;  %v13755_v40 = vpack.c.bf16 %v11460_v52, %v11459_v13  ;;  %v10269_v2 = vld [vmem:[#allocation23 + $0x50] sm:$0xff] }
 0xe21   : > { %13765 = vmatpush3.bf16.msra.mxu0 %v13764_v53 }
 0xe22   : > { %13766 = vmatprep.subr.bf16.mxu0 %v14937_v4 }
 0xe23   : > { %13708 = vmatpush3.bf16.msra.mxu1 %v13705_v30  ;;  %v13758_v30 = vpack.c.bf16 %v11462_v17, %v11461_v9  ;;  %v10268_v9 = vld [vmem:[#allocation23 + $0x48] sm:$0xff] }
 0xe24   : > { %13710 = vmatprep.subr.bf16.mxu1 %v13709_v22 }
 0xe26   : > { %13159 = vmatmul.mubr.msk.f32.vlgmr.msra.gmra.mrb[90].mxu1 %vm8618_vm0, %v9113_v18 }
 0xe27   : > { %13712 = vmatpush3.bf16.msra.mxu1 %v13709_v22  ;;  %13169 = vmatprep.mubr.msk.f32.mxu1 %vm8618_vm0, %v9204_v32  ;;  %v11468_v22 = vld [vmem:[%s18456_s0 + $0x78] sm:$0xff] }
 0xe28   : > { %13714 = vmatprep.subr.bf16.mxu1 %v13713_v38  ;;  %v13767_v36 = vpack.c.bf16 %v11468_v22, %v11467_v49  ;;  %v10270_v49 = vld [vmem:[#allocation23 + $0x58] sm:$0xff]  ;;  %v10271_v22 = vld [vmem:[#allocation23 + $0x60] sm:$0xff] }
 0xe29   : > { %v13785_v53 = vpack.c.bf16 %v10270_v49, %v10269_v2  ;;  %v10615_v2 = vld [vmem:[#allocation26 + $0x68] sm:$0xff] }
 0xe2a   : > { %13768 = vmatpush3.bf16.msra.mxu0 %v13767_v36  ;;  %v10272_v36 = vld [vmem:[#allocation23 + $0x68] sm:$0xff] }
 0xe2b   : > { %13716 = vmatpush3.bf16.msra.mxu1 %v13713_v38  ;;  %13817 = vmatprep.subr.bf16.mxu0 %v14937_v4 }
 0xe2c   : > { %13718 = vmatprep.subr.bf16.mxu1 %v13717_v56 }
 0xe2e   : > { %13170 = vmatmul.mubr.msk.f32.vlgmr.msra.gmra.mrb[90].mxu1 %vm8618_vm0, %v9205_v33  ;;  %v10187_v33 = vld [vmem:[#allocation23 + $0x10] sm:$0xff] }
 0xe2f   : > { %13720 = vmatpush3.bf16.msra.mxu1 %v13717_v56  ;;  %13180 = vmatprep.mubr.msk.f32.mxu1 %vm8618_vm0, %v17563_v35  ;;  %v9387_v35 = vsel %vm17589_vm13, %v9385_v8, 0.0  ;;  %v9946_v56 = vld [vmem:[#allocation22 + $0xc] sm:$0xf] }
 0xe30   : > { %13722 = vmatprep.subr.bf16.mxu1 %v13721_v5 }
 0xe33   : > { %13724 = vmatpush3.bf16.msra.mxu1 %v13721_v5  ;;  %v10186_v5 = vld [vmem:[#allocation23 + $0x8] sm:$0xff] }
 0xe34   : > { %13726 = vmatprep.subr.bf16.mxu1 %v13725_v46  ;;  %v13770_v45 = vpack.c.bf16 %v10186_v5, %v10185_v28  ;;  %v10353_v5 = vld [vmem:[#allocation23 + $0xa0] sm:$0xff] }
 0xe36   : > { %13181 = vmatmul.mubr.msk.f32.vlgmr.msra.gmra.mrb[90].mxu1 %vm8618_vm0, %v9295_v51 }
 0xe37   : > { %13728 = vmatpush3.bf16.msra.mxu1 %v13725_v46  ;;  %13191 = vmatprep.mubr.msk.f32.mxu1 %vm8618_vm0, %v9386_v19  ;;  %v13773_v46 = vpack.c.bf16 %v10188_v24, %v10187_v33  ;;  %v10354_v33 = vld [vmem:[#allocation23 + $0xa8] sm:$0xff] }
 0xe38   : > { %13730 = vmatprep.subr.bf16.mxu1 %v13729_v20  ;;  %v13800_v24 = vpack.c.bf16 %v10354_v33, %v10353_v5 }
 0xe3b   : > { %13732 = vmatpush3.bf16.msra.mxu1 %v13729_v20  ;;  %v13776_v20 = vpack.c.bf16 %v10190_v29, %v10189_v47  ;;  %v10431_v29 = vld [vmem:[#allocation23 + $0xc0] sm:$0xff] }
 0xe3c   : > { %13733 = vmatprep.subr.bf16.mxu1 %v14937_v4 }
 0xe3e   : > { %13192 = vmatmul.mubr.msk.f32.vlgmr.msra.gmra.mrb[90].mxu1 %vm8618_vm0, %v9387_v35 }
 0xe3f   : > { %13198 = vmatprep.mubr.msk.f32.mxu1 %vm14938_vm12, %v18405_v34 }
 0xf11   : > { %v13193_v31 = vpop.f32.mrb[90].mxu1 }
 0xf12   : > { %v9484_v23 = vadd.f32 %v13193_v31, %v11449_v48  ;;  %v9465_v37 = vpop.f32.mrb[91].mxu1  ;;  %v10191_v31 = vld [vmem:[#allocation23 + $0x30] sm:$0xff] }
 0xf13   : > { %v9483_v27 = vadd.f32 %v11449_v48, %v9465_v37 }
 0xf14   : > { %v9486_v10 = vmax.f32 %v9484_v23, 0.0  ;;  %v10192_v23 = vld [vmem:[#allocation23 + $0x38] sm:$0xff] }
 0xf15   : > { %v9485_v63 = vmax.f32 %v9483_v27, 0.0  ;;  %v13779_v37 = vpack.c.bf16 %v10192_v23, %v10191_v31  ;;  %v10514_v27 = vld [vmem:[#allocation25] sm:$0xff]  ;;  %v10436_v23 = vld [vmem:[#allocation23 + $0xe8] sm:$0xff] }
 0xf16   : > { %v10435_v31 = vld [vmem:[#allocation23 + $0xe0] sm:$0xff] }
 0xf17   : > { %v17636_v58 = vpack.c.bf16 %v9486_v10, %v9485_v63  ;;  %v10515_v10 = vld [vmem:[#allocation25 + $0x8] sm:$0xff]  ;;  %v10516_v63 = vld [vmem:[#allocation25 + $0x10] sm:$0xff] }
 0xf19   : > { %13735 = vmatpush3.bf16.msra.mxu1 %v17636_v58 }
 0xf1a   : > { %13736 = vmatprep.subr.bf16.mxu1 %v14937_v4 }
 0xf1c   : > { %13199 = vmatmul.mubr.msk.f32.vlgmr.msra.gmra.mrb[92].mxu1 %vm6389_vm1, %v9487_v14  ;;  %v10517_v14 = vld [vmem:[#allocation25 + $0x18] sm:$0xff] }
 0xf1d   : > { %13738 = vmatpush3.bf16.msra.mxu1 %v17636_v58  ;;  %13205 = vmatprep.mubr.msk.f32.mxu1 %vm14938_vm12, %v18405_v34  ;;  %v13821_v43 = vpack.c.bf16 %v10517_v14, %v10516_v63  ;;  %v10528_v14 = vld [vmem:[#allocation25 + $0x70] sm:$0xff] }
 0xf1e   : > { %13739 = vmatprep.subr.bf16.mxu1 %v14937_v4 }
 0xf20   : > { %13206 = vmatmul.mubr.msk.f32.vlgmr.msra.gmra.mrb[94].mxu1 %vm6389_vm1, %v9566_v25  ;;  %v10519_v25 = vld [vmem:[#allocation25 + $0x28] sm:$0xff] }
 0xf21   : > { %13741 = vmatpush3.bf16.msra.mxu1 %v13740_v1  ;;  %13216 = vmatprep.mubr.msk.f32.mxu1 %vm14938_vm12, %v18405_v34  ;;  %v13824_v1 = vpack.c.bf16 %v10519_v25, %v10518_v21  ;;  %v10108_v25 = vld [vmem:[%s18461_s30] sm:$0x1] }
 0xf22   : > { %13742 = vmatprep.subr.bf16.mxu1 %v14937_v4 }
 0xf25   : > { %13744 = vmatpush3.bf16.msra.mxu1 %v13743_v54  ;;  %v13827_v54 = vpack.c.bf16 %v10521_v55, %v10520_v42  ;;  %v10603_v42 = vld [vmem:[#allocation26 + $0x8] sm:$0xff] }
 0xf26   : > { %13745 = vmatprep.subr.bf16.mxu1 %v14937_v4 }
 0xfef   : > { %v9557_v44 = vpop.f32.mrb[92].mxu1 }
 0xff0   : > { %v13200_v11 = vpop.f32.mrb[93].mxu1 }
 0xff1   : > { %v10524_v11 = vld [vmem:[#allocation25 + $0x50] sm:$0xff] }
 0xff3   : > { %v9636_v50 = vpop.f32.mrb[94].mxu1 }
 0xff4   : > { %v13207_v12 = vpop.f32.mrb[95].mxu1  ;;  %13217 = vmatmul.mubr.msk.f32.vlgmr.msra.gmra.mrb[96].mxu1 %vm8618_vm0, %v9636_v50  ;;  %v10527_v50 = vld [vmem:[#allocation25 + $0x68] sm:$0xff] }
 0xff5   : > { %13747 = vmatpush3.bf16.msra.mxu1 %v13746_v0  ;;  %13227 = vmatprep.mubr.msk.f32.mxu1 %vm14938_vm12, %v18405_v34  ;;  %v10525_v0 = vld [vmem:[#allocation25 + $0x58] sm:$0xff]  ;;  %v13836_v12 = vpack.c.bf16 %v10527_v50, %v10526_v6  ;;  %v10606_v6 = vld [vmem:[#allocation26 + $0x20] sm:$0xff]  ;;  %v10607_v50 = vld [vmem:[#allocation26 + $0x28] sm:$0xff] }
 0xff6   : > { %13748 = vmatprep.subr.bf16.mxu1 %v14937_v4  ;;  %v13833_v16 = vpack.c.bf16 %v10525_v0, %v10524_v11  ;;  %v10604_v11 = vld [vmem:[#allocation26 + $0x10] sm:$0xff]  ;;  %v10605_v0 = vld [vmem:[#allocation26 + $0x18] sm:$0xff] }
 0xff9   : > { %13750 = vmatpush3.bf16.msra.mxu1 %v13749_v7 }
 0xffa   : > { %13751 = vmatprep.subr.bf16.mxu1 %v14937_v4 }
 0xffc   : > { %13228 = vmatmul.mubr.msk.f32.vlgmr.msra.gmra.mrb[98].mxu1 %vm8618_vm0, %v9557_v44  ;;  %v13830_v44 = vpack.c.bf16 %v10523_v3, %v10522_v60 }
 0xffd   : > { %13753 = vmatpush3.bf16.msra.mxu1 %v17636_v58  ;;  %13234 = vmatprep.mubr.msk.f32.mxu1 %vm14938_vm12, %v18405_v34 }
 0xffe   : > { %13754 = vmatprep.subr.bf16.mxu1 %v14937_v4 }
0x1000   : > { %13235 = vmatmul.mubr.msk.f32.vlgmr.msra.gmra.mrb[100].mxu1 %vm6389_vm1, %v9792_v59  ;;  %v11470_v59 = vld [vmem:[%s18460_s23] ss:$0 sm:$0xff]  ;;  %s11476_s23 = sshll.u32 %s18101_s6, 4  ;;  %s14939_s6 = smov [#allocation28]  }
0x1001   : > { %13245 = vmatprep.mubr.msk.f32.mxu1 %vm14938_vm12, %v18405_v34  ;;  %13756 = vmatpush3.bf16.msra.mxu1 %v13755_v40  ;;  %v10267_v40 = vld [vmem:[#allocation23 + $0x40] sm:$0xff] }
0x1002   : > { %13757 = vmatprep.subr.bf16.mxu1 %v14937_v4 }
0x1005   : > { %13759 = vmatpush3.bf16.msra.mxu1 %v13758_v30  ;;  %v13782_v30 = vpack.c.bf16 %v10268_v9, %v10267_v40  ;;  %v10611_v40 = vld [vmem:[#allocation26 + $0x48] sm:$0xff] }
0x1006   : > { %13760 = vmatprep.subr.bf16.mxu1 %v14937_v4 }
0x10c7   : > { %v9714_v15 = vpop.f32.mrb[96].mxu1 }
0x10c8   : > { %v13218_v26 = vpop.f32.mrb[97].mxu1 }
0x10c9   : > { %v10273_v26 = vld [vmem:[#allocation23 + $0x70] sm:$0xff] }
0x10cf   : > { %v9787_v38 = vpop.f32.mrb[98].mxu1 }
0x10d0   : > { %v9788_v18 = vadd.f32 %v9787_v38, %v9714_v15  ;;  %v13229_v57 = vpop.f32.mrb[99].mxu1  ;;  %v13788_v15 = vpack.c.bf16 %v10272_v36, %v10271_v22  ;;  %v10274_v38 = vld [vmem:[#allocation23 + $0x78] sm:$0xff] }
0x10d1   : > { %v10349_v57 = vld [vmem:[#allocation23 + $0x80] sm:$0xff]  ;;  %v10617_v22 = vld [vmem:[#allocation26 + $0x78] sm:$0xff] }
0x10d3   : > { %v9862_v61 = vpop.f32.mrb[100].mxu1 }
0x10d4   : > { %v13236_v32 = vpop.f32.mrb[101].mxu1  ;;  %13246 = vmatmul.mubr.msk.f32.vlgmr.msra.gmra.mrb[102].mxu1 %vm8618_vm0, %v9862_v61  ;;  %v10350_v61 = vld [vmem:[#allocation23 + $0x88] sm:$0xff] }
0x10d5   : > { %13762 = vmatpush3.bf16.msra.mxu1 %v17636_v58  ;;  %13252 = vmatprep.mubr.msk.f32.mxu1 %vm14938_vm12, %v18405_v34  ;;  %v13818_v58 = vpack.c.bf16 %v10515_v10, %v10514_v27  ;;  %v13794_v32 = vpack.c.bf16 %v10350_v61, %v10349_v57  ;;  %v10437_v27 = vld [vmem:[#allocation23 + $0xf0] sm:$0xff]  ;;  %v10438_v10 = vld [vmem:[#allocation23 + $0xf8] sm:$0xff]  ;;  %v18463_v61 = vlaneseq }
0x10d6   : > { %13266 = vmatprep.subr.mxu1 %v18405_v34  ;;  %v13815_v63 = vpack.c.bf16 %v10438_v10, %v10437_v27 }
0x10d8   : > { %13253 = vmatmul.mubr.msk.f32.vlgmr.msra.gmra.mrb[104].mxu1 %vm6389_vm1, %v9946_v56 }
0x10d9   : > { %13268 = vmatprep.mubr.msk.f32.mxu1 %vm14938_vm12, %v18405_v34  ;;  %13267 = vmatpush3.msra.mxu1 %v10110_v62  ;;  %v10351_v62 = vld [vmem:[#allocation23 + $0x90] sm:$0xff] }
0x10da   : > { %13769 = vmatprep.subr.bf16.mxu1 %v14937_v4 }
0x10dc   : > { %13269 = vmatmul.mubr.msk.f32.vlgmr.msra.gmra.mrb[106].mxu1 %vm18459_vm2, %v10109_v41  ;;  %v10352_v41 = vld [vmem:[#allocation23 + $0x98] sm:$0xff] }
0x10dd   : > { %13287 = vmatprep.mubr.msk.f32.mxu1 %vm14938_vm12, %v18405_v34  ;;  %13771 = vmatpush3.bf16.msra.mxu1 %v13770_v45  ;;  %v13797_v28 = vpack.c.bf16 %v10352_v41, %v10351_v62  ;;  %v10355_v45 = vld [vmem:[#allocation23 + $0xb0] sm:$0xff] }
0x10de   : > { %13772 = vmatprep.subr.bf16.mxu1 %v14937_v4 }
0x10e1   : > { %13774 = vmatpush3.bf16.msra.mxu1 %v13773_v46  ;;  %v10356_v46 = vld [vmem:[#allocation23 + $0xb8] sm:$0xff] }
0x10e2   : > { %13775 = vmatprep.subr.bf16.mxu1 %v14937_v4  ;;  %v13803_v47 = vpack.c.bf16 %v10356_v46, %v10355_v45 }
0x10e5   : > { %13777 = vmatpush3.bf16.msra.mxu1 %v13776_v20  ;;  %v10432_v20 = vld [vmem:[#allocation23 + $0xc8] sm:$0xff] }
0x10e6   : > { %13778 = vmatprep.subr.bf16.mxu1 %v14937_v4 }
0x10e9   : > { %13780 = vmatpush3.bf16.msra.mxu1 %v13779_v37  ;;  %v13812_v37 = vpack.c.bf16 %v10436_v23, %v10435_v31 }
0x10ea   : > { %13781 = vmatprep.subr.bf16.mxu1 %v14937_v4 }
0x11a7   : > { %v9940_v51 = vpop.f32.mrb[102].mxu1 }
0x11a8   : > { %v9944_v19 = vadd.f32 %v9940_v51, %v9788_v18  ;;  %v13247_v8 = vpop.f32.mrb[103].mxu1  ;;  %v13791_v18 = vpack.c.bf16 %v10274_v38, %v10273_v26  ;;  %v13806_v51 = vpack.c.bf16 %v10432_v20, %v10431_v29 }
0x11a9   : > { %v10433_v8 = vld [vmem:[#allocation23 + $0xd0] sm:$0xff] }
0x11ab   : > { %v10016_v35 = vpop.f32.mrb[104].mxu1 }
0x11ac   : > { %v13254_v48 = vpop.f32.mrb[105].mxu1  ;;  %13264 = vmatmul.mubr.msk.f32.vlgmr.msra.gmra.mrb[32].mxu0 %vm8618_vm0, %v10016_v35  ;;  %v10434_v35 = vld [vmem:[#allocation23 + $0xd8] sm:$0xff] }
0x11ad   : > { %13379 = vmatprep.mubr.msk.f32.mxu0 %vm14938_vm12, %v18405_v34  ;;  %13819 = vmatpush3.bf16.msra.mxu0 %v13818_v58  ;;  %v13809_v48 = vpack.c.bf16 %v10434_v35, %v10433_v8 }
0x11ae   : > { %13820 = vmatprep.subr.bf16.mxu0 %v14937_v4 }
0x11b1   : > { %13822 = vmatpush3.bf16.msra.mxu0 %v13821_v43  ;;  %v10529_v43 = vld [vmem:[#allocation25 + $0x78] sm:$0xff] }
0x11b2   : > { %13823 = vmatprep.subr.bf16.mxu0 %v14937_v4  ;;  %v13839_v21 = vpack.c.bf16 %v10529_v43, %v10528_v14 }
0x11b5   : > { %13825 = vmatpush3.bf16.msra.mxu0 %v13824_v1  ;;  %v10602_v1 = vld [vmem:[#allocation26] sm:$0xff] }
0x11b6   : > { %13826 = vmatprep.subr.bf16.mxu0 %v14937_v4  ;;  %v13842_v3 = vpack.c.bf16 %v10603_v42, %v10602_v1 }
0x11b9   : > { %13828 = vmatpush3.bf16.msra.mxu0 %v13827_v54 }
0x11ba   : > { %13829 = vmatprep.subr.bf16.mxu0 %v14937_v4 }
0x11bd   : > { %13831 = vmatpush3.bf16.msra.mxu0 %v13830_v44 }
0x11be   : > { %13832 = vmatprep.subr.bf16.mxu0 %v14937_v4 }
0x11c1   : > { %13834 = vmatpush3.bf16.msra.mxu0 %v13833_v16  ;;  %v13845_v16 = vpack.c.bf16 %v10605_v0, %v10604_v11 }
0x11c2   : > { %13835 = vmatprep.subr.bf16.mxu0 %v14937_v4 }
0x11c5   : > { %13837 = vmatpush3.bf16.msra.mxu0 %v13836_v12  ;;  %v13848_v12 = vpack.c.bf16 %v10607_v50, %v10606_v6 }
0x11c6   : > { %13838 = vmatprep.subr.bf16.mxu0 %v14937_v4 }
0x11c9   : > { %13840 = vmatpush3.bf16.msra.mxu0 %v13839_v21 }
0x11ca   : > { %13841 = vmatprep.subr.bf16.mxu0 %v14937_v4 }
0x127f   : > { %v10094_v7 = vpop.f32.mrb[32].mxu0 }
0x1280   : > { %v10098_v13 = vadd.f32 %v10094_v7, %v9944_v19  ;;  %v13265_v52 = vpop.f32.mrb[33].mxu0  ;;  %v10608_v7 = vld [vmem:[#allocation26 + $0x30] sm:$0xff] }
0x1281   : > { %v10610_v52 = vld [vmem:[#allocation26 + $0x40] sm:$0xff] }
0x1282   : > { %v10106_v17 = vadd.f32 %v11470_v59, %v10098_v13  ;;  %v10609_v59 = vld [vmem:[#allocation26 + $0x38] sm:$0xff]  ;;  %v13854_v9 = vpack.c.bf16 %v10611_v40, %v10610_v52 }
0x1283   : > { %v13851_v13 = vpack.c.bf16 %v10609_v59, %v10608_v7 }
0x1284   : > { %v17749_v39 = vmax.f32 %v10106_v17, 0.0  ;;  %v10613_v17 = vld [vmem:[#allocation26 + $0x58] sm:$0xff] }
0x1286   : > { %13288 = vmatmul.mubr.msk.f32.vlgmr.msra.gmra.mrb[106].mxu1 %vm7934_vm9, %v17749_v39  ;;  %v10275_v56 = vrot.slane %v17749_v39, 1  ;;  %v10357_v19 = vrot.slane %v17749_v39, 2  ;;  %v10439_v58 = vrot.slane %v17749_v39, 3  ;;  %v10614_v39 = vld [vmem:[#allocation26 + $0x60] sm:$0xff] }
0x1287   : > { %13783 = vmatpush3.bf16.msra.mxu1 %v13782_v30  ;;  %13306 = vmatprep.mubr.msk.f32.mxu1 %vm14938_vm12, %v18405_v34  ;;  %v13860_v49 = vpack.c.bf16 %v10615_v2, %v10614_v39 }
0x1288   : > { %13784 = vmatprep.subr.bf16.mxu1 %v14937_v4 }
0x128b   : > { %13786 = vmatpush3.bf16.msra.mxu1 %v13785_v53  ;;  %v10616_v53 = vld [vmem:[#allocation26 + $0x70] sm:$0xff] }
0x128c   : > { %13787 = vmatprep.subr.bf16.mxu1 %v14937_v4  ;;  %v13863_v36 = vpack.c.bf16 %v10617_v22, %v10616_v53 }
0x128f   : > { %13789 = vmatpush3.bf16.msra.mxu1 %v13788_v15  ;;  %v10530_v15 = vld [vmem:[%s18462_s3] sm:$0x1]  ;;  %s17802_s3 = scalar_lea.hbm %s18465_s18, %s11476_s23 }
0x1290   : > { %13790 = vmatprep.subr.bf16.mxu1 %v14937_v4 }
0x1293   : > { %13792 = vmatpush3.bf16.msra.mxu1 %v13791_v18 }
0x1294   : > { %13793 = vmatprep.subr.bf16.mxu1 %v14937_v4 }
0x1296   : > { %13307 = vmatmul.mubr.msk.f32.vlgmr.msra.gmra.mrb[106].mxu1 %vm7934_vm9, %v10275_v56  ;;  %v10618_v56 = vld [vmem:[%s18464_s8] sm:$0x1]  ;;  %s14826_s8 = sshll.u32 %s14939_s6, 4  ;;  %s14827_s8 = int_to_ptr.vmem [resolvable:$false] %s14826_s8 }
0x1297   : > { %13795 = vmatpush3.bf16.msra.mxu1 %v13794_v32  ;;  %13325 = vmatprep.mubr.msk.f32.mxu1 %vm14938_vm12, %v18405_v34  ;;  %v10690_v32 = vand.u32 127, %v18463_v61  ;;  %s14828_s30 = scalar_lea.vmem %s14827_s8, 32  ;;  %p14829_p9 = scmp.lt.s32.totalorder %s17804_s19, %s14827_s8 }
0x1298   : > { %13796 = vmatprep.subr.bf16.mxu1 %v14937_v4  ;;  %p14830_p7 = scmp.lt.s32.totalorder %s14828_s30, %s14822_s11 }
0x1299   : > { %vm10705_vm1 = vcmp.eq.s32.totalorder %v10690_v32, 6  ;;  %vm10691_vm3 = vcmp.lt.s32.totalorder %v10690_v32, 6 }
0x129a   : > { %p14831_p4 = por %p14830_p7, %p14829_p9 }
0x129b   : > { %13798 = vmatpush3.bf16.msra.mxu1 %v13797_v28 }
0x129c   : > { %13799 = vmatprep.subr.bf16.mxu1 %v14937_v4  ;;  %p14832_p12 = pnand %p14831_p4, %p14825_p5 }
0x129f   : > { %13801 = vmatpush3.bf16.msra.mxu1 %v13800_v24 }
0x12a0   : > { %13802 = vmatprep.subr.bf16.mxu1 %v14937_v4 }
0x12a3   : > { %13804 = vmatpush3.bf16.msra.mxu1 %v13803_v47 }
0x12a4   : > { %13805 = vmatprep.subr.bf16.mxu1 %v14937_v4 }
0x12a6   : > { %13326 = vmatmul.mubr.msk.f32.vlgmr.msra.gmra.mrb[106].mxu1 %vm7934_vm9, %v10357_v19 }
0x12a7   : > { %13807 = vmatpush3.bf16.msra.mxu1 %v13806_v51  ;;  %13344 = vmatprep.mubr.msk.f32.mxu1 %vm14938_vm12, %v18405_v34 }
0x12a8   : > { %13808 = vmatprep.subr.bf16.mxu1 %v14937_v4 }
0x12ab   : > { %13810 = vmatpush3.bf16.msra.mxu1 %v13809_v48 }
0x12ac   : > { %13811 = vmatprep.subr.bf16.mxu1 %v14937_v4 }
0x12af   : > { %13813 = vmatpush3.bf16.msra.mxu1 %v13812_v37 }
0x12b0   : > { %13814 = vmatprep.subr.bf16.mxu1 %v14937_v4 }
0x12b3   : > { %13816 = vmatpush3.bf16.msra.mxu1 %v13815_v63 }
0x12b6   : > { %13345 = vmatmul.mubr.msk.f32.vlgmr.msra.gmra.mrb[106].mxu1 %vm7934_vm9, %v10439_v58 }
0x1389   : > { %v10508_v55 = vpop.f32.mrb[106].mxu1 }
0x138a   : > { %v13865_v54 = vadd.f32 %v10508_v55, %v10108_v25  ;;  %v13346_v60 = vpop.f32.mrb[107].mxu1 }
0x138c   : > { %v10513_v44 = vmax.f32 %v13865_v54, 0.0 }
0x138e   : > { %13380 = vmatmul.mubr.f32.vlgmr.msra.gmra.mrb[34].mxu0 %v10513_v44 }
0x138f   : > { %13843 = vmatpush3.bf16.msra.mxu0 %v13842_v3  ;;  %13414 = vmatprep.mubr.msk.f32.mxu0 %vm14938_vm12, %v18405_v34  ;;  %v10612_v34 = vld [vmem:[#allocation26 + $0x50] sm:$0xff] }
0x1390   : > { %13844 = vmatprep.subr.bf16.mxu0 %v14937_v4  ;;  %v13857_v30 = vpack.c.bf16 %v10613_v17, %v10612_v34 }
0x1393   : > { %13846 = vmatpush3.bf16.msra.mxu0 %v13845_v16 }
0x1394   : > { %13847 = vmatprep.subr.bf16.mxu0 %v14937_v4 }
0x1397   : > { %13849 = vmatpush3.bf16.msra.mxu0 %v13848_v12 }
0x1398   : > { %13850 = vmatprep.subr.bf16.mxu0 %v14937_v4 }
0x139b   : > { %13852 = vmatpush3.bf16.msra.mxu0 %v13851_v13 }
0x139c   : > { %13853 = vmatprep.subr.bf16.mxu0 %v14937_v4 }
0x139f   : > { %13855 = vmatpush3.bf16.msra.mxu0 %v13854_v9 }
0x13a0   : > { %13856 = vmatprep.subr.bf16.mxu0 %v14937_v4 }
0x13a3   : > { %13858 = vmatpush3.bf16.msra.mxu0 %v13857_v30 }
0x13a4   : > { %13859 = vmatprep.subr.bf16.mxu0 %v14937_v4 }
0x13a7   : > { %13861 = vmatpush3.bf16.msra.mxu0 %v13860_v49 }
0x13a8   : > { %13862 = vmatprep.subr.bf16.mxu0 %v14937_v4 }
0x13ab   : > { %13864 = vmatpush3.bf16.msra.mxu0 %v13863_v36 }
0x1461   : > { %v10597_v26 = vpop.f32.mrb[34].mxu0 }
0x1462   : > { %v10598_v38 = vadd.f32 %v10597_v26, %v10530_v15  ;;  %v13381_v18 = vpop.f32.mrb[35].mxu0 }
0x1464   : > { %v10601_v57 = vmax.f32 %v10598_v38, 0.0 }
0x1466   : > { %13415 = vmatmul.mubr.f32.vlgmr.msra.gmra.mrb[36].mxu0 %v10601_v57 }
0x1539   : > { %v10685_v4 = vpop.f32.mrb[36].mxu0 }
0x153a   : > { %v10686_v62 = vadd.f32 %v10685_v4, %v10618_v56  ;;  %v13416_v41 = vpop.f32.mrb[37].mxu0 }
0x153c   : > { %v10706_v28 = vsel %vm10705_vm1, %v10686_v62, 0.0  ;;  %v10692_v5 = vsel %vm10691_vm3, %v10686_v62, -1e+30 }
0x153d   : > { %v10694_v33 = vsel %vm10693_vm4, %v10692_v5, -inf }
0x153e   : > { %10695 = vmax.xlane.f32.xlu0 %v10694_v33 }
0x15cb   : > { %v10696_v24 = vpop.xlane.xlu0 %10695 }
0x15cc   : > { %v10697_v45 = vsub.f32 %v10692_v5, %v10696_v24 }
0x15ce   : > { %v10698_v46 = vmul.f32 1.442695, %v10697_v45 }
0x15d0   : > { %14424 = vpow2.f32 %v10698_v46 }
0x15da   : > { %v14425_v47 = vpop.eup %14424 }
0x15db   : > { %v10700_v29 = vsel %vm10693_vm4, %v14425_v47, 0.0 }
0x15dc   : > { %10701 = vadd.xlane.f32.xlu0 %v10700_v29 }
0x1669   : > { %v10702_v20 = vpop.xlane.xlu0 %10701 }
0x166a   : > { %14426 = vrcp.f32 %v10702_v20 }
0x1674   : > { %v14427_v51 = vpop.eup %14426 }
0x1675   : > { %v10704_v19 = vmul.f32 %v14427_v51, %v14425_v47 }
0x1677   : > { %v10707_v8 = vsel %vm10691_vm3, %v10704_v19, %v10706_v28 }
0x1678   : > { %10708 = vst [vmem:[%s944_s13] sm:$0x1] %v10707_v8 }
0x1679   : > { %14835 = shalt.err (!%p14832_p12)
}
0x167a   : > { %s14836_s7 = scalar_lea.hbm %s17802_s3, 16  ;;  %s14840_s4 = scalar_lea.hbm %s18465_s18, 32 }
0x167b   : > { %p14837_p13 = scmp.ne.s32.totalorder %s17802_s3, %s14836_s7  ;;  %p14841_p2 = scmp.lt.u32.totalorder %s17802_s3, %s18465_s18 }
0x167c   : > { %p14842_p0 = scmp.lt.u32.totalorder %s14840_s4, %s14836_s7  ;;  %p14844_p10 = scmp.lt.u32.totalorder %s14836_s7, %s17802_s3 }
0x167d   : > { %p14838_p1 = pnand %p14837_p13, %p18466_p11 }
0x167e   : > { %p14843_p6 = por %p14842_p0, %p14841_p2 }
0x167f   : > { %p14839_p3 = pneg %p14838_p1 }
0x1680   : > { %p14845_p8 = por %p14844_p10, %p14843_p6 }
0x1682   : > { %p14846_p5 = pnand %p14845_p8, %p14839_p3 }
0x1684   : > { %14849 = shalt.err (!%p14846_p5)
}
0x1685   : > { %14294 = dma.vmem_to_hbm [thread:$0]  (%p18466_p11), %s17804_s19, 16, %s17802_s3, %s10710_s12  }
0x1686 PF: > { %s10734_s11 = sand.u32 1, %s14904_s5   ;;  %p18467_p9 = scmp.ne.s32.totalorder %s18096_s24, 0 }
0x1687   : > { %p18468_p7 = scmp.ge.s32.totalorder %s14916_s28, 2  ;;  %s10735_s30 = scalar_lea.sflag [#allocation7], %s10734_s11 }
0x1689   : > { %p14341_p4 = pnand %p18468_p7, %p18467_p9 }
0x168b   : > { %14899 = dma.done.wait (!%p14341_p4), %s10735_s30, 16  }
0x168c   : > { %14901 = vsyncadd (!%p14341_p4), %s10735_s30, 4294967280  ;;  %p44_p12 = scmp.ge.s32.totalorder %s15391_s1, 4   ;;  %s18469_s5 = smov %s14908_s26 }
0x168d   : > { %s18470_s26 = smov %s14912_s27  ;;  %s18471_s27 = smov %s15403_s10 }
0x168e   : > { %s18472_s28 = smov %s15391_s1  ;;  %46 = sbr.rel (!%p44_p12) target bundleno = 34 (0x22), region = 258 }
0x1695   :  { %10739 = vsyncpa [#allocation6], 1 }
0x1696   :  { %10741 = vsyncpa [#allocation6 + $0x1], 1 }
0x1697   :  { %10742 = vsyncpa [#allocation9], 1 }
0x1698   :  { %10743 = vsyncpa [#allocation12], 1 }
0x1699   :  { %10744 = vsyncpa [#allocation15], 1 }
0x169a   :  { %10745 = vsyncpa [#allocation18], 1 }
0x169b   :  { %10746 = vsyncpa [#allocation21], 1 }
0x169c   :  { %10747 = vsyncpa [#allocation24], 1 }
0x169d   :  { %10748 = vsyncpa [#allocation27], 1 }
0x169e   :  { %10749 = vsyncpa [#allocation7], 1 }
0x169f   :  { %10751 = vsyncpa [#allocation7 + $0x1], 1 }

</bundles_post_ra>
